<compile_context>
chip_gen: v7x
topology: tpu7x:2x2x1
jax: 0.10.0
libtpu: 0.0.40
codegen_flags: <defaults>
</compile_context>

<pallas_src>
import math

import jax
import jax.numpy as jnp
from jax.experimental import pallas as pl
from jax.experimental.pallas import tpu as pltpu


# ---------------------------------------------------------------------------
# Fused (conv-folded) MLP kernel: out = relu(feat @ w1_eff + b1_eff) @ w2 + b2
# Grid: (out_tiles,).  feat/w1/b1 are resident (constant index maps); the
# hidden activation is computed once at step 0 into a persistent VMEM scratch.
# ---------------------------------------------------------------------------
def _mlp_kernel(f_ref, w1_ref, b1_ref, w2_ref, b2_ref, o_ref, h_ref):
    # f_ref : (B, K)        bf16   activations (K = C*HW), DMA'd once
    # w1_ref: (K, NH)       bf16   folded first-layer weights, DMA'd once
    # b1_ref: (1, NH)       f32
    # w2_ref: (NH, TO)      bf16   second-layer chunk for output tile i
    # b2_ref: (1, TO)       f32
    # o_ref : (B, TO)       f32    output tile i
    # h_ref : (B, NH)       bf16   VMEM scratch, persists across grid steps
    i = pl.program_id(0)

    @pl.when(i == 0)
    def _():
        h = jnp.dot(f_ref[...], w1_ref[...],
                    preferred_element_type=jnp.float32)
        h = jnp.maximum(h + b1_ref[...], 0.0)
        h_ref[...] = h.astype(h_ref.dtype)

    o_ref[...] = (jnp.dot(h_ref[...], w2_ref[...],
                          preferred_element_type=jnp.float32)
                  + b2_ref[...]).astype(o_ref.dtype)


def mlp(feat_bf16, w1, b1, w2, b2):
    B, K = feat_bf16.shape
    NH = w1.shape[1]           # hidden width (2048)
    Dp = w2.shape[1]           # padded output width (multiple of 128)
    assert Dp % 128 == 0
    # 256-wide output tiles when possible (v6e/v7x MXU width); 128 otherwise.
    tile_out = 256 if (Dp % 256 == 0 and Dp >= 256) else 128
    grid = (Dp // tile_out,)

    return pl.pallas_call(
        _mlp_kernel,
        out_shape=jax.ShapeDtypeStruct((B, Dp), jnp.float32),
        grid_spec=pltpu.PrefetchScalarGridSpec(
            num_scalar_prefetch=0,
            grid=grid,
            in_specs=[
                pl.BlockSpec((B, K), lambda i: (0, 0)),          # activations
                pl.BlockSpec((K, NH), lambda i: (0, 0)),         # w1_eff (whole)
                pl.BlockSpec((1, NH), lambda i: (0, 0)),         # b1_eff
                pl.BlockSpec((NH, tile_out), lambda i: (0, i)),  # w2 chunk
                pl.BlockSpec((1, tile_out), lambda i: (0, i)),   # b2 tile
            ],
            out_specs=pl.BlockSpec((B, tile_out), lambda i: (0, i)),
            scratch_shapes=[pltpu.VMEM((B, NH), jnp.bfloat16)],
        ),
        # Output-tile axis is a carry (h computed at i==0), so "arbitrary".
        compiler_params=pltpu.CompilerParams(
            dimension_semantics=("arbitrary",),
            vmem_limit_bytes=32 << 20,
        ),
    )(feat_bf16, w1, b1, w2, b2)


# ---------------------------------------------------------------------------
# Parameter prep: fold the 1x1 conv into Linear(1800,2048), pad out dim
# ---------------------------------------------------------------------------
def fold_params(params, chan, HW):
    w1r = params["w1"].reshape(8, HW, -1)                        # (8, HW, 2048)
    w1_eff = jnp.einsum("oc,ohn->chn", params["w_pool"], w1r)    # (C, HW, 2048)
    w1_eff = w1_eff.reshape(chan * HW, -1)
    b1_eff = params["b1"] + jnp.einsum("o,ohn->n", params["b_pool"], w1r)

    D = params["w2"].shape[1]
    Dp = pl.cdiv(D, 128) * 128
    w2p = jnp.pad(params["w2"], ((0, 0), (0, Dp - D)))
    b2p = jnp.pad(params["b2"], ((0, Dp - D),))
    return {
        "w1": w1_eff.astype(jnp.bfloat16),
        "b1": b1_eff.reshape(1, -1).astype(jnp.float32),
        "w2": w2p.astype(jnp.bfloat16),
        "b2": b2p.reshape(1, -1).astype(jnp.float32),
    }


# ---------------------------------------------------------------------------
# LaneCls forward
# ---------------------------------------------------------------------------
def lane_cls_forward(x_list, folded, dim, total_dim):
    x = x_list[-1]                               # (B, C, H, W)
    B = x.shape[0]
    # Channel-major flatten (B, C*H*W); cast to bf16 once here (not per-step
    # in the kernel).
    feat = x.reshape(B, -1).astype(jnp.bfloat16)
    out_pad = mlp(feat, folded["w1"], folded["b1"], folded["w2"], folded["b2"])
    cls = out_pad[:, :total_dim].reshape((B,) + tuple(dim))
    return {"cls": cls}
    # TODO(synk): postprocess / get_lanes / loss are host-side numpy/scipy and
    # are not part of the forward pass, so they are not translated to Pallas.


# ---------------------------------------------------------------------------
# Deterministic parameter init (PyTorch-style uniform(-1/sqrt(fan_in), +))
# ---------------------------------------------------------------------------
def init_params(key, chan, total_dim):
    ks = jax.random.split(key, 6)

    def u(k, shape, fan_in):
        bound = 1.0 / math.sqrt(fan_in)
        return jax.random.uniform(k, shape, jnp.float32, -bound, bound)

    return {
        "w_pool": u(ks[0], (8, chan), chan),        # Conv2d(chan, 8, 1) weight
        "b_pool": u(ks[1], (8,), chan),             # conv bias
        "w1": u(ks[2], (1800, 2048), 1800),         # Linear(1800,2048) (transposed)
        "b1": u(ks[3], (2048,), 1800),
        "w2": u(ks[4], (2048, total_dim), 2048),    # Linear(2048,total_dim) (transposed)
        "b2": u(ks[5], (total_dim,), 2048),
    }


# Pure-JAX f32 reference of the original (unfolded) torch forward
def reference_forward(x_list, params, dim):
    x = x_list[-1]
    B = x.shape[0]
    pooled = jnp.einsum("oc,bchw->bohw", params["w_pool"], x) + \
        params["b_pool"].reshape(1, 8, 1, 1)
    feat = pooled.reshape(B, -1)
    h = jnp.maximum(feat @ params["w1"] + params["b1"], 0.0)
    out = h @ params["w2"] + params["b2"]
    return out.reshape((B,) + tuple(dim))


if __name__ == "__main__":
    # Small configuration consistent with the module: 8 * H * W must be 1800.
    # B=8 (full sublane) so the weight stream is amortized and stores unmasked.
    B, chan, H, W = 8, 4, 9, 25
    griding_num = 10
    dim = (griding_num + 1, 4, 2)                 # (griding_num+1, rows, lanes)
    total_dim = int(dim[0] * dim[1] * dim[2])     # 88

    key = jax.random.PRNGKey(0)
    k_x, k_p = jax.random.split(key)
    x = jax.random.normal(k_x, (B, chan, H, W), jnp.float32)
    params = init_params(k_p, chan, total_dim)
    folded = fold_params(params, chan, H * W)

    out = lane_cls_forward([x], folded, dim, total_dim)
    cls = jax.block_until_ready(out["cls"])

    ref = reference_forward([x], params, dim)
    assert cls.shape == (B,) + dim, cls.shape
    assert bool(jnp.all(jnp.isfinite(cls)))
    # bf16 weight/activation storage vs f32 reference -> loose-ish tolerance
    assert bool(jnp.allclose(cls, ref, rtol=2e-2, atol=2e-2)), \
        float(jnp.max(jnp.abs(cls - ref)))

    print("KERNEL_OK")
</pallas_src>

<mosaic_0001>
module attributes {stable_mosaic.version = 11 : i64} {
  func.func @_mlp_kernel(%arg0: i32, %arg1: memref<8x900xbf16, #tpu.memory_space<vmem>>, %arg2: memref<900x2048xbf16, #tpu.memory_space<vmem>>, %arg3: memref<1x2048xf32, #tpu.memory_space<vmem>>, %arg4: memref<2048x128xbf16, #tpu.memory_space<vmem>>, %arg5: memref<1x128xf32, #tpu.memory_space<vmem>>, %arg6: memref<8x128xf32, #tpu.memory_space<vmem>>, %arg7: memref<8x2048xbf16, #tpu.memory_space<vmem>>) attributes {dimension_semantics = [#tpu.dimension_semantics<arbitrary>], iteration_bounds = array<i64: 1>, scalar_prefetch = 0 : i64, scratch_operands = 1 : i64, tpu.core_type = #tpu.core_type<tc>, window_params = [{pipeline_mode = #tpu.pipeline_mode<synchronous>, transform_indices = @transform_0, window_bounds = array<i64: 8, 900>}, {pipeline_mode = #tpu.pipeline_mode<synchronous>, transform_indices = @transform_1, window_bounds = array<i64: 900, 2048>}, {pipeline_mode = #tpu.pipeline_mode<synchronous>, transform_indices = @transform_2, window_bounds = array<i64: 1, 2048>}, {transform_indices = @transform_3, window_bounds = array<i64: 2048, 128>}, {transform_indices = @transform_4, window_bounds = array<i64: 1, 128>}, {transform_indices = @transform_5, window_bounds = array<i64: 8, 128>}]} {
    %c0_i32 = arith.constant 0 : i32
    %0 = arith.cmpi eq, %arg0, %c0_i32 : i32
    %1 = arith.extui %0 : i1 to i32
    %c0_i32_0 = arith.constant 0 : i32
    %2 = arith.cmpi ne, %1, %c0_i32_0 : i32
    scf.if %2 {
      %c0_8 = arith.constant 0 : index
      %c0_9 = arith.constant 0 : index
      %10 = vector.load %arg1[%c0_8, %c0_9] : memref<8x900xbf16, #tpu.memory_space<vmem>>, vector<8x900xbf16>
      %c0_10 = arith.constant 0 : index
      %c0_11 = arith.constant 0 : index
      %11 = vector.load %arg2[%c0_10, %c0_11] : memref<900x2048xbf16, #tpu.memory_space<vmem>>, vector<900x2048xbf16>
      %cst_12 = arith.constant dense<0.000000e+00> : vector<8x2048xf32>
      %12 = tpu.matmul %10, %11, %cst_12 {dimension_numbers = #tpu.dot_dimension_numbers<[1], [0], [0], [1], [0, 0, 1, 1], [], []>} : vector<8x900xbf16>, vector<900x2048xbf16>, vector<8x2048xf32> -> vector<8x2048xf32>
      %c0_13 = arith.constant 0 : index
      %c0_14 = arith.constant 0 : index
      %13 = vector.load %arg3[%c0_13, %c0_14] : memref<1x2048xf32, #tpu.memory_space<vmem>>, vector<1x2048xf32>
      %14 = vector.broadcast %13 : vector<1x2048xf32> to vector<8x2048xf32>
      %15 = arith.addf %12, %14 : vector<8x2048xf32>
      %cst_15 = arith.constant 0.000000e+00 : f32
      %16 = vector.broadcast %cst_15 : f32 to vector<8x2048xf32>
      %17 = arith.maximumf %15, %16 : vector<8x2048xf32>
      %18 = arith.truncf %17 : vector<8x2048xf32> to vector<8x2048xbf16>
      %c0_16 = arith.constant 0 : index
      %c0_17 = arith.constant 0 : index
      %19 = vector.load %arg7[%c0_16, %c0_17] : memref<8x2048xbf16, #tpu.memory_space<vmem>>, vector<8x2048xbf16>
      tpu.vector_store %arg7[%c0_16, %c0_17], %18 {strides = array<i32>} : memref<8x2048xbf16, #tpu.memory_space<vmem>>, vector<8x2048xbf16>,
    } else {
    }
    %c0 = arith.constant 0 : index
    %c0_1 = arith.constant 0 : index
    %3 = vector.load %arg7[%c0, %c0_1] : memref<8x2048xbf16, #tpu.memory_space<vmem>>, vector<8x2048xbf16>
    %c0_2 = arith.constant 0 : index
    %c0_3 = arith.constant 0 : index
    %4 = vector.load %arg4[%c0_2, %c0_3] : memref<2048x128xbf16, #tpu.memory_space<vmem>>, vector<2048x128xbf16>
    %cst = arith.constant dense<0.000000e+00> : vector<8x128xf32>
    %5 = tpu.matmul %3, %4, %cst {dimension_numbers = #tpu.dot_dimension_numbers<[1], [0], [0], [1], [0, 0, 1, 1], [], []>} : vector<8x2048xbf16>, vector<2048x128xbf16>, vector<8x128xf32> -> vector<8x128xf32>
    %c0_4 = arith.constant 0 : index
    %c0_5 = arith.constant 0 : index
    %6 = vector.load %arg5[%c0_4, %c0_5] : memref<1x128xf32, #tpu.memory_space<vmem>>, vector<1x128xf32>
    %7 = vector.broadcast %6 : vector<1x128xf32> to vector<8x128xf32>
    %8 = arith.addf %5, %7 : vector<8x128xf32>
    %c0_6 = arith.constant 0 : index
    %c0_7 = arith.constant 0 : index
    %9 = vector.load %arg6[%c0_6, %c0_7] : memref<8x128xf32, #tpu.memory_space<vmem>>, vector<8x128xf32>
    tpu.vector_store %arg6[%c0_6, %c0_7], %8 {strides = array<i32>} : memref<8x128xf32, #tpu.memory_space<vmem>>, vector<8x128xf32>,
    return
  }
  func.func @transform_0(%arg0: i32) -> (i32, i32) {
    %c0_i32 = arith.constant 0 : i32
    %c0_i32_0 = arith.constant 0 : i32
    %c0_i32_1 = arith.constant 0 : i32
    return %c0_i32, %c0_i32_0 : i32, i32
  }
  func.func @transform_1(%arg0: i32) -> (i32, i32) {
    %c0_i32 = arith.constant 0 : i32
    %c0_i32_0 = arith.constant 0 : i32
    %c0_i32_1 = arith.constant 0 : i32
    return %c0_i32, %c0_i32_0 : i32, i32
  }
  func.func @transform_2(%arg0: i32) -> (i32, i32) {
    %c0_i32 = arith.constant 0 : i32
    %c0_i32_0 = arith.constant 0 : i32
    %c0_i32_1 = arith.constant 0 : i32
    return %c0_i32, %c0_i32_0 : i32, i32
  }
  func.func @transform_3(%arg0: i32) -> (i32, i32) {
    %c0_i32 = arith.constant 0 : i32
    %c0_i32_0 = arith.constant 0 : i32
    return %c0_i32, %arg0 : i32, i32
  }
  func.func @transform_4(%arg0: i32) -> (i32, i32) {
    %c0_i32 = arith.constant 0 : i32
    %c0_i32_0 = arith.constant 0 : i32
    return %c0_i32, %arg0 : i32, i32
  }
  func.func @transform_5(%arg0: i32) -> (i32, i32) {
    %c0_i32 = arith.constant 0 : i32
    %c0_i32_0 = arith.constant 0 : i32
    return %c0_i32, %arg0 : i32, i32
  }
}

</mosaic_0001>

<bundles_post_ra>
// kernel: tpu_custom_call.1
= control target key start
LH: loop header
LB: loop body
LE: loop exit
PB: predicated region body
PF: predicated region fallthrough
CT: control target
= control target key end

     0   :  { %10 = vsyncpa [#allocation4], 0  ;;  %s10544_s0 = inlined_call_operand.hbm [shape: bf16[8,900], index: 0, kind: input, shape index: {}]   ;;  %s10545_s1 = inlined_call_operand.hbm [shape: bf16[900,2048], index: 1, kind: input, shape index: {}]   ;;  %s10546_s2 = inlined_call_operand.hbm [shape: f32[1,2048], index: 2, kind: input, shape index: {}]   ;;  %s10547_s3 = inlined_call_operand.hbm [shape: bf16[2048,128], index: 3, kind: input, shape index: {}]   ;;  %s10548_s4 = inlined_call_operand.hbm [shape: f32[1,128], index: 4, kind: input, shape index: {}]   ;;  %s10549_s5 = inlined_call_operand.hbm [shape: f32[8,128], index: 5, kind: output, shape index: {}]  }
   0x1   :  { %11 = vsyncpa [#allocation7], 0 }
   0x2   :  { %12 = vsyncpa [#allocation10], 0 }
   0x3   :  { %13 = vsyncpa [#allocation5], 0  ;;  %s10215_s18 = smov [#allocation6]   ;;  %s10075_s22 = scalar_lea.hbm %s10545_s1, 115712 }
   0x4   :  { %s29_s19 = sshll.u32 %s10215_s18, 4  ;;  %p10076_p0 = scmp.ne.s32.totalorder %s10545_s1, %s10075_s22  ;;  %s30_s19 = int_to_ptr.vmem [resolvable:$true] %s29_s19 }
   0x5   :  { %p10079_p1 = scmp.lt.u32.totalorder %s10075_s22, %s10545_s1 }
   0x7   :  { %p10081_p2 = pnand %p10079_p1, %p10076_p0 }
   0x9   :  { %10084 = shalt.err (!%p10081_p2)
}
   0xa   :  { %s10085_s27 = scalar_lea.vmem %s30_s19, 115712  ;;  %p10090_p4 = scmp.lt.s32.totalorder %s30_s19, %s30_s19 }
   0xb   :  { %p10086_p3 = scmp.ne.s32.totalorder %s30_s19, %s10085_s27  ;;  %p10091_p5 = scmp.lt.s32.totalorder %s10085_s27, %s10085_s27 }
   0xd   :  { %p10092_p6 = por %p10091_p5, %p10090_p4 }
   0xf   :  { %p10093_p7 = pnand %p10092_p6, %p10086_p3 }
  0x11   :  { %10096 = shalt.err (!%p10093_p7)
}
  0x12   :  { %s10216_s28 = smov 1024   ;;  %s10217_s29 = smov 64  }
  0x13   :  { %35 = dma.hbm_to_vmem [thread:$0]  %s10545_s1, 115712, %s30_s19, [#allocation7], %s10216_s28, %s10216_s28, %s10217_s29  }
  0x14   :  { %s10218_s7 = smov [#allocation9]   ;;  %s10097_s11 = scalar_lea.hbm %s10547_s3, 16384 }
  0x15   :  { %s51_s8 = sshll.u32 %s10218_s7, 4  ;;  %p10098_p8 = scmp.ne.s32.totalorder %s10547_s3, %s10097_s11  ;;  %s52_s8 = int_to_ptr.vmem [resolvable:$true] %s51_s8 }
  0x16   :  { %p10101_p9 = scmp.lt.u32.totalorder %s10097_s11, %s10547_s3 }
  0x18   :  { %p10103_p10 = pnand %p10101_p9, %p10098_p8 }
  0x1a   :  { %10106 = shalt.err (!%p10103_p10)
}
  0x1b   :  { %s10107_s16 = scalar_lea.vmem %s52_s8, 16384  ;;  %p10112_p12 = scmp.lt.s32.totalorder %s52_s8, %s52_s8 }
  0x1c   :  { %p10108_p11 = scmp.ne.s32.totalorder %s52_s8, %s10107_s16  ;;  %p10113_p13 = scmp.lt.s32.totalorder %s10107_s16, %s10107_s16 }
  0x1e   :  { %p10114_p0 = por %p10113_p13, %p10112_p12 }
  0x20   :  { %p10115_p1 = pnand %p10114_p0, %p10108_p11 }
  0x22   :  { %10118 = shalt.err (!%p10115_p1)
}
  0x23   :  { %s10219_s1 = smov 4   ;;  %s10220_s19 = smov [#allocation3]  }
  0x24   :  { %57 = dma.hbm_to_vmem [thread:$0]  %s10547_s3, 16384, %s52_s8, [#allocation10], %s10217_s29, %s10217_s29, %s10219_s1  }
  0x25   :  { %s20_s20 = sshll.u32 %s10220_s19, 4  ;;  %s10221_s21 = smov [#allocation8]   ;;  %s21_s20 = int_to_ptr.vmem [resolvable:$true] %s20_s20 }
  0x26   :  { %s42_s22 = sshll.u32 %s10221_s21, 4  ;;  %s10119_s25 = scalar_lea.hbm %s10544_s0, 512  ;;  %s43_s22 = int_to_ptr.vmem [resolvable:$true] %s42_s22 }
  0x27   :  { %p10120_p2 = scmp.ne.s32.totalorder %s10544_s0, %s10119_s25  ;;  %p10123_p3 = scmp.lt.u32.totalorder %s10119_s25, %s10544_s0 }
  0x29   :  { %p10125_p4 = pnand %p10123_p3, %p10120_p2 }
  0x2b   :  { %10128 = shalt.err (!%p10125_p4)
}
  0x2c   :  { %s10129_s3 = scalar_lea.vmem %s21_s20, 512  ;;  %p10134_p6 = scmp.lt.s32.totalorder %s21_s20, %s21_s20 }
  0x2d   :  { %p10130_p5 = scmp.ne.s32.totalorder %s21_s20, %s10129_s3  ;;  %p10135_p7 = scmp.lt.s32.totalorder %s10129_s3, %s10129_s3 }
  0x2f   :  { %p10136_p8 = por %p10135_p7, %p10134_p6 }
  0x31   :  { %p10137_p9 = pnand %p10136_p8, %p10130_p5 }
  0x33   :  { %10140 = shalt.err (!%p10137_p9)
}
  0x34   :  { %23 = dma.hbm_to_vmem [thread:$0]  %s10544_s0, 512, %s21_s20, [#allocation4]  }
  0x35   :  { %s10141_s9 = scalar_lea.hbm %s10546_s2, 256 }
  0x36   :  { %p10142_p10 = scmp.ne.s32.totalorder %s10546_s2, %s10141_s9  ;;  %p10145_p11 = scmp.lt.u32.totalorder %s10141_s9, %s10546_s2 }
  0x38   :  { %p10147_p12 = pnand %p10145_p11, %p10142_p10 }
  0x3a   :  { %10150 = shalt.err (!%p10147_p12)
}
  0x3b   :  { %s10151_s14 = scalar_lea.vmem %s43_s22, 256  ;;  %p10156_p0 = scmp.lt.s32.totalorder %s43_s22, %s43_s22 }
  0x3c   :  { %p10152_p13 = scmp.ne.s32.totalorder %s43_s22, %s10151_s14  ;;  %p10157_p1 = scmp.lt.s32.totalorder %s10151_s14, %s10151_s14 }
  0x3e   :  { %p10158_p2 = por %p10157_p1, %p10156_p0 }
  0x40   :  { %p10159_p3 = pnand %p10158_p2, %p10152_p13 }
  0x42   :  { %10162 = shalt.err (!%p10159_p3)
}
  0x43   :  { %45 = dma.hbm_to_vmem [thread:$0]  %s10546_s2, 256, %s43_s22, [#allocation7]  }
  0x44   :  { %s10222_s16 = smov [#allocation11]   ;;  %s10163_s19 = scalar_lea.hbm %s10548_s4, 16 }
  0x45   :  { %s64_s1 = sshll.u32 %s10222_s16, 4  ;;  %p10164_p4 = scmp.ne.s32.totalorder %s10548_s4, %s10163_s19  ;;  %s65_s1 = int_to_ptr.vmem [resolvable:$true] %s64_s1 }
  0x46   :  { %p10167_p5 = scmp.lt.u32.totalorder %s10163_s19, %s10548_s4 }
  0x48   :  { %p10169_p6 = pnand %p10167_p5, %p10164_p4 }
  0x4a   :  { %10172 = shalt.err (!%p10169_p6)
}
  0x4b   :  { %s10173_s25 = scalar_lea.vmem %s65_s1, 16  ;;  %s10177_s2 = scalar_lea.vmem %s65_s1, 32 }
  0x4c   :  { %p10174_p7 = scmp.ne.s32.totalorder %s65_s1, %s10173_s25  ;;  %p10178_p8 = scmp.lt.s32.totalorder %s65_s1, %s65_s1 }
  0x4d   :  { %p10179_p9 = scmp.lt.s32.totalorder %s10177_s2, %s10173_s25 }
  0x4f   :  { %p10180_p10 = por %p10179_p9, %p10178_p8 }
  0x51   :  { %p10181_p11 = pnand %p10180_p10, %p10174_p7 }
  0x53   :  { %10184 = shalt.err (!%p10181_p11)
}
  0x54   :  { %67 = dma.hbm_to_vmem [thread:$0]  %s10548_s4, 16, %s65_s1, [#allocation10]  }
  0x55   :  { %10207 = dma.done.wait [#allocation4], 512  }
  0x56   :  { %10208 = vsyncadd [#allocation4], 4294966784 }
  0x57   :  { %10209 = dma.done.wait [#allocation7], 115968  }
  0x58   :  { %10210 = vsyncadd [#allocation7], 4294851328 }
  0x59   :  { %10211 = dma.done.wait [#allocation10], 16400  }
  0x5a   :  { %10212 = vsyncadd [#allocation10], 4294950896  ;;  %v92_v0 = vld [vmem:[#allocation6] sm:$0xff]  ;;  %v93_v2 = vld [vmem:[#allocation6 + $0x8] sm:$0xff]  ;;  %vm5627_vm0 = vcmask 31744   ;;  %vm5631_vm1 = vcmask 1041408  }
  0x5b   :  { %v100_v1 = vld [vmem:[#allocation6 + $0x40] sm:$0xff]  ;;  %v101_v4 = vld [vmem:[#allocation6 + $0x48] sm:$0xff]  ;;  %s10223_s4 = smov [#allocation12]  }
  0x5c   :  { %v8522_v3 = vcombine.high %v92_v0, %v100_v1  ;;  %v8521_v5 = vcombine.low %v92_v0, %v100_v1  ;;  %v108_v6 = vld [vmem:[#allocation6 + $0x80] sm:$0xff]  ;;  %v8524_v8 = vcombine.high %v93_v2, %v101_v4  ;;  %v8523_v9 = vcombine.low %v93_v2, %v101_v4  ;;  %v109_v11 = vld [vmem:[#allocation6 + $0x88] sm:$0xff]  ;;  %s8502_s27 = sshll.u32 %s10223_s4, 4  ;;  %s8503_s27 = int_to_ptr.vmem [resolvable:$true] %s8502_s27 }
  0x5d   :  { %v116_v7 = vld [vmem:[#allocation6 + $0xc0] sm:$0xff]  ;;  %v117_v12 = vld [vmem:[#allocation6 + $0xc8] sm:$0xff]  ;;  %s10185_s28 = scalar_lea.vmem %s8503_s27, 128  ;;  %p10190_p13 = scmp.lt.s32.totalorder %s8503_s27, %s8503_s27 }
  0x5e   :  { %v8538_v10 = vcombine.high %v108_v6, %v116_v7  ;;  %v124_v13 = vld [vmem:[#allocation6 + $0x100] sm:$0xff]  ;;  %5680 = vmatprep.subr.bf16.mxu0 %v8522_v3  ;;  %v8540_v14 = vcombine.high %v109_v11, %v117_v12  ;;  %v125_v16 = vld [vmem:[#allocation6 + $0x108] sm:$0xff]  ;;  %5844 = vmatprep.subr.bf16.mxu1 %v8524_v8  ;;  %v8537_v18 = vcombine.low %v108_v6, %v116_v7  ;;  %p10186_p12 = scmp.ne.s32.totalorder %s8503_s27, %s10185_s28  ;;  %p10191_p0 = scmp.lt.s32.totalorder %s10185_s28, %s10185_s28 }
  0x5f   :  { %v132_v15 = vld [vmem:[#allocation6 + $0x140] sm:$0xff]  ;;  %v133_v17 = vld [vmem:[#allocation6 + $0x148] sm:$0xff]  ;;  %5681 = vmatpush1.bf16.msra.mxu0 %v8521_v5  ;;  %5845 = vmatpush1.bf16.msra.mxu1 %v8523_v9  ;;  %v8539_v19 = vcombine.low %v109_v11, %v117_v12 }
  0x60   :  { %5682 = vmatprep.subr.bf16.mxu0 %v8538_v10  ;;  %v8554_v20 = vcombine.high %v124_v13, %v132_v15  ;;  %5846 = vmatprep.subr.bf16.mxu1 %v8540_v14  ;;  %v8556_v21 = vcombine.high %v125_v16, %v133_v17  ;;  %v140_v22 = vld [vmem:[#allocation6 + $0x180] sm:$0xff]  ;;  %v141_v24 = vld [vmem:[#allocation6 + $0x188] sm:$0xff]  ;;  %v8553_v26 = vcombine.low %v124_v13, %v132_v15  ;;  %p10192_p1 = por %p10191_p0, %p10190_p13 }
  0x61   :  { %v148_v23 = vld [vmem:[#allocation6 + $0x1c0] sm:$0xff]  ;;  %v149_v25 = vld [vmem:[#allocation6 + $0x1c8] sm:$0xff]  ;;  %v8555_v27 = vcombine.low %v125_v16, %v133_v17 }
  0x62   :  { %v8570_v28 = vcombine.high %v140_v22, %v148_v23  ;;  %v8572_v29 = vcombine.high %v141_v24, %v149_v25  ;;  %v156_v30 = vld [vmem:[#allocation6 + $0x200] sm:$0xff]  ;;  %v157_v32 = vld [vmem:[#allocation6 + $0x208] sm:$0xff]  ;;  %v8569_v34 = vcombine.low %v140_v22, %v148_v23  ;;  %v8571_v35 = vcombine.low %v141_v24, %v149_v25  ;;  %p10193_p2 = pnand %p10192_p1, %p10186_p12 }
  0x63   :  { %5683 = vmatpush1.bf16.msra.mxu0 %v8537_v18  ;;  %5847 = vmatpush1.bf16.msra.mxu1 %v8539_v19  ;;  %v164_v31 = vld [vmem:[#allocation6 + $0x240] sm:$0xff]  ;;  %v165_v33 = vld [vmem:[#allocation6 + $0x248] sm:$0xff] }
  0x64   :  { %5684 = vmatprep.subr.bf16.mxu0 %v8554_v20  ;;  %5848 = vmatprep.subr.bf16.mxu1 %v8556_v21  ;;  %v8586_v36 = vcombine.high %v156_v30, %v164_v31  ;;  %v8588_v37 = vcombine.high %v157_v32, %v165_v33  ;;  %v172_v38 = vld [vmem:[#allocation6 + $0x280] sm:$0xff]  ;;  %v173_v40 = vld [vmem:[#allocation6 + $0x288] sm:$0xff]  ;;  %v8585_v42 = vcombine.low %v156_v30, %v164_v31 }
  0x65   :  { %v180_v39 = vld [vmem:[#allocation6 + $0x2c0] sm:$0xff]  ;;  %v181_v41 = vld [vmem:[#allocation6 + $0x2c8] sm:$0xff]  ;;  %v8587_v43 = vcombine.low %v157_v32, %v165_v33 }
  0x66   :  { %v8602_v44 = vcombine.high %v172_v38, %v180_v39  ;;  %v8604_v45 = vcombine.high %v173_v40, %v181_v41  ;;  %v188_v46 = vld [vmem:[#allocation6 + $0x300] sm:$0xff]  ;;  %v189_v48 = vld [vmem:[#allocation6 + $0x308] sm:$0xff]  ;;  %v8601_v50 = vcombine.low %v172_v38, %v180_v39  ;;  %v8603_v51 = vcombine.low %v173_v40, %v181_v41 }
  0x67   :  { %5685 = vmatpush1.bf16.msra.mxu0 %v8553_v26  ;;  %5849 = vmatpush1.bf16.msra.mxu1 %v8555_v27  ;;  %v196_v47 = vld [vmem:[#allocation6 + $0x340] sm:$0xff]  ;;  %v197_v49 = vld [vmem:[#allocation6 + $0x348] sm:$0xff] }
  0x68   :  { %5686 = vmatprep.subr.bf16.mxu0 %v8570_v28  ;;  %5850 = vmatprep.subr.bf16.mxu1 %v8572_v29  ;;  %v8618_v52 = vcombine.high %v188_v46, %v196_v47  ;;  %v10314_v53 = vld [vmem:[#allocation3] sm:$0xff]  ;;  %v8620_v54 = vcombine.high %v189_v48, %v197_v49  ;;  %v205_v58 = vld [vmem:[#allocation6 + $0x388] sm:$0xff]  ;;  %v8617_v60 = vcombine.low %v188_v46, %v196_v47 }
  0x69   :  { %v204_v55 = vld [vmem:[#allocation6 + $0x380] sm:$0xff]  ;;  %v10318_v57 = vcombine.high %v10314_v53, %v10314_v53  ;;  %v213_v59 = vld [vmem:[#allocation6 + $0x3c8] sm:$0xff]  ;;  %v8619_v61 = vcombine.low %v189_v48, %v197_v49 }
  0x6a   :  { %v212_v56 = vld [vmem:[#allocation6 + $0x3c0] sm:$0xff]  ;;  %v8636_v63 = vcombine.high %v205_v58, %v213_v59  ;;  %v221_v2 = vld [vmem:[#allocation6 + $0x408] sm:$0xff]  ;;  %v8635_v5 = vcombine.low %v205_v58, %v213_v59 }
  0x6b   :  { %5687 = vmatpush1.bf16.msra.mxu0 %v8569_v34  ;;  %5851 = vmatpush1.bf16.msra.mxu1 %v8571_v35  ;;  %v8634_v62 = vcombine.high %v204_v55, %v212_v56  ;;  %v220_v0 = vld [vmem:[#allocation6 + $0x400] sm:$0xff]  ;;  %v229_v3 = vld [vmem:[#allocation6 + $0x448] sm:$0xff]  ;;  %v8633_v4 = vcombine.low %v204_v55, %v212_v56 }
  0x6c   :  { %5688 = vmatprep.subr.bf16.mxu0 %v8586_v36  ;;  %5852 = vmatprep.subr.bf16.mxu1 %v8588_v37  ;;  %v228_v1 = vld [vmem:[#allocation6 + $0x440] sm:$0xff]  ;;  %v8652_v7 = vcombine.high %v221_v2, %v229_v3  ;;  %v237_v10 = vld [vmem:[#allocation6 + $0x488] sm:$0xff]  ;;  %v8651_v13 = vcombine.low %v221_v2, %v229_v3 }
  0x6d   :  { %5712 = vmatprep.mubr.bf16.mxu0 %v10318_v57  ;;  %5876 = vmatprep.mubr.bf16.mxu1 %v10318_v57  ;;  %v8650_v6 = vcombine.high %v220_v0, %v228_v1  ;;  %v236_v8 = vld [vmem:[#allocation6 + $0x480] sm:$0xff]  ;;  %v245_v11 = vld [vmem:[#allocation6 + $0x4c8] sm:$0xff]  ;;  %v8649_v12 = vcombine.low %v220_v0, %v228_v1 }
  0x6e   :  { %v244_v9 = vld [vmem:[#allocation6 + $0x4c0] sm:$0xff]  ;;  %v8668_v15 = vcombine.high %v237_v10, %v245_v11  ;;  %v253_v18 = vld [vmem:[#allocation6 + $0x508] sm:$0xff]  ;;  %v8667_v21 = vcombine.low %v237_v10, %v245_v11 }
  0x6f   :  { %5689 = vmatpush1.bf16.msra.mxu0 %v8585_v42  ;;  %5853 = vmatpush1.bf16.msra.mxu1 %v8587_v43  ;;  %v8666_v14 = vcombine.high %v236_v8, %v244_v9  ;;  %v252_v16 = vld [vmem:[#allocation6 + $0x500] sm:$0xff]  ;;  %v261_v19 = vld [vmem:[#allocation6 + $0x548] sm:$0xff]  ;;  %v8665_v20 = vcombine.low %v236_v8, %v244_v9 }
  0x70   :  { %5690 = vmatprep.subr.bf16.mxu0 %v8602_v44  ;;  %5854 = vmatprep.subr.bf16.mxu1 %v8604_v45  ;;  %v260_v17 = vld [vmem:[#allocation6 + $0x540] sm:$0xff]  ;;  %v8684_v23 = vcombine.high %v253_v18, %v261_v19  ;;  %v269_v26 = vld [vmem:[#allocation6 + $0x588] sm:$0xff]  ;;  %v8683_v29 = vcombine.low %v253_v18, %v261_v19 }
  0x71   :  { %v8682_v22 = vcombine.high %v252_v16, %v260_v17  ;;  %v268_v24 = vld [vmem:[#allocation6 + $0x580] sm:$0xff]  ;;  %v277_v27 = vld [vmem:[#allocation6 + $0x5c8] sm:$0xff]  ;;  %v8681_v28 = vcombine.low %v252_v16, %v260_v17 }
  0x72   :  { %v276_v25 = vld [vmem:[#allocation6 + $0x5c0] sm:$0xff]  ;;  %v8700_v31 = vcombine.high %v269_v26, %v277_v27  ;;  %v285_v34 = vld [vmem:[#allocation6 + $0x608] sm:$0xff]  ;;  %v8699_v37 = vcombine.low %v269_v26, %v277_v27 }
  0x73   :  { %5691 = vmatpush1.bf16.msra.mxu0 %v8601_v50  ;;  %5855 = vmatpush1.bf16.msra.mxu1 %v8603_v51  ;;  %v8698_v30 = vcombine.high %v268_v24, %v276_v25  ;;  %v284_v32 = vld [vmem:[#allocation6 + $0x600] sm:$0xff]  ;;  %v293_v35 = vld [vmem:[#allocation6 + $0x648] sm:$0xff]  ;;  %v8697_v36 = vcombine.low %v268_v24, %v276_v25 }
  0x74   :  { %5692 = vmatprep.subr.bf16.mxu0 %v8618_v52  ;;  %5856 = vmatprep.subr.bf16.mxu1 %v8620_v54  ;;  %v292_v33 = vld [vmem:[#allocation6 + $0x640] sm:$0xff]  ;;  %v8716_v39 = vcombine.high %v285_v34, %v293_v35  ;;  %v301_v42 = vld [vmem:[#allocation6 + $0x688] sm:$0xff]  ;;  %v8715_v45 = vcombine.low %v285_v34, %v293_v35 }
  0x75   :  { %v8714_v38 = vcombine.high %v284_v32, %v292_v33  ;;  %v300_v40 = vld [vmem:[#allocation6 + $0x680] sm:$0xff]  ;;  %v309_v43 = vld [vmem:[#allocation6 + $0x6c8] sm:$0xff]  ;;  %v8713_v44 = vcombine.low %v284_v32, %v292_v33 }
  0x76   :  { %v308_v41 = vld [vmem:[#allocation6 + $0x6c0] sm:$0xff]  ;;  %v8732_v47 = vcombine.high %v301_v42, %v309_v43  ;;  %v317_v50 = vld [vmem:[#allocation6 + $0x708] sm:$0xff]  ;;  %v8731_v54 = vcombine.low %v301_v42, %v309_v43 }
  0x77   :  { %5693 = vmatpush1.bf16.msra.mxu0 %v8617_v60  ;;  %5857 = vmatpush1.bf16.msra.mxu1 %v8619_v61  ;;  %v8730_v46 = vcombine.high %v300_v40, %v308_v41  ;;  %v316_v48 = vld [vmem:[#allocation6 + $0x700] sm:$0xff]  ;;  %v325_v51 = vld [vmem:[#allocation6 + $0x748] sm:$0xff]  ;;  %v8729_v52 = vcombine.low %v300_v40, %v308_v41 }
  0x78   :  { %5694 = vmatprep.subr.bf16.mxu0 %v8634_v62  ;;  %5858 = vmatprep.subr.bf16.mxu1 %v8636_v63  ;;  %v324_v49 = vld [vmem:[#allocation6 + $0x740] sm:$0xff]  ;;  %v8748_v56 = vcombine.high %v317_v50, %v325_v51  ;;  %v333_v60 = vld [vmem:[#allocation6 + $0x788] sm:$0xff]  ;;  %v8747_v63 = vcombine.low %v317_v50, %v325_v51 }
  0x79   :  { %v8746_v55 = vcombine.high %v316_v48, %v324_v49  ;;  %v332_v58 = vld [vmem:[#allocation6 + $0x780] sm:$0xff]  ;;  %v341_v61 = vld [vmem:[#allocation6 + $0x7c8] sm:$0xff]  ;;  %v8745_v62 = vcombine.low %v316_v48, %v324_v49 }
  0x7a   :  { %v340_v59 = vld [vmem:[#allocation6 + $0x7c0] sm:$0xff]  ;;  %v8764_v1 = vcombine.high %v333_v60, %v341_v61 }
  0x7b   :  { %5695 = vmatpush1.bf16.msra.mxu0 %v8633_v4  ;;  %5859 = vmatpush1.bf16.msra.mxu1 %v8635_v5  ;;  %v8762_v0 = vcombine.high %v332_v58, %v340_v59  ;;  %v348_v2 = vld [vmem:[#allocation6 + $0x800] sm:$0xff]  ;;  %v349_v4 = vld [vmem:[#allocation6 + $0x808] sm:$0xff] }
  0x7c   :  { %5696 = vmatprep.subr.bf16.mxu0 %v8650_v6  ;;  %5860 = vmatprep.subr.bf16.mxu1 %v8652_v7  ;;  %v356_v3 = vld [vmem:[#allocation6 + $0x840] sm:$0xff]  ;;  %v357_v5 = vld [vmem:[#allocation6 + $0x848] sm:$0xff]  ;;  %v8761_v6 = vcombine.low %v332_v58, %v340_v59  ;;  %v8763_v7 = vcombine.low %v333_v60, %v341_v61 }
  0x7d   :  { %v8778_v8 = vcombine.high %v348_v2, %v356_v3  ;;  %v8780_v9 = vcombine.high %v349_v4, %v357_v5  ;;  %v364_v10 = vld [vmem:[#allocation6 + $0x880] sm:$0xff]  ;;  %v8777_v16 = vcombine.low %v348_v2, %v356_v3  ;;  %v8779_v17 = vcombine.low %v349_v4, %v357_v5 }
  0x7e   :  { %v372_v11 = vld [vmem:[#allocation6 + $0x8c0] sm:$0xff] }
  0x7f   :  { %5697 = vmatpush1.bf16.msra.mxu0 %v8649_v12  ;;  %5861 = vmatpush1.bf16.msra.mxu1 %v8651_v13  ;;  %v10324_v12 = vcombine.low %v10314_v53, %v10314_v53  ;;  %v365_v13 = vld [vmem:[#allocation6 + $0x888] sm:$0xff]  ;;  %v8794_v18 = vcombine.high %v364_v10, %v372_v11  ;;  %v380_v19 = vld [vmem:[#allocation6 + $0x900] sm:$0xff]  ;;  %v8793_v24 = vcombine.low %v364_v10, %v372_v11 }
  0x80   :  { %5698 = vmatprep.subr.bf16.mxu0 %v8666_v14  ;;  %5862 = vmatprep.subr.bf16.mxu1 %v8668_v15  ;;  %v373_v14 = vld [vmem:[#allocation6 + $0x8c8] sm:$0xff]  ;;  %v396_v27 = vld [vmem:[#allocation6 + $0x980] sm:$0xff] }
  0x81   :  { %v10326_v15 = vld [vmem:[#allocation3 + $0x8] sm:$0xff]  ;;  %v8795_v25 = vcombine.low %v365_v13, %v373_v14  ;;  %v412_v35 = vld [vmem:[#allocation6 + $0xa00] sm:$0xff] }
  0x82   :  { %v10330_v53 = vcombine.high %v10326_v15, %v10326_v15  ;;  %v428_v43 = vld [vmem:[#allocation6 + $0xa80] sm:$0xff] }
  0x83   :  { %5699 = vmatpush1.bf16.msra.mxu0 %v8665_v20  ;;  %5863 = vmatpush1.bf16.msra.mxu1 %v8667_v21  ;;  %v388_v20 = vld [vmem:[#allocation6 + $0x940] sm:$0xff]  ;;  %v8796_v21 = vcombine.high %v365_v13, %v373_v14 }
  0x84   :  { %5700 = vmatprep.subr.bf16.mxu0 %v8682_v22  ;;  %5864 = vmatprep.subr.bf16.mxu1 %v8684_v23  ;;  %v381_v22 = vld [vmem:[#allocation6 + $0x908] sm:$0xff]  ;;  %v8810_v26 = vcombine.high %v380_v19, %v388_v20  ;;  %v8809_v32 = vcombine.low %v380_v19, %v388_v20  ;;  %v444_v51 = vld [vmem:[#allocation6 + $0xb00] sm:$0xff] }
  0x85   :  { %v389_v23 = vld [vmem:[#allocation6 + $0x948] sm:$0xff]  ;;  %v460_v61 = vld [vmem:[#allocation6 + $0xb80] sm:$0xff] }
  0x86   :  { %v8811_v33 = vcombine.low %v381_v22, %v389_v23  ;;  %v476_v5 = vld [vmem:[#allocation6 + $0xc00] sm:$0xff]  ;;  %v501_v19 = vld [vmem:[#allocation6 + $0xcc8] sm:$0xff] }
  0x87   :  { %5701 = vmatpush1.bf16.msra.mxu0 %v8681_v28  ;;  %5865 = vmatpush1.bf16.msra.mxu1 %v8683_v29  ;;  %v404_v28 = vld [vmem:[#allocation6 + $0x9c0] sm:$0xff]  ;;  %v397_v29 = vld [vmem:[#allocation6 + $0x988] sm:$0xff] }
  0x88   :  { %5702 = vmatprep.subr.bf16.mxu0 %v8698_v30  ;;  %5866 = vmatprep.subr.bf16.mxu1 %v8700_v31  ;;  %v8812_v30 = vcombine.high %v381_v22, %v389_v23  ;;  %v405_v31 = vld [vmem:[#allocation6 + $0x9c8] sm:$0xff]  ;;  %v8826_v34 = vcombine.high %v396_v27, %v404_v28  ;;  %v8825_v40 = vcombine.low %v396_v27, %v404_v28  ;;  %v492_v14 = vld [vmem:[#allocation6 + $0xc80] sm:$0xff] }
  0x89   :  { %v8827_v41 = vcombine.low %v397_v29, %v405_v31 }
  0x8b   :  { %5703 = vmatpush1.bf16.msra.mxu0 %v8697_v36  ;;  %5867 = vmatpush1.bf16.msra.mxu1 %v8699_v37  ;;  %v420_v36 = vld [vmem:[#allocation6 + $0xa40] sm:$0xff]  ;;  %v413_v37 = vld [vmem:[#allocation6 + $0xa08] sm:$0xff] }
  0x8c   :  { %5704 = vmatprep.subr.bf16.mxu0 %v8714_v38  ;;  %5868 = vmatprep.subr.bf16.mxu1 %v8716_v39  ;;  %v8828_v38 = vcombine.high %v397_v29, %v405_v31  ;;  %v421_v39 = vld [vmem:[#allocation6 + $0xa48] sm:$0xff]  ;;  %v8842_v42 = vcombine.high %v412_v35, %v420_v36  ;;  %v8841_v48 = vcombine.low %v412_v35, %v420_v36  ;;  %v524_v31 = vld [vmem:[#allocation6 + $0xd80] sm:$0xff] }
  0x8d   :  { %v8843_v49 = vcombine.low %v413_v37, %v421_v39  ;;  %v533_v35 = vld [vmem:[#allocation6 + $0xdc8] sm:$0xff] }
  0x8f   :  { %5705 = vmatpush1.bf16.msra.mxu0 %v8713_v44  ;;  %5869 = vmatpush1.bf16.msra.mxu1 %v8715_v45  ;;  %v436_v44 = vld [vmem:[#allocation6 + $0xac0] sm:$0xff]  ;;  %v429_v45 = vld [vmem:[#allocation6 + $0xa88] sm:$0xff] }
  0x90   :  { %5706 = vmatprep.subr.bf16.mxu0 %v8730_v46  ;;  %5870 = vmatprep.subr.bf16.mxu1 %v8732_v47  ;;  %v8844_v46 = vcombine.high %v413_v37, %v421_v39  ;;  %v437_v47 = vld [vmem:[#allocation6 + $0xac8] sm:$0xff]  ;;  %v8858_v50 = vcombine.high %v428_v43, %v436_v44  ;;  %v8857_v58 = vcombine.low %v428_v43, %v436_v44  ;;  %v540_v39 = vld [vmem:[#allocation6 + $0xe00] sm:$0xff] }
  0x91   :  { %v8859_v59 = vcombine.low %v429_v45, %v437_v47  ;;  %v549_v43 = vld [vmem:[#allocation6 + $0xe48] sm:$0xff] }
  0x93   :  { %5707 = vmatpush1.bf16.msra.mxu0 %v8729_v52  ;;  %5871 = vmatpush1.bf16.msra.mxu1 %v8731_v54  ;;  %v452_v52 = vld [vmem:[#allocation6 + $0xb40] sm:$0xff]  ;;  %v445_v54 = vld [vmem:[#allocation6 + $0xb08] sm:$0xff] }
  0x94   :  { %5708 = vmatprep.subr.bf16.mxu0 %v8746_v55  ;;  %5872 = vmatprep.subr.bf16.mxu1 %v8748_v56  ;;  %v8860_v55 = vcombine.high %v429_v45, %v437_v47  ;;  %v453_v56 = vld [vmem:[#allocation6 + $0xb48] sm:$0xff]  ;;  %v8874_v60 = vcombine.high %v444_v51, %v452_v52  ;;  %v8873_v2 = vcombine.low %v444_v51, %v452_v52  ;;  %v556_v47 = vld [vmem:[#allocation6 + $0xe80] sm:$0xff] }
  0x95   :  { %v8875_v3 = vcombine.low %v445_v54, %v453_v56  ;;  %v565_v51 = vld [vmem:[#allocation6 + $0xec8] sm:$0xff] }
  0x97   :  { %5709 = vmatpush1.bf16.msra.mxu0 %v8745_v62  ;;  %5873 = vmatpush1.bf16.msra.mxu1 %v8747_v63  ;;  %v468_v62 = vld [vmem:[#allocation6 + $0xbc0] sm:$0xff]  ;;  %v461_v63 = vld [vmem:[#allocation6 + $0xb88] sm:$0xff] }
  0x98   :  { %5710 = vmatprep.subr.bf16.mxu0 %v8762_v0  ;;  %5874 = vmatprep.subr.bf16.mxu1 %v8764_v1  ;;  %v8876_v0 = vcombine.high %v445_v54, %v453_v56  ;;  %v469_v1 = vld [vmem:[#allocation6 + $0xbc8] sm:$0xff]  ;;  %v8890_v4 = vcombine.high %v460_v61, %v468_v62  ;;  %v8889_v10 = vcombine.low %v460_v61, %v468_v62  ;;  %v572_v56 = vld [vmem:[#allocation6 + $0xf00] sm:$0xff] }
  0x99   :  { %v8891_v11 = vcombine.low %v461_v63, %v469_v1  ;;  %v581_v61 = vld [vmem:[#allocation6 + $0xf48] sm:$0xff] }
  0x9b   :  { %5711 = vmatpush1.bf16.msra.mxu0 %v8761_v6  ;;  %5875 = vmatpush1.bf16.msra.mxu1 %v8763_v7  ;;  %v484_v6 = vld [vmem:[#allocation6 + $0xc40] sm:$0xff]  ;;  %v477_v7 = vld [vmem:[#allocation6 + $0xc08] sm:$0xff] }
  0x9c   :  { %5721 = vmatprep.subr.bf16.mxu0 %v8778_v8  ;;  %5885 = vmatprep.subr.bf16.mxu1 %v8780_v9  ;;  %v8892_v8 = vcombine.high %v461_v63, %v469_v1  ;;  %v485_v9 = vld [vmem:[#allocation6 + $0xc48] sm:$0xff]  ;;  %v8906_v13 = vcombine.high %v476_v5, %v484_v6  ;;  %v8905_v20 = vcombine.low %v476_v5, %v484_v6  ;;  %v588_v1 = vld [vmem:[#allocation6 + $0xf80] sm:$0xff] }
  0x9d   :  { %v8907_v22 = vcombine.low %v477_v7, %v485_v9  ;;  %v597_v5 = vld [vmem:[#allocation6 + $0xfc8] sm:$0xff] }
  0x9e   :  { %5713 = vmatmul.mubr.bf16.vlgmr.msra.gmra.mrb[0].mxu0 %v10324_v12  ;;  %5877 = vmatmul.mubr.bf16.vlgmr.msra.gmra.mrb[0].mxu1 %v10324_v12 }
  0x9f   :  { %5722 = vmatpush1.bf16.msra.mxu0 %v8777_v16  ;;  %5886 = vmatpush1.bf16.msra.mxu1 %v8779_v17  ;;  %v500_v16 = vld [vmem:[#allocation6 + $0xcc0] sm:$0xff]  ;;  %v493_v17 = vld [vmem:[#allocation6 + $0xc88] sm:$0xff] }
  0xa0   :  { %5723 = vmatprep.subr.bf16.mxu0 %v8794_v18  ;;  %5887 = vmatprep.subr.bf16.mxu1 %v8796_v21  ;;  %v8908_v18 = vcombine.high %v477_v7, %v485_v9  ;;  %v508_v21 = vld [vmem:[#allocation6 + $0xd00] sm:$0xff]  ;;  %v8922_v23 = vcombine.high %v492_v14, %v500_v16  ;;  %v8924_v27 = vcombine.high %v493_v17, %v501_v19 }
  0xa1   :  { %5753 = vmatprep.mubr.bf16.mxu0 %v10330_v53  ;;  %5917 = vmatprep.mubr.bf16.mxu1 %v10330_v53  ;;  %v8921_v28 = vcombine.low %v492_v14, %v500_v16  ;;  %v8923_v29 = vcombine.low %v493_v17, %v501_v19  ;;  %v604_v9 = vld [vmem:[#allocation6 + $0x1000] sm:$0xff]  ;;  %v613_v14 = vld [vmem:[#allocation6 + $0x1048] sm:$0xff] }
  0xa2   :  { %v620_v17 = vld [vmem:[#allocation6 + $0x1080] sm:$0xff] }
  0xa3   :  { %5724 = vmatpush1.bf16.msra.mxu0 %v8793_v24  ;;  %5888 = vmatpush1.bf16.msra.mxu1 %v8795_v25  ;;  %v516_v24 = vld [vmem:[#allocation6 + $0xd40] sm:$0xff]  ;;  %v509_v25 = vld [vmem:[#allocation6 + $0xd08] sm:$0xff] }
  0xa4   :  { %5725 = vmatprep.subr.bf16.mxu0 %v8810_v26  ;;  %5889 = vmatprep.subr.bf16.mxu1 %v8812_v30  ;;  %v517_v26 = vld [vmem:[#allocation6 + $0xd48] sm:$0xff]  ;;  %v8938_v30 = vcombine.high %v508_v21, %v516_v24  ;;  %v8937_v36 = vcombine.low %v508_v21, %v516_v24  ;;  %v10336_v24 = vld [vmem:[#allocation3 + $0x10] sm:$0xff] }
  0xa5   :  { %v8939_v37 = vcombine.low %v509_v25, %v517_v26  ;;  %v621_v21 = vld [vmem:[#allocation6 + $0x1088] sm:$0xff] }
  0xa7   :  { %5726 = vmatpush1.bf16.msra.mxu0 %v8809_v32  ;;  %5890 = vmatpush1.bf16.msra.mxu1 %v8811_v33  ;;  %v532_v32 = vld [vmem:[#allocation6 + $0xdc0] sm:$0xff]  ;;  %v525_v33 = vld [vmem:[#allocation6 + $0xd88] sm:$0xff] }
  0xa8   :  { %5727 = vmatprep.subr.bf16.mxu0 %v8826_v34  ;;  %5891 = vmatprep.subr.bf16.mxu1 %v8828_v38  ;;  %v8940_v34 = vcombine.high %v509_v25, %v517_v26  ;;  %v8954_v38 = vcombine.high %v524_v31, %v532_v32  ;;  %v8953_v44 = vcombine.low %v524_v31, %v532_v32  ;;  %v637_v31 = vld [vmem:[#allocation6 + $0x1108] sm:$0xff] }
  0xa9   :  { %v8955_v45 = vcombine.low %v525_v33, %v533_v35  ;;  %v10340_v25 = vcombine.low %v10326_v15, %v10326_v15 }
  0xab   :  { %5728 = vmatpush1.bf16.msra.mxu0 %v8825_v40  ;;  %5892 = vmatpush1.bf16.msra.mxu1 %v8827_v41  ;;  %v548_v40 = vld [vmem:[#allocation6 + $0xe40] sm:$0xff]  ;;  %v541_v41 = vld [vmem:[#allocation6 + $0xe08] sm:$0xff] }
  0xac   :  { %5729 = vmatprep.subr.bf16.mxu0 %v8842_v42  ;;  %5893 = vmatprep.subr.bf16.mxu1 %v8844_v46  ;;  %v8956_v42 = vcombine.high %v525_v33, %v533_v35  ;;  %v8970_v46 = vcombine.high %v540_v39, %v548_v40  ;;  %v8969_v52 = vcombine.low %v540_v39, %v548_v40  ;;  %v645_v33 = vld [vmem:[#allocation6 + $0x1148] sm:$0xff] }
  0xad   :  { %v8971_v54 = vcombine.low %v541_v41, %v549_v43  ;;  %v653_v39 = vld [vmem:[#allocation6 + $0x1188] sm:$0xff]  ;;  %v9068_v40 = vcombine.high %v637_v31, %v645_v33 }
  0xaf   :  { %5730 = vmatpush1.bf16.msra.mxu0 %v8841_v48  ;;  %5894 = vmatpush1.bf16.msra.mxu1 %v8843_v49  ;;  %v564_v48 = vld [vmem:[#allocation6 + $0xec0] sm:$0xff]  ;;  %v557_v49 = vld [vmem:[#allocation6 + $0xe88] sm:$0xff] }
  0xb0   :  { %5731 = vmatprep.subr.bf16.mxu0 %v8858_v50  ;;  %5895 = vmatprep.subr.bf16.mxu1 %v8860_v55  ;;  %v8972_v50 = vcombine.high %v541_v41, %v549_v43  ;;  %v8986_v55 = vcombine.high %v556_v47, %v564_v48  ;;  %v8985_v62 = vcombine.low %v556_v47, %v564_v48  ;;  %v661_v41 = vld [vmem:[#allocation6 + $0x11c8] sm:$0xff] }
  0xb1   :  { %v8987_v63 = vcombine.low %v557_v49, %v565_v51  ;;  %v9067_v43 = vcombine.low %v637_v31, %v645_v33  ;;  %v669_v47 = vld [vmem:[#allocation6 + $0x1208] sm:$0xff]  ;;  %v9084_v48 = vcombine.high %v653_v39, %v661_v41 }
  0xb2   :  { %v757_v31 = vld [vmem:[#allocation6 + $0x14c8] sm:$0xff] }
  0xb3   :  { %5732 = vmatpush1.bf16.msra.mxu0 %v8857_v58  ;;  %5896 = vmatpush1.bf16.msra.mxu1 %v8859_v59  ;;  %v580_v58 = vld [vmem:[#allocation6 + $0xf40] sm:$0xff]  ;;  %v573_v59 = vld [vmem:[#allocation6 + $0xf08] sm:$0xff] }
  0xb4   :  { %5733 = vmatprep.subr.bf16.mxu0 %v8874_v60  ;;  %5897 = vmatprep.subr.bf16.mxu1 %v8876_v0  ;;  %v8988_v60 = vcombine.high %v557_v49, %v565_v51  ;;  %v9002_v0 = vcombine.high %v572_v56, %v580_v58  ;;  %v9001_v6 = vcombine.low %v572_v56, %v580_v58  ;;  %v677_v49 = vld [vmem:[#allocation6 + $0x1248] sm:$0xff] }
  0xb5   :  { %v9003_v7 = vcombine.low %v573_v59, %v581_v61  ;;  %v9083_v51 = vcombine.low %v653_v39, %v661_v41  ;;  %v685_v56 = vld [vmem:[#allocation6 + $0x1288] sm:$0xff]  ;;  %v9100_v58 = vcombine.high %v669_v47, %v677_v49 }
  0xb6   :  { %v773_v39 = vld [vmem:[#allocation6 + $0x1548] sm:$0xff] }
  0xb7   :  { %5734 = vmatpush1.bf16.msra.mxu0 %v8873_v2  ;;  %5898 = vmatpush1.bf16.msra.mxu1 %v8875_v3  ;;  %v596_v2 = vld [vmem:[#allocation6 + $0xfc0] sm:$0xff]  ;;  %v589_v3 = vld [vmem:[#allocation6 + $0xf88] sm:$0xff] }
  0xb8   :  { %5735 = vmatprep.subr.bf16.mxu0 %v8890_v4  ;;  %5899 = vmatprep.subr.bf16.mxu1 %v8892_v8  ;;  %v9004_v4 = vcombine.high %v573_v59, %v581_v61  ;;  %v9018_v8 = vcombine.high %v588_v1, %v596_v2  ;;  %v9017_v16 = vcombine.low %v588_v1, %v596_v2  ;;  %v693_v59 = vld [vmem:[#allocation6 + $0x12c8] sm:$0xff] }
  0xb9   :  { %v9099_v61 = vcombine.low %v669_v47, %v677_v49  ;;  %v701_v1 = vld [vmem:[#allocation6 + $0x1308] sm:$0xff]  ;;  %v9116_v2 = vcombine.high %v685_v56, %v693_v59 }
  0xba   :  { %v789_v47 = vld [vmem:[#allocation6 + $0x15c8] sm:$0xff] }
  0xbb   :  { %5736 = vmatpush1.bf16.msra.mxu0 %v8889_v10  ;;  %5900 = vmatpush1.bf16.msra.mxu1 %v8891_v11  ;;  %v612_v10 = vld [vmem:[#allocation6 + $0x1040] sm:$0xff]  ;;  %v605_v11 = vld [vmem:[#allocation6 + $0x1008] sm:$0xff] }
  0xbc   :  { %5737 = vmatprep.subr.bf16.mxu0 %v8906_v13  ;;  %5901 = vmatprep.subr.bf16.mxu1 %v8908_v18  ;;  %v9020_v13 = vcombine.high %v589_v3, %v597_v5  ;;  %v9019_v18 = vcombine.low %v589_v3, %v597_v5  ;;  %v9034_v19 = vcombine.high %v604_v9, %v612_v10  ;;  %v709_v3 = vld [vmem:[#allocation6 + $0x1348] sm:$0xff] }
  0xbd   :  { %v9033_v26 = vcombine.low %v604_v9, %v612_v10  ;;  %v9115_v5 = vcombine.low %v685_v56, %v693_v59  ;;  %v717_v9 = vld [vmem:[#allocation6 + $0x1388] sm:$0xff]  ;;  %v9132_v10 = vcombine.high %v701_v1, %v709_v3 }
  0xbe   :  { %v805_v56 = vld [vmem:[#allocation6 + $0x1648] sm:$0xff] }
  0xbf   :  { %5738 = vmatpush1.bf16.msra.mxu0 %v8905_v20  ;;  %5902 = vmatpush1.bf16.msra.mxu1 %v8907_v22  ;;  %v628_v20 = vld [vmem:[#allocation6 + $0x10c0] sm:$0xff]  ;;  %v629_v22 = vld [vmem:[#allocation6 + $0x10c8] sm:$0xff] }
  0xc0   :  { %5739 = vmatprep.subr.bf16.mxu0 %v8922_v23  ;;  %5903 = vmatprep.subr.bf16.mxu1 %v8924_v27  ;;  %v9036_v23 = vcombine.high %v605_v11, %v613_v14  ;;  %v9035_v27 = vcombine.low %v605_v11, %v613_v14  ;;  %v9052_v32 = vcombine.high %v621_v21, %v629_v22  ;;  %v725_v11 = vld [vmem:[#allocation6 + $0x13c8] sm:$0xff] }
  0xc1   :  { %v9049_v15 = vcombine.low %v620_v17, %v628_v20  ;;  %v9051_v35 = vcombine.low %v621_v21, %v629_v22  ;;  %v9131_v14 = vcombine.low %v701_v1, %v709_v3  ;;  %v741_v21 = vld [vmem:[#allocation6 + $0x1448] sm:$0xff] }
  0xc2   :  { %v821_v1 = vld [vmem:[#allocation6 + $0x16c8] sm:$0xff] }
  0xc3   :  { %5740 = vmatpush1.bf16.msra.mxu0 %v8921_v28  ;;  %5904 = vmatpush1.bf16.msra.mxu1 %v8923_v29  ;;  %v9050_v28 = vcombine.high %v620_v17, %v628_v20  ;;  %v636_v29 = vld [vmem:[#allocation6 + $0x1100] sm:$0xff]  ;;  %v9148_v20 = vcombine.high %v717_v9, %v725_v11 }
  0xc4   :  { %5741 = vmatprep.subr.bf16.mxu0 %v8938_v30  ;;  %5905 = vmatprep.subr.bf16.mxu1 %v8940_v34  ;;  %v644_v30 = vld [vmem:[#allocation6 + $0x1140] sm:$0xff]  ;;  %v10344_v34 = vcombine.high %v10336_v24, %v10336_v24 }
  0xc5   :  { %v732_v17 = vld [vmem:[#allocation6 + $0x1400] sm:$0xff] }
  0xc7   :  { %5742 = vmatpush1.bf16.msra.mxu0 %v8937_v36  ;;  %5906 = vmatpush1.bf16.msra.mxu1 %v8939_v37  ;;  %v9066_v36 = vcombine.high %v636_v29, %v644_v30  ;;  %v652_v37 = vld [vmem:[#allocation6 + $0x1180] sm:$0xff] }
  0xc8   :  { %5743 = vmatprep.subr.bf16.mxu0 %v8954_v38  ;;  %5907 = vmatprep.subr.bf16.mxu1 %v8956_v42  ;;  %v660_v38 = vld [vmem:[#allocation6 + $0x11c0] sm:$0xff]  ;;  %v9065_v42 = vcombine.low %v636_v29, %v644_v30  ;;  %v749_v29 = vld [vmem:[#allocation6 + $0x1488] sm:$0xff] }
  0xc9   :  { %v9179_v41 = vcombine.low %v749_v29, %v757_v31 }
  0xcb   :  { %5744 = vmatpush1.bf16.msra.mxu0 %v8953_v44  ;;  %5908 = vmatpush1.bf16.msra.mxu1 %v8955_v45  ;;  %v9082_v44 = vcombine.high %v652_v37, %v660_v38  ;;  %v668_v45 = vld [vmem:[#allocation6 + $0x1200] sm:$0xff] }
  0xcc   :  { %5745 = vmatprep.subr.bf16.mxu0 %v8970_v46  ;;  %5909 = vmatprep.subr.bf16.mxu1 %v8972_v50  ;;  %v676_v46 = vld [vmem:[#allocation6 + $0x1240] sm:$0xff]  ;;  %v9081_v50 = vcombine.low %v652_v37, %v660_v38  ;;  %v765_v37 = vld [vmem:[#allocation6 + $0x1508] sm:$0xff]  ;;  %v9180_v38 = vcombine.high %v749_v29, %v757_v31 }
  0xcd   :  { %v9195_v49 = vcombine.low %v765_v37, %v773_v39  ;;  %v869_v29 = vld [vmem:[#allocation6 + $0x1848] sm:$0xff]  ;;  %v876_v31 = vld [vmem:[#allocation6 + $0x1880] sm:$0xff] }
  0xcf   :  { %5746 = vmatpush1.bf16.msra.mxu0 %v8969_v52  ;;  %5910 = vmatpush1.bf16.msra.mxu1 %v8971_v54  ;;  %v9098_v52 = vcombine.high %v668_v45, %v676_v46  ;;  %v684_v54 = vld [vmem:[#allocation6 + $0x1280] sm:$0xff] }
  0xd0   :  { %5747 = vmatprep.subr.bf16.mxu0 %v8986_v55  ;;  %5911 = vmatprep.subr.bf16.mxu1 %v8988_v60  ;;  %v692_v55 = vld [vmem:[#allocation6 + $0x12c0] sm:$0xff]  ;;  %v9097_v60 = vcombine.low %v668_v45, %v676_v46  ;;  %v781_v45 = vld [vmem:[#allocation6 + $0x1588] sm:$0xff]  ;;  %v9196_v46 = vcombine.high %v765_v37, %v773_v39  ;;  %v10354_v39 = vcombine.low %v10336_v24, %v10336_v24 }
  0xd1   :  { %v9211_v59 = vcombine.low %v781_v45, %v789_v47 }
  0xd3   :  { %5748 = vmatpush1.bf16.msra.mxu0 %v8985_v62  ;;  %5912 = vmatpush1.bf16.msra.mxu1 %v8987_v63  ;;  %v9114_v62 = vcombine.high %v684_v54, %v692_v55  ;;  %v700_v63 = vld [vmem:[#allocation6 + $0x1300] sm:$0xff] }
  0xd4   :  { %5749 = vmatprep.subr.bf16.mxu0 %v9002_v0  ;;  %5913 = vmatprep.subr.bf16.mxu1 %v9004_v4  ;;  %v708_v0 = vld [vmem:[#allocation6 + $0x1340] sm:$0xff]  ;;  %v9113_v4 = vcombine.low %v684_v54, %v692_v55  ;;  %v797_v54 = vld [vmem:[#allocation6 + $0x1608] sm:$0xff]  ;;  %v9212_v55 = vcombine.high %v781_v45, %v789_v47 }
  0xd5   :  { %v9227_v3 = vcombine.low %v797_v54, %v805_v56  ;;  %v900_v45 = vld [vmem:[#allocation6 + $0x1940] sm:$0xff]  ;;  %v893_v47 = vld [vmem:[#allocation6 + $0x1908] sm:$0xff] }
  0xd7   :  { %5750 = vmatpush1.bf16.msra.mxu0 %v9001_v6  ;;  %5914 = vmatpush1.bf16.msra.mxu1 %v9003_v7  ;;  %v9130_v6 = vcombine.high %v700_v63, %v708_v0  ;;  %v716_v7 = vld [vmem:[#allocation6 + $0x1380] sm:$0xff] }
  0xd8   :  { %5751 = vmatprep.subr.bf16.mxu0 %v9018_v8  ;;  %5915 = vmatprep.subr.bf16.mxu1 %v9020_v13  ;;  %v724_v8 = vld [vmem:[#allocation6 + $0x13c0] sm:$0xff]  ;;  %v9129_v13 = vcombine.low %v700_v63, %v708_v0  ;;  %v813_v63 = vld [vmem:[#allocation6 + $0x1688] sm:$0xff]  ;;  %v9228_v0 = vcombine.high %v797_v54, %v805_v56 }
  0xd9   :  { %v9145_v22 = vcombine.low %v716_v7, %v724_v8  ;;  %v916_v54 = vld [vmem:[#allocation6 + $0x19c0] sm:$0xff]  ;;  %v917_v56 = vld [vmem:[#allocation6 + $0x19c8] sm:$0xff] }
  0xdb   :  { %5752 = vmatpush1.bf16.msra.mxu0 %v9017_v16  ;;  %5916 = vmatpush1.bf16.msra.mxu1 %v9019_v18  ;;  %v9146_v16 = vcombine.high %v716_v7, %v724_v8  ;;  %v740_v18 = vld [vmem:[#allocation6 + $0x1440] sm:$0xff]  ;;  %v829_v7 = vld [vmem:[#allocation6 + $0x1708] sm:$0xff]  ;;  %v9244_v8 = vcombine.high %v813_v63, %v821_v1 }
  0xdc   :  { %5762 = vmatprep.subr.bf16.mxu0 %v9034_v19  ;;  %5926 = vmatprep.subr.bf16.mxu1 %v9036_v23  ;;  %v733_v19 = vld [vmem:[#allocation6 + $0x1408] sm:$0xff]  ;;  %v9147_v23 = vcombine.low %v717_v9, %v725_v11  ;;  %v9243_v11 = vcombine.low %v813_v63, %v821_v1  ;;  %v932_v63 = vld [vmem:[#allocation6 + $0x1a40] sm:$0xff] }
  0xdd   :  { %v9164_v30 = vcombine.high %v733_v19, %v741_v21  ;;  %v9163_v33 = vcombine.low %v733_v19, %v741_v21  ;;  %v837_v9 = vld [vmem:[#allocation6 + $0x1748] sm:$0xff] }
  0xde   :  { %5754 = vmatmul.mubr.bf16.vlgmr.msra.gmra.mrb[0].mxu0 %v10340_v25  ;;  %5918 = vmatmul.mubr.bf16.vlgmr.msra.gmra.mrb[0].mxu1 %v10340_v25  ;;  %v853_v19 = vld [vmem:[#allocation6 + $0x17c8] sm:$0xff]  ;;  %v9259_v21 = vcombine.low %v829_v7, %v837_v9 }
  0xdf   :  { %5763 = vmatpush1.bf16.msra.mxu0 %v9033_v26  ;;  %5927 = vmatpush1.bf16.msra.mxu1 %v9035_v27  ;;  %v9162_v26 = vcombine.high %v732_v17, %v740_v18  ;;  %v748_v27 = vld [vmem:[#allocation6 + $0x1480] sm:$0xff]  ;;  %v933_v1 = vld [vmem:[#allocation6 + $0x1a48] sm:$0xff] }
  0xe0   :  { %5764 = vmatprep.subr.bf16.mxu0 %v9050_v28  ;;  %5928 = vmatprep.subr.bf16.mxu1 %v9052_v32  ;;  %v756_v28 = vld [vmem:[#allocation6 + $0x14c0] sm:$0xff]  ;;  %v9161_v32 = vcombine.low %v732_v17, %v740_v18  ;;  %v845_v17 = vld [vmem:[#allocation6 + $0x1788] sm:$0xff]  ;;  %v9260_v18 = vcombine.high %v829_v7, %v837_v9 }
  0xe1   :  { %5794 = vmatprep.mubr.bf16.mxu0 %v10344_v34  ;;  %5958 = vmatprep.mubr.bf16.mxu1 %v10344_v34  ;;  %v948_v7 = vld [vmem:[#allocation6 + $0x1ac0] sm:$0xff]  ;;  %v949_v9 = vld [vmem:[#allocation6 + $0x1ac8] sm:$0xff] }
  0xe3   :  { %5765 = vmatpush1.bf16.msra.mxu0 %v9049_v15  ;;  %5929 = vmatpush1.bf16.msra.mxu1 %v9051_v35  ;;  %v9178_v15 = vcombine.high %v748_v27, %v756_v28  ;;  %v764_v35 = vld [vmem:[#allocation6 + $0x1500] sm:$0xff] }
  0xe4   :  { %5766 = vmatprep.subr.bf16.mxu0 %v9066_v36  ;;  %5930 = vmatprep.subr.bf16.mxu1 %v9068_v40  ;;  %v772_v36 = vld [vmem:[#allocation6 + $0x1540] sm:$0xff]  ;;  %v9177_v40 = vcombine.low %v748_v27, %v756_v28  ;;  %v861_v27 = vld [vmem:[#allocation6 + $0x1808] sm:$0xff]  ;;  %v9276_v28 = vcombine.high %v845_v17, %v853_v19 }
  0xe5   :  { %v9292_v37 = vcombine.high %v861_v27, %v869_v29 }
  0xe7   :  { %5767 = vmatpush1.bf16.msra.mxu0 %v9065_v42  ;;  %5931 = vmatpush1.bf16.msra.mxu1 %v9067_v43  ;;  %v9194_v42 = vcombine.high %v764_v35, %v772_v36  ;;  %v780_v43 = vld [vmem:[#allocation6 + $0x1580] sm:$0xff] }
  0xe8   :  { %5768 = vmatprep.subr.bf16.mxu0 %v9082_v44  ;;  %5932 = vmatprep.subr.bf16.mxu1 %v9084_v48  ;;  %v788_v44 = vld [vmem:[#allocation6 + $0x15c0] sm:$0xff]  ;;  %v9193_v48 = vcombine.low %v764_v35, %v772_v36  ;;  %v877_v35 = vld [vmem:[#allocation6 + $0x1888] sm:$0xff] }
  0xe9   :  { %v885_v36 = vld [vmem:[#allocation6 + $0x18c8] sm:$0xff] }
  0xeb   :  { %5769 = vmatpush1.bf16.msra.mxu0 %v9081_v50  ;;  %5933 = vmatpush1.bf16.msra.mxu1 %v9083_v51  ;;  %v9210_v50 = vcombine.high %v780_v43, %v788_v44  ;;  %v796_v51 = vld [vmem:[#allocation6 + $0x1600] sm:$0xff] }
  0xec   :  { %5770 = vmatprep.subr.bf16.mxu0 %v9098_v52  ;;  %5934 = vmatprep.subr.bf16.mxu1 %v9100_v58  ;;  %v804_v52 = vld [vmem:[#allocation6 + $0x1640] sm:$0xff]  ;;  %v9209_v58 = vcombine.low %v780_v43, %v788_v44  ;;  %v9308_v43 = vcombine.high %v877_v35, %v885_v36 }
  0xed   :  { %v892_v44 = vld [vmem:[#allocation6 + $0x1900] sm:$0xff] }
  0xef   :  { %5771 = vmatpush1.bf16.msra.mxu0 %v9097_v60  ;;  %5935 = vmatpush1.bf16.msra.mxu1 %v9099_v61  ;;  %v9226_v60 = vcombine.high %v796_v51, %v804_v52  ;;  %v812_v61 = vld [vmem:[#allocation6 + $0x1680] sm:$0xff] }
  0xf0   :  { %5772 = vmatprep.subr.bf16.mxu0 %v9114_v62  ;;  %5936 = vmatprep.subr.bf16.mxu1 %v9116_v2  ;;  %v820_v62 = vld [vmem:[#allocation6 + $0x16c0] sm:$0xff]  ;;  %v9225_v2 = vcombine.low %v796_v51, %v804_v52 }
  0xf1   :  { %v908_v52 = vld [vmem:[#allocation6 + $0x1980] sm:$0xff] }
  0xf3   :  { %5773 = vmatpush1.bf16.msra.mxu0 %v9113_v4  ;;  %5937 = vmatpush1.bf16.msra.mxu1 %v9115_v5  ;;  %v9242_v4 = vcombine.high %v812_v61, %v820_v62  ;;  %v828_v5 = vld [vmem:[#allocation6 + $0x1700] sm:$0xff] }
  0xf4   :  { %5774 = vmatprep.subr.bf16.mxu0 %v9130_v6  ;;  %5938 = vmatprep.subr.bf16.mxu1 %v9132_v10  ;;  %v836_v6 = vld [vmem:[#allocation6 + $0x1740] sm:$0xff]  ;;  %v9241_v10 = vcombine.low %v812_v61, %v820_v62 }
  0xf5   :  { %v924_v62 = vld [vmem:[#allocation6 + $0x1a00] sm:$0xff] }
  0xf7   :  { %5775 = vmatpush1.bf16.msra.mxu0 %v9129_v13  ;;  %5939 = vmatpush1.bf16.msra.mxu1 %v9131_v14  ;;  %v9258_v13 = vcombine.high %v828_v5, %v836_v6  ;;  %v844_v14 = vld [vmem:[#allocation6 + $0x1780] sm:$0xff] }
  0xf8   :  { %5776 = vmatprep.subr.bf16.mxu0 %v9146_v16  ;;  %5940 = vmatprep.subr.bf16.mxu1 %v9148_v20  ;;  %v852_v16 = vld [vmem:[#allocation6 + $0x17c0] sm:$0xff]  ;;  %v9257_v20 = vcombine.low %v828_v5, %v836_v6 }
  0xf9   :  { %v940_v6 = vld [vmem:[#allocation6 + $0x1a80] sm:$0xff] }
  0xfb   :  { %5777 = vmatpush1.bf16.msra.mxu0 %v9145_v22  ;;  %5941 = vmatpush1.bf16.msra.mxu1 %v9147_v23  ;;  %v9274_v22 = vcombine.high %v844_v14, %v852_v16  ;;  %v860_v23 = vld [vmem:[#allocation6 + $0x1800] sm:$0xff] }
  0xfc   :  { %5778 = vmatprep.subr.bf16.mxu0 %v9162_v26  ;;  %5942 = vmatprep.subr.bf16.mxu1 %v9164_v30  ;;  %v868_v26 = vld [vmem:[#allocation6 + $0x1840] sm:$0xff]  ;;  %v9273_v30 = vcombine.low %v844_v14, %v852_v16 }
  0xfd   :  { %v956_v16 = vld [vmem:[#allocation6 + $0x1b00] sm:$0xff] }
  0xff   :  { %5779 = vmatpush1.bf16.msra.mxu0 %v9161_v32  ;;  %5943 = vmatpush1.bf16.msra.mxu1 %v9163_v33  ;;  %v9275_v32 = vcombine.low %v845_v17, %v853_v19  ;;  %v9290_v33 = vcombine.high %v860_v23, %v868_v26  ;;  %v964_v17 = vld [vmem:[#allocation6 + $0x1b40] sm:$0xff]  ;;  %v965_v19 = vld [vmem:[#allocation6 + $0x1b48] sm:$0xff] }
 0x100   :  { %5780 = vmatprep.subr.bf16.mxu0 %v9178_v15  ;;  %5944 = vmatprep.subr.bf16.mxu1 %v9180_v38  ;;  %v884_v15 = vld [vmem:[#allocation6 + $0x18c0] sm:$0xff]  ;;  %v10350_v38 = vld [vmem:[#allocation3 + $0x18] sm:$0xff] }
 0x101   :  { %v9305_v24 = vcombine.low %v876_v31, %v884_v15 }
 0x103   :  { %5781 = vmatpush1.bf16.msra.mxu0 %v9177_v40  ;;  %5945 = vmatpush1.bf16.msra.mxu1 %v9179_v41  ;;  %v9289_v40 = vcombine.low %v860_v23, %v868_v26  ;;  %v9291_v41 = vcombine.low %v861_v27, %v869_v29  ;;  %v972_v26 = vld [vmem:[#allocation6 + $0x1b80] sm:$0xff]  ;;  %v981_v29 = vld [vmem:[#allocation6 + $0x1bc8] sm:$0xff] }
 0x104   :  { %5782 = vmatprep.subr.bf16.mxu0 %v9194_v42  ;;  %5946 = vmatprep.subr.bf16.mxu1 %v9196_v46  ;;  %v9306_v42 = vcombine.high %v876_v31, %v884_v15  ;;  %v10358_v46 = vcombine.high %v10350_v38, %v10350_v38  ;;  %v980_v27 = vld [vmem:[#allocation6 + $0x1bc0] sm:$0xff] }
 0x105   :  { %v988_v15 = vld [vmem:[#allocation6 + $0x1c00] sm:$0x33] }
 0x107   :  { %5783 = vmatpush1.bf16.msra.mxu0 %v9193_v48  ;;  %5947 = vmatpush1.bf16.msra.mxu1 %v9195_v49  ;;  %v901_v48 = vld [vmem:[#allocation6 + $0x1948] sm:$0xff]  ;;  %v9307_v49 = vcombine.low %v877_v35, %v885_v36  ;;  %v9401_v36 = vcombine.low %v972_v26, %v980_v27 }
 0x108   :  { %5784 = vmatprep.subr.bf16.mxu0 %v9210_v50  ;;  %5948 = vmatprep.subr.bf16.mxu1 %v9212_v55  ;;  %v9322_v50 = vcombine.high %v892_v44, %v900_v45  ;;  %v9324_v51 = vcombine.high %v893_v47, %v901_v48  ;;  %v909_v55 = vld [vmem:[#allocation6 + $0x1988] sm:$0xff] }
 0x109   :  { %v9340_v61 = vcombine.high %v909_v55, %v917_v56  ;;  %v989_v35 = vld [vmem:[#allocation6 + $0x1c08] sm:$0x33] }
 0x10b   :  { %5785 = vmatpush1.bf16.msra.mxu0 %v9209_v58  ;;  %5949 = vmatpush1.bf16.msra.mxu1 %v9211_v59  ;;  %v9321_v58 = vcombine.low %v892_v44, %v900_v45  ;;  %v9323_v59 = vcombine.low %v893_v47, %v901_v48  ;;  %v94_v44 = vld [vmem:[#allocation6 + $0x10] sm:$0xff]  ;;  %v95_v47 = vld [vmem:[#allocation6 + $0x18] sm:$0xff] }
 0x10c   :  { %5786 = vmatprep.subr.bf16.mxu0 %v9226_v60  ;;  %5950 = vmatprep.subr.bf16.mxu1 %v9228_v0  ;;  %v9338_v60 = vcombine.high %v908_v52, %v916_v54  ;;  %v925_v0 = vld [vmem:[#allocation6 + $0x1a08] sm:$0xff]  ;;  %v102_v45 = vld [vmem:[#allocation6 + $0x50] sm:$0xff]  ;;  %v103_v48 = vld [vmem:[#allocation6 + $0x58] sm:$0xff] }
 0x10d   :  { %v9356_v5 = vcombine.high %v925_v0, %v933_v1 }
 0x10f   :  { %5787 = vmatpush1.bf16.msra.mxu0 %v9225_v2  ;;  %5951 = vmatpush1.bf16.msra.mxu1 %v9227_v3  ;;  %v9337_v2 = vcombine.low %v908_v52, %v916_v54  ;;  %v9339_v3 = vcombine.low %v909_v55, %v917_v56  ;;  %v110_v52 = vld [vmem:[#allocation6 + $0x90] sm:$0xff]  ;;  %v10372_v55 = vcombine.low %v10350_v38, %v10350_v38  ;;  %v111_v56 = vld [vmem:[#allocation6 + $0x98] sm:$0xff] }
 0x110   :  { %5788 = vmatprep.subr.bf16.mxu0 %v9242_v4  ;;  %5952 = vmatprep.subr.bf16.mxu1 %v9244_v8  ;;  %v9354_v4 = vcombine.high %v924_v62, %v932_v63  ;;  %v941_v8 = vld [vmem:[#allocation6 + $0x1a88] sm:$0xff]  ;;  %v118_v54 = vld [vmem:[#allocation6 + $0xd0] sm:$0xff] }
 0x111   :  { %v9372_v14 = vcombine.high %v941_v8, %v949_v9  ;;  %v8541_v38 = vcombine.low %v110_v52, %v118_v54 }
 0x113   :  { %5789 = vmatpush1.bf16.msra.mxu0 %v9241_v10  ;;  %5953 = vmatpush1.bf16.msra.mxu1 %v9243_v11  ;;  %v9353_v10 = vcombine.low %v924_v62, %v932_v63  ;;  %v9355_v11 = vcombine.low %v925_v0, %v933_v1  ;;  %v126_v63 = vld [vmem:[#allocation6 + $0x110] sm:$0xff]  ;;  %v127_v1 = vld [vmem:[#allocation6 + $0x118] sm:$0xff] }
 0x114   :  { %5790 = vmatprep.subr.bf16.mxu0 %v9258_v13  ;;  %5954 = vmatprep.subr.bf16.mxu1 %v9260_v18  ;;  %v9370_v13 = vcombine.high %v940_v6, %v948_v7  ;;  %v957_v18 = vld [vmem:[#allocation6 + $0x1b08] sm:$0xff]  ;;  %v134_v0 = vld [vmem:[#allocation6 + $0x150] sm:$0xff] }
 0x115   :  { %v9388_v23 = vcombine.high %v957_v18, %v965_v19  ;;  %v9387_v31 = vcombine.low %v957_v18, %v965_v19  ;;  %v159_v18 = vld [vmem:[#allocation6 + $0x218] sm:$0xff] }
 0x116   :  { %v167_v19 = vld [vmem:[#allocation6 + $0x258] sm:$0xff] }
 0x117   :  { %5791 = vmatpush1.bf16.msra.mxu0 %v9257_v20  ;;  %5955 = vmatpush1.bf16.msra.mxu1 %v9259_v21  ;;  %v9369_v20 = vcombine.low %v940_v6, %v948_v7  ;;  %v9371_v21 = vcombine.low %v941_v8, %v949_v9  ;;  %v142_v6 = vld [vmem:[#allocation6 + $0x190] sm:$0xff]  ;;  %v143_v8 = vld [vmem:[#allocation6 + $0x198] sm:$0xff] }
 0x118   :  { %5792 = vmatprep.subr.bf16.mxu0 %v9274_v22  ;;  %5956 = vmatprep.subr.bf16.mxu1 %v9276_v28  ;;  %v9386_v22 = vcombine.high %v956_v16, %v964_v17  ;;  %v973_v28 = vld [vmem:[#allocation6 + $0x1b88] sm:$0xff]  ;;  %v150_v7 = vld [vmem:[#allocation6 + $0x1d0] sm:$0xff]  ;;  %v151_v9 = vld [vmem:[#allocation6 + $0x1d8] sm:$0xff] }
 0x11b   :  { %5793 = vmatpush1.bf16.msra.mxu0 %v9273_v30  ;;  %5957 = vmatpush1.bf16.msra.mxu1 %v9275_v32  ;;  %v9385_v30 = vcombine.low %v956_v16, %v964_v17  ;;  %v9402_v32 = vcombine.high %v972_v26, %v980_v27  ;;  %v158_v16 = vld [vmem:[#allocation6 + $0x210] sm:$0xff] }
 0x11c   :  { %5803 = vmatprep.subr.bf16.mxu0 %v9290_v33  ;;  %5967 = vmatprep.subr.bf16.mxu1 %v9292_v37  ;;  %v9404_v33 = vcombine.high %v973_v28, %v981_v29  ;;  %v9403_v37 = vcombine.low %v973_v28, %v981_v29  ;;  %v166_v17 = vld [vmem:[#allocation6 + $0x250] sm:$0xff]  ;;  %v175_v28 = vld [vmem:[#allocation6 + $0x298] sm:$0xff] }
 0x11d   :  { %v174_v26 = vld [vmem:[#allocation6 + $0x290] sm:$0xff]  ;;  %v183_v29 = vld [vmem:[#allocation6 + $0x2d8] sm:$0xff] }
 0x11e   :  { %5795 = vmatmul.mubr.bf16.vlgmr.msra.gmra.mrb[0].mxu0 %v10354_v39  ;;  %5959 = vmatmul.mubr.bf16.vlgmr.msra.gmra.mrb[0].mxu1 %v10354_v39  ;;  %v182_v27 = vld [vmem:[#allocation6 + $0x2d0] sm:$0xff] }
 0x11f   :  { %5804 = vmatpush1.bf16.msra.mxu0 %v9289_v40  ;;  %5968 = vmatpush1.bf16.msra.mxu1 %v9291_v41  ;;  %v9418_v40 = vcombine.high %v988_v15, %v988_v15  ;;  %v9417_v41 = vcombine.low %v988_v15, %v988_v15  ;;  %v190_v15 = vld [vmem:[#allocation6 + $0x310] sm:$0xff] }
 0x120   :  { %5805 = vmatprep.subr.bf16.mxu0 %v9306_v42  ;;  %5969 = vmatprep.subr.bf16.mxu1 %v9308_v43  ;;  %v9420_v42 = vcombine.high %v989_v35, %v989_v35  ;;  %v9419_v43 = vcombine.low %v989_v35, %v989_v35  ;;  %v198_v35 = vld [vmem:[#allocation6 + $0x350] sm:$0xff] }
 0x121   :  { %9434 = vmatprep.mubr.msk.bf16.mxu0 %vm5627_vm0, %v10358_v46  ;;  %9436 = vmatprep.mubr.msk.bf16.mxu1 %vm5627_vm0, %v10358_v46 }
 0x123   :  { %5806 = vmatpush1.bf16.msra.mxu0 %v9305_v24  ;;  %5970 = vmatpush1.bf16.msra.mxu1 %v9307_v49  ;;  %v5633_v24 = vsel %vm5631_vm1, %v9417_v41, 0  ;;  %v8526_v49 = vcombine.high %v94_v44, %v102_v45  ;;  %v8607_v41 = vcombine.low %v175_v28, %v183_v29 }
 0x124   :  { %5807 = vmatprep.subr.bf16.mxu0 %v9322_v50  ;;  %5971 = vmatprep.subr.bf16.mxu1 %v9324_v51  ;;  %v5639_v50 = vsel %vm5631_vm1, %v9419_v43, 0  ;;  %v8528_v51 = vcombine.high %v95_v47, %v103_v48 }
 0x127   :  { %5808 = vmatpush1.bf16.msra.mxu0 %v9321_v58  ;;  %5972 = vmatpush1.bf16.msra.mxu1 %v9323_v59  ;;  %v119_v58 = vld [vmem:[#allocation6 + $0xd8] sm:$0xff]  ;;  %v8525_v59 = vcombine.low %v94_v44, %v102_v45  ;;  %v206_v44 = vld [vmem:[#allocation6 + $0x390] sm:$0xff] }
 0x128   :  { %5809 = vmatprep.subr.bf16.mxu0 %v9338_v60  ;;  %5973 = vmatprep.subr.bf16.mxu1 %v9340_v61  ;;  %v8527_v60 = vcombine.low %v95_v47, %v103_v48  ;;  %v8542_v61 = vcombine.high %v110_v52, %v118_v54  ;;  %v8544_v62 = vcombine.high %v111_v56, %v119_v58  ;;  %v214_v45 = vld [vmem:[#allocation6 + $0x3d0] sm:$0xff]  ;;  %v207_v47 = vld [vmem:[#allocation6 + $0x398] sm:$0xff] }
 0x129   :  { %v215_v48 = vld [vmem:[#allocation6 + $0x3d8] sm:$0xff]  ;;  %v222_v52 = vld [vmem:[#allocation6 + $0x410] sm:$0xff] }
 0x12a   :  { %v230_v54 = vld [vmem:[#allocation6 + $0x450] sm:$0xff] }
 0x12b   :  { %5810 = vmatpush1.bf16.msra.mxu0 %v9337_v2  ;;  %5974 = vmatpush1.bf16.msra.mxu1 %v9339_v3  ;;  %v135_v2 = vld [vmem:[#allocation6 + $0x158] sm:$0xff]  ;;  %v8543_v3 = vcombine.low %v111_v56, %v119_v58 }
 0x12c   :  { %5811 = vmatprep.subr.bf16.mxu0 %v9354_v4  ;;  %5975 = vmatprep.subr.bf16.mxu1 %v9356_v5  ;;  %v8558_v4 = vcombine.high %v126_v63, %v134_v0  ;;  %v8560_v5 = vcombine.high %v127_v1, %v135_v2  ;;  %v223_v56 = vld [vmem:[#allocation6 + $0x418] sm:$0xff] }
 0x12d   :  { %v231_v58 = vld [vmem:[#allocation6 + $0x458] sm:$0xff] }
 0x12f   :  { %5812 = vmatpush1.bf16.msra.mxu0 %v9353_v10  ;;  %5976 = vmatpush1.bf16.msra.mxu1 %v9355_v11  ;;  %v8557_v10 = vcombine.low %v126_v63, %v134_v0  ;;  %v8559_v11 = vcombine.low %v127_v1, %v135_v2  ;;  %v238_v63 = vld [vmem:[#allocation6 + $0x490] sm:$0xff]  ;;  %v239_v1 = vld [vmem:[#allocation6 + $0x498] sm:$0xff] }
 0x130   :  { %5813 = vmatprep.subr.bf16.mxu0 %v9370_v13  ;;  %5977 = vmatprep.subr.bf16.mxu1 %v9372_v14  ;;  %v8574_v13 = vcombine.high %v142_v6, %v150_v7  ;;  %v8576_v14 = vcombine.high %v143_v8, %v151_v9  ;;  %v246_v0 = vld [vmem:[#allocation6 + $0x4d0] sm:$0xff]  ;;  %v247_v2 = vld [vmem:[#allocation6 + $0x4d8] sm:$0xff] }
 0x133   :  { %5814 = vmatpush1.bf16.msra.mxu0 %v9369_v20  ;;  %5978 = vmatpush1.bf16.msra.mxu1 %v9371_v21  ;;  %v8573_v20 = vcombine.low %v142_v6, %v150_v7  ;;  %v8575_v21 = vcombine.low %v143_v8, %v151_v9  ;;  %v254_v6 = vld [vmem:[#allocation6 + $0x510] sm:$0xff]  ;;  %v255_v8 = vld [vmem:[#allocation6 + $0x518] sm:$0xff] }
 0x134   :  { %5815 = vmatprep.subr.bf16.mxu0 %v9386_v22  ;;  %5979 = vmatprep.subr.bf16.mxu1 %v9388_v23  ;;  %v8590_v22 = vcombine.high %v158_v16, %v166_v17  ;;  %v8592_v23 = vcombine.high %v159_v18, %v167_v19  ;;  %v262_v7 = vld [vmem:[#allocation6 + $0x550] sm:$0xff]  ;;  %v263_v9 = vld [vmem:[#allocation6 + $0x558] sm:$0xff] }
 0x137   :  { %5816 = vmatpush1.bf16.msra.mxu0 %v9385_v30  ;;  %5980 = vmatpush1.bf16.msra.mxu1 %v9387_v31  ;;  %v8589_v30 = vcombine.low %v158_v16, %v166_v17  ;;  %v8591_v31 = vcombine.low %v159_v18, %v167_v19  ;;  %v270_v16 = vld [vmem:[#allocation6 + $0x590] sm:$0xff]  ;;  %v271_v18 = vld [vmem:[#allocation6 + $0x598] sm:$0xff] }
 0x138   :  { %5817 = vmatprep.subr.bf16.mxu0 %v9402_v32  ;;  %5981 = vmatprep.subr.bf16.mxu1 %v9404_v33  ;;  %v8606_v32 = vcombine.high %v174_v26, %v182_v27  ;;  %v8608_v33 = vcombine.high %v175_v28, %v183_v29  ;;  %v278_v17 = vld [vmem:[#allocation6 + $0x5d0] sm:$0xff]  ;;  %v279_v19 = vld [vmem:[#allocation6 + $0x5d8] sm:$0xff] }
 0x139   :  { %v287_v28 = vld [vmem:[#allocation6 + $0x618] sm:$0xff] }
 0x13a   :  { %v295_v29 = vld [vmem:[#allocation6 + $0x658] sm:$0xff] }
 0x13b   :  { %5818 = vmatpush1.bf16.msra.mxu0 %v9401_v36  ;;  %5982 = vmatpush1.bf16.msra.mxu1 %v9403_v37  ;;  %v191_v36 = vld [vmem:[#allocation6 + $0x318] sm:$0xff] }
 0x13c   :  { %9433 = vmatprep.subr.msk.bf16.mxu0 %vm5631_vm1, %v9418_v40  ;;  %9435 = vmatprep.subr.msk.bf16.mxu1 %vm5631_vm1, %v9420_v42  ;;  %v199_v37 = vld [vmem:[#allocation6 + $0x358] sm:$0xff]  ;;  %v8605_v40 = vcombine.low %v174_v26, %v182_v27  ;;  %v8622_v42 = vcombine.high %v190_v15, %v198_v35  ;;  %v286_v26 = vld [vmem:[#allocation6 + $0x610] sm:$0xff] }
 0x13d   :  { %v8624_v43 = vcombine.high %v191_v36, %v199_v37  ;;  %v294_v27 = vld [vmem:[#allocation6 + $0x650] sm:$0xff] }
 0x13f   :  { %5820 = vmatpush1.bf16.msra.mxu0 %v5633_v24  ;;  %5984 = vmatpush1.bf16.msra.mxu1 %v5639_v50  ;;  %v8621_v24 = vcombine.low %v190_v15, %v198_v35  ;;  %v8638_v50 = vcombine.high %v206_v44, %v214_v45  ;;  %v302_v15 = vld [vmem:[#allocation6 + $0x690] sm:$0xff] }
 0x140   :  { %6008 = vmatprep.subr.bf16.mxu0 %v8526_v49  ;;  %6172 = vmatprep.subr.bf16.mxu1 %v8528_v51  ;;  %v8623_v49 = vcombine.low %v191_v36, %v199_v37  ;;  %v8640_v51 = vcombine.high %v207_v47, %v215_v48  ;;  %v310_v35 = vld [vmem:[#allocation6 + $0x6d0] sm:$0xff]  ;;  %v303_v36 = vld [vmem:[#allocation6 + $0x698] sm:$0xff] }
 0x141   :  { %v311_v37 = vld [vmem:[#allocation6 + $0x6d8] sm:$0xff] }
 0x142   :  { %5836 = vmatmul.mubr.bf16.vlgmr.msra.gmra.mrb[0].mxu0 %v10372_v55  ;;  %6000 = vmatmul.mubr.bf16.vlgmr.msra.gmra.mrb[0].mxu1 %v10372_v55 }
 0x143   :  { %6009 = vmatpush1.bf16.msra.mxu0 %v8525_v59  ;;  %6173 = vmatpush1.bf16.msra.mxu1 %v8527_v60  ;;  %v8637_v59 = vcombine.low %v206_v44, %v214_v45  ;;  %v8639_v60 = vcombine.low %v207_v47, %v215_v48  ;;  %v318_v44 = vld [vmem:[#allocation6 + $0x710] sm:$0xff]  ;;  %v319_v47 = vld [vmem:[#allocation6 + $0x718] sm:$0xff] }
 0x144   :  { %6010 = vmatprep.subr.bf16.mxu0 %v8542_v61  ;;  %6174 = vmatprep.subr.bf16.mxu1 %v8544_v62  ;;  %v8654_v61 = vcombine.high %v222_v52, %v230_v54  ;;  %v8656_v62 = vcombine.high %v223_v56, %v231_v58  ;;  %v326_v45 = vld [vmem:[#allocation6 + $0x750] sm:$0xff]  ;;  %v327_v48 = vld [vmem:[#allocation6 + $0x758] sm:$0xff] }
 0x145   :  { %6040 = vmatprep.mubr.bf16.mxu0 %v10318_v57  ;;  %6204 = vmatprep.mubr.bf16.mxu1 %v10318_v57 }
 0x147   :  { %6011 = vmatpush1.bf16.msra.mxu0 %v8541_v38  ;;  %6175 = vmatpush1.bf16.msra.mxu1 %v8543_v3  ;;  %v8653_v38 = vcombine.low %v222_v52, %v230_v54  ;;  %v8655_v3 = vcombine.low %v223_v56, %v231_v58  ;;  %v334_v52 = vld [vmem:[#allocation6 + $0x790] sm:$0xff]  ;;  %v335_v56 = vld [vmem:[#allocation6 + $0x798] sm:$0xff] }
 0x148   :  { %6012 = vmatprep.subr.bf16.mxu0 %v8558_v4  ;;  %6176 = vmatprep.subr.bf16.mxu1 %v8560_v5  ;;  %v8670_v4 = vcombine.high %v238_v63, %v246_v0  ;;  %v8672_v5 = vcombine.high %v239_v1, %v247_v2  ;;  %v342_v54 = vld [vmem:[#allocation6 + $0x7d0] sm:$0xff]  ;;  %v343_v58 = vld [vmem:[#allocation6 + $0x7d8] sm:$0xff] }
 0x14b   :  { %6013 = vmatpush1.bf16.msra.mxu0 %v8557_v10  ;;  %6177 = vmatpush1.bf16.msra.mxu1 %v8559_v11  ;;  %v8669_v10 = vcombine.low %v238_v63, %v246_v0  ;;  %v8671_v11 = vcombine.low %v239_v1, %v247_v2  ;;  %v350_v63 = vld [vmem:[#allocation6 + $0x810] sm:$0xff]  ;;  %v351_v1 = vld [vmem:[#allocation6 + $0x818] sm:$0xff] }
 0x14c   :  { %6014 = vmatprep.subr.bf16.mxu0 %v8574_v13  ;;  %6178 = vmatprep.subr.bf16.mxu1 %v8576_v14  ;;  %v8686_v13 = vcombine.high %v254_v6, %v262_v7  ;;  %v8688_v14 = vcombine.high %v255_v8, %v263_v9  ;;  %v358_v0 = vld [vmem:[#allocation6 + $0x850] sm:$0xff]  ;;  %v359_v2 = vld [vmem:[#allocation6 + $0x858] sm:$0xff] }
 0x14f   :  { %6015 = vmatpush1.bf16.msra.mxu0 %v8573_v20  ;;  %6179 = vmatpush1.bf16.msra.mxu1 %v8575_v21  ;;  %v8685_v20 = vcombine.low %v254_v6, %v262_v7  ;;  %v8687_v21 = vcombine.low %v255_v8, %v263_v9  ;;  %v366_v6 = vld [vmem:[#allocation6 + $0x890] sm:$0xff]  ;;  %v367_v8 = vld [vmem:[#allocation6 + $0x898] sm:$0xff] }
 0x150   :  { %6016 = vmatprep.subr.bf16.mxu0 %v8590_v22  ;;  %6180 = vmatprep.subr.bf16.mxu1 %v8592_v23  ;;  %v8702_v22 = vcombine.high %v270_v16, %v278_v17  ;;  %v8704_v23 = vcombine.high %v271_v18, %v279_v19  ;;  %v374_v7 = vld [vmem:[#allocation6 + $0x8d0] sm:$0xff]  ;;  %v375_v9 = vld [vmem:[#allocation6 + $0x8d8] sm:$0xff] }
 0x153   :  { %6017 = vmatpush1.bf16.msra.mxu0 %v8589_v30  ;;  %6181 = vmatpush1.bf16.msra.mxu1 %v8591_v31  ;;  %v8701_v30 = vcombine.low %v270_v16, %v278_v17  ;;  %v8703_v31 = vcombine.low %v271_v18, %v279_v19  ;;  %v382_v16 = vld [vmem:[#allocation6 + $0x910] sm:$0xff]  ;;  %v383_v18 = vld [vmem:[#allocation6 + $0x918] sm:$0xff] }
 0x154   :  { %6018 = vmatprep.subr.bf16.mxu0 %v8606_v32  ;;  %6182 = vmatprep.subr.bf16.mxu1 %v8608_v33  ;;  %v8718_v32 = vcombine.high %v286_v26, %v294_v27  ;;  %v8720_v33 = vcombine.high %v287_v28, %v295_v29  ;;  %v390_v17 = vld [vmem:[#allocation6 + $0x950] sm:$0xff]  ;;  %v391_v19 = vld [vmem:[#allocation6 + $0x958] sm:$0xff] }
 0x157   :  { %6019 = vmatpush1.bf16.msra.mxu0 %v8605_v40  ;;  %6183 = vmatpush1.bf16.msra.mxu1 %v8607_v41  ;;  %v8717_v40 = vcombine.low %v286_v26, %v294_v27  ;;  %v8719_v41 = vcombine.low %v287_v28, %v295_v29  ;;  %v398_v26 = vld [vmem:[#allocation6 + $0x990] sm:$0xff]  ;;  %v399_v28 = vld [vmem:[#allocation6 + $0x998] sm:$0xff] }
 0x158   :  { %6020 = vmatprep.subr.bf16.mxu0 %v8622_v42  ;;  %6184 = vmatprep.subr.bf16.mxu1 %v8624_v43  ;;  %v8734_v42 = vcombine.high %v302_v15, %v310_v35  ;;  %v8736_v43 = vcombine.high %v303_v36, %v311_v37  ;;  %v406_v27 = vld [vmem:[#allocation6 + $0x9d0] sm:$0xff]  ;;  %v407_v29 = vld [vmem:[#allocation6 + $0x9d8] sm:$0xff] }
 0x15b   :  { %6021 = vmatpush1.bf16.msra.mxu0 %v8621_v24  ;;  %6185 = vmatpush1.bf16.msra.mxu1 %v8623_v49  ;;  %v8733_v24 = vcombine.low %v302_v15, %v310_v35  ;;  %v8735_v49 = vcombine.low %v303_v36, %v311_v37  ;;  %v414_v15 = vld [vmem:[#allocation6 + $0xa10] sm:$0xff]  ;;  %v415_v36 = vld [vmem:[#allocation6 + $0xa18] sm:$0xff] }
 0x15c   :  { %6022 = vmatprep.subr.bf16.mxu0 %v8638_v50  ;;  %6186 = vmatprep.subr.bf16.mxu1 %v8640_v51  ;;  %v8750_v50 = vcombine.high %v318_v44, %v326_v45  ;;  %v8752_v51 = vcombine.high %v319_v47, %v327_v48  ;;  %v422_v35 = vld [vmem:[#allocation6 + $0xa50] sm:$0xff]  ;;  %v423_v37 = vld [vmem:[#allocation6 + $0xa58] sm:$0xff] }
 0x15f   :  { %6023 = vmatpush1.bf16.msra.mxu0 %v8637_v59  ;;  %6187 = vmatpush1.bf16.msra.mxu1 %v8639_v60  ;;  %v8749_v59 = vcombine.low %v318_v44, %v326_v45  ;;  %v8751_v60 = vcombine.low %v319_v47, %v327_v48  ;;  %v430_v44 = vld [vmem:[#allocation6 + $0xa90] sm:$0xff]  ;;  %v431_v47 = vld [vmem:[#allocation6 + $0xa98] sm:$0xff] }
 0x160   :  { %6024 = vmatprep.subr.bf16.mxu0 %v8654_v61  ;;  %6188 = vmatprep.subr.bf16.mxu1 %v8656_v62  ;;  %v8766_v61 = vcombine.high %v334_v52, %v342_v54  ;;  %v8768_v62 = vcombine.high %v335_v56, %v343_v58  ;;  %v438_v45 = vld [vmem:[#allocation6 + $0xad0] sm:$0xff]  ;;  %v439_v48 = vld [vmem:[#allocation6 + $0xad8] sm:$0xff] }
 0x163   :  { %6025 = vmatpush1.bf16.msra.mxu0 %v8653_v38  ;;  %6189 = vmatpush1.bf16.msra.mxu1 %v8655_v3  ;;  %v8765_v38 = vcombine.low %v334_v52, %v342_v54  ;;  %v8767_v3 = vcombine.low %v335_v56, %v343_v58  ;;  %v446_v52 = vld [vmem:[#allocation6 + $0xb10] sm:$0xff]  ;;  %v447_v56 = vld [vmem:[#allocation6 + $0xb18] sm:$0xff] }
 0x164   :  { %6026 = vmatprep.subr.bf16.mxu0 %v8670_v4  ;;  %6190 = vmatprep.subr.bf16.mxu1 %v8672_v5  ;;  %v8782_v4 = vcombine.high %v350_v63, %v358_v0  ;;  %v8784_v5 = vcombine.high %v351_v1, %v359_v2  ;;  %v454_v54 = vld [vmem:[#allocation6 + $0xb50] sm:$0xff]  ;;  %v455_v58 = vld [vmem:[#allocation6 + $0xb58] sm:$0xff] }
 0x167   :  { %6027 = vmatpush1.bf16.msra.mxu0 %v8669_v10  ;;  %6191 = vmatpush1.bf16.msra.mxu1 %v8671_v11  ;;  %v8781_v10 = vcombine.low %v350_v63, %v358_v0  ;;  %v8783_v11 = vcombine.low %v351_v1, %v359_v2  ;;  %v462_v63 = vld [vmem:[#allocation6 + $0xb90] sm:$0xff]  ;;  %v463_v1 = vld [vmem:[#allocation6 + $0xb98] sm:$0xff] }
 0x168   :  { %6028 = vmatprep.subr.bf16.mxu0 %v8686_v13  ;;  %6192 = vmatprep.subr.bf16.mxu1 %v8688_v14  ;;  %v8798_v13 = vcombine.high %v366_v6, %v374_v7  ;;  %v8800_v14 = vcombine.high %v367_v8, %v375_v9  ;;  %v470_v0 = vld [vmem:[#allocation6 + $0xbd0] sm:$0xff]  ;;  %v471_v2 = vld [vmem:[#allocation6 + $0xbd8] sm:$0xff] }
 0x16b   :  { %6029 = vmatpush1.bf16.msra.mxu0 %v8685_v20  ;;  %6193 = vmatpush1.bf16.msra.mxu1 %v8687_v21  ;;  %v8797_v20 = vcombine.low %v366_v6, %v374_v7  ;;  %v8799_v21 = vcombine.low %v367_v8, %v375_v9  ;;  %v478_v6 = vld [vmem:[#allocation6 + $0xc10] sm:$0xff]  ;;  %v479_v8 = vld [vmem:[#allocation6 + $0xc18] sm:$0xff] }
 0x16c   :  { %6030 = vmatprep.subr.bf16.mxu0 %v8702_v22  ;;  %6194 = vmatprep.subr.bf16.mxu1 %v8704_v23  ;;  %v8814_v22 = vcombine.high %v382_v16, %v390_v17  ;;  %v8816_v23 = vcombine.high %v383_v18, %v391_v19  ;;  %v486_v7 = vld [vmem:[#allocation6 + $0xc50] sm:$0xff]  ;;  %v487_v9 = vld [vmem:[#allocation6 + $0xc58] sm:$0xff] }
 0x16f   :  { %6031 = vmatpush1.bf16.msra.mxu0 %v8701_v30  ;;  %6195 = vmatpush1.bf16.msra.mxu1 %v8703_v31  ;;  %v8813_v30 = vcombine.low %v382_v16, %v390_v17  ;;  %v8815_v31 = vcombine.low %v383_v18, %v391_v19  ;;  %v494_v16 = vld [vmem:[#allocation6 + $0xc90] sm:$0xff]  ;;  %v495_v18 = vld [vmem:[#allocation6 + $0xc98] sm:$0xff] }
 0x170   :  { %6032 = vmatprep.subr.bf16.mxu0 %v8718_v32  ;;  %6196 = vmatprep.subr.bf16.mxu1 %v8720_v33  ;;  %v8830_v32 = vcombine.high %v398_v26, %v406_v27  ;;  %v8832_v33 = vcombine.high %v399_v28, %v407_v29  ;;  %v502_v17 = vld [vmem:[#allocation6 + $0xcd0] sm:$0xff]  ;;  %v503_v19 = vld [vmem:[#allocation6 + $0xcd8] sm:$0xff] }
 0x173   :  { %6033 = vmatpush1.bf16.msra.mxu0 %v8717_v40  ;;  %6197 = vmatpush1.bf16.msra.mxu1 %v8719_v41  ;;  %v8829_v40 = vcombine.low %v398_v26, %v406_v27  ;;  %v8831_v41 = vcombine.low %v399_v28, %v407_v29  ;;  %v510_v26 = vld [vmem:[#allocation6 + $0xd10] sm:$0xff]  ;;  %v511_v28 = vld [vmem:[#allocation6 + $0xd18] sm:$0xff] }
 0x174   :  { %6034 = vmatprep.subr.bf16.mxu0 %v8734_v42  ;;  %6198 = vmatprep.subr.bf16.mxu1 %v8736_v43  ;;  %v8846_v42 = vcombine.high %v414_v15, %v422_v35  ;;  %v8848_v43 = vcombine.high %v415_v36, %v423_v37  ;;  %v518_v27 = vld [vmem:[#allocation6 + $0xd50] sm:$0xff]  ;;  %v519_v29 = vld [vmem:[#allocation6 + $0xd58] sm:$0xff] }
 0x177   :  { %6035 = vmatpush1.bf16.msra.mxu0 %v8733_v24  ;;  %6199 = vmatpush1.bf16.msra.mxu1 %v8735_v49  ;;  %v8845_v24 = vcombine.low %v414_v15, %v422_v35  ;;  %v8847_v49 = vcombine.low %v415_v36, %v423_v37  ;;  %v526_v15 = vld [vmem:[#allocation6 + $0xd90] sm:$0xff]  ;;  %v527_v36 = vld [vmem:[#allocation6 + $0xd98] sm:$0xff] }
 0x178   :  { %6036 = vmatprep.subr.bf16.mxu0 %v8750_v50  ;;  %6200 = vmatprep.subr.bf16.mxu1 %v8752_v51  ;;  %v8862_v50 = vcombine.high %v430_v44, %v438_v45  ;;  %v8864_v51 = vcombine.high %v431_v47, %v439_v48  ;;  %v534_v35 = vld [vmem:[#allocation6 + $0xdd0] sm:$0xff]  ;;  %v535_v37 = vld [vmem:[#allocation6 + $0xdd8] sm:$0xff] }
 0x17b   :  { %6037 = vmatpush1.bf16.msra.mxu0 %v8749_v59  ;;  %6201 = vmatpush1.bf16.msra.mxu1 %v8751_v60  ;;  %v8861_v59 = vcombine.low %v430_v44, %v438_v45  ;;  %v8863_v60 = vcombine.low %v431_v47, %v439_v48  ;;  %v542_v44 = vld [vmem:[#allocation6 + $0xe10] sm:$0xff]  ;;  %v543_v47 = vld [vmem:[#allocation6 + $0xe18] sm:$0xff] }
 0x17c   :  { %6038 = vmatprep.subr.bf16.mxu0 %v8766_v61  ;;  %6202 = vmatprep.subr.bf16.mxu1 %v8768_v62  ;;  %v8878_v61 = vcombine.high %v446_v52, %v454_v54  ;;  %v8880_v62 = vcombine.high %v447_v56, %v455_v58  ;;  %v550_v45 = vld [vmem:[#allocation6 + $0xe50] sm:$0xff]  ;;  %v551_v48 = vld [vmem:[#allocation6 + $0xe58] sm:$0xff] }
 0x17f   :  { %6039 = vmatpush1.bf16.msra.mxu0 %v8765_v38  ;;  %6203 = vmatpush1.bf16.msra.mxu1 %v8767_v3  ;;  %v8877_v38 = vcombine.low %v446_v52, %v454_v54  ;;  %v8879_v3 = vcombine.low %v447_v56, %v455_v58  ;;  %v558_v52 = vld [vmem:[#allocation6 + $0xe90] sm:$0xff]  ;;  %v559_v56 = vld [vmem:[#allocation6 + $0xe98] sm:$0xff] }
 0x180   :  { %6049 = vmatprep.subr.bf16.mxu0 %v8782_v4  ;;  %6213 = vmatprep.subr.bf16.mxu1 %v8784_v5  ;;  %v8894_v4 = vcombine.high %v462_v63, %v470_v0  ;;  %v8896_v5 = vcombine.high %v463_v1, %v471_v2  ;;  %v566_v54 = vld [vmem:[#allocation6 + $0xed0] sm:$0xff]  ;;  %v567_v58 = vld [vmem:[#allocation6 + $0xed8] sm:$0xff] }
 0x182   :  { %6041 = vmatmul.mubr.bf16.vlgmr.msra.gmra.mrb[4].mxu0 %v10324_v12  ;;  %6205 = vmatmul.mubr.bf16.vlgmr.msra.gmra.mrb[4].mxu1 %v10324_v12 }
 0x183   :  { %6050 = vmatpush1.bf16.msra.mxu0 %v8781_v10  ;;  %6214 = vmatpush1.bf16.msra.mxu1 %v8783_v11  ;;  %v8893_v10 = vcombine.low %v462_v63, %v470_v0  ;;  %v8895_v11 = vcombine.low %v463_v1, %v471_v2  ;;  %v574_v63 = vld [vmem:[#allocation6 + $0xf10] sm:$0xff]  ;;  %v575_v1 = vld [vmem:[#allocation6 + $0xf18] sm:$0xff] }
 0x184   :  { %6051 = vmatprep.subr.bf16.mxu0 %v8798_v13  ;;  %6215 = vmatprep.subr.bf16.mxu1 %v8800_v14  ;;  %v8910_v13 = vcombine.high %v478_v6, %v486_v7  ;;  %v8912_v14 = vcombine.high %v479_v8, %v487_v9  ;;  %v582_v0 = vld [vmem:[#allocation6 + $0xf50] sm:$0xff]  ;;  %v583_v2 = vld [vmem:[#allocation6 + $0xf58] sm:$0xff] }
 0x185   :  { %6081 = vmatprep.mubr.bf16.mxu0 %v10330_v53  ;;  %6245 = vmatprep.mubr.bf16.mxu1 %v10330_v53 }
 0x187   :  { %6052 = vmatpush1.bf16.msra.mxu0 %v8797_v20  ;;  %6216 = vmatpush1.bf16.msra.mxu1 %v8799_v21  ;;  %v8909_v20 = vcombine.low %v478_v6, %v486_v7  ;;  %v8911_v21 = vcombine.low %v479_v8, %v487_v9  ;;  %v590_v6 = vld [vmem:[#allocation6 + $0xf90] sm:$0xff]  ;;  %v591_v8 = vld [vmem:[#allocation6 + $0xf98] sm:$0xff] }
 0x188   :  { %6053 = vmatprep.subr.bf16.mxu0 %v8814_v22  ;;  %6217 = vmatprep.subr.bf16.mxu1 %v8816_v23  ;;  %v8926_v22 = vcombine.high %v494_v16, %v502_v17  ;;  %v8928_v23 = vcombine.high %v495_v18, %v503_v19  ;;  %v598_v7 = vld [vmem:[#allocation6 + $0xfd0] sm:$0xff]  ;;  %v599_v9 = vld [vmem:[#allocation6 + $0xfd8] sm:$0xff] }
 0x18b   :  { %6054 = vmatpush1.bf16.msra.mxu0 %v8813_v30  ;;  %6218 = vmatpush1.bf16.msra.mxu1 %v8815_v31  ;;  %v8925_v30 = vcombine.low %v494_v16, %v502_v17  ;;  %v8927_v31 = vcombine.low %v495_v18, %v503_v19  ;;  %v606_v16 = vld [vmem:[#allocation6 + $0x1010] sm:$0xff]  ;;  %v607_v18 = vld [vmem:[#allocation6 + $0x1018] sm:$0xff] }
 0x18c   :  { %6055 = vmatprep.subr.bf16.mxu0 %v8830_v32  ;;  %6219 = vmatprep.subr.bf16.mxu1 %v8832_v33  ;;  %v8942_v32 = vcombine.high %v510_v26, %v518_v27  ;;  %v8944_v33 = vcombine.high %v511_v28, %v519_v29  ;;  %v614_v17 = vld [vmem:[#allocation6 + $0x1050] sm:$0xff]  ;;  %v615_v19 = vld [vmem:[#allocation6 + $0x1058] sm:$0xff] }
 0x18f   :  { %6056 = vmatpush1.bf16.msra.mxu0 %v8829_v40  ;;  %6220 = vmatpush1.bf16.msra.mxu1 %v8831_v41  ;;  %v8941_v40 = vcombine.low %v510_v26, %v518_v27  ;;  %v8943_v41 = vcombine.low %v511_v28, %v519_v29  ;;  %v622_v26 = vld [vmem:[#allocation6 + $0x1090] sm:$0xff]  ;;  %v623_v28 = vld [vmem:[#allocation6 + $0x1098] sm:$0xff] }
 0x190   :  { %6057 = vmatprep.subr.bf16.mxu0 %v8846_v42  ;;  %6221 = vmatprep.subr.bf16.mxu1 %v8848_v43  ;;  %v8958_v42 = vcombine.high %v526_v15, %v534_v35  ;;  %v8960_v43 = vcombine.high %v527_v36, %v535_v37  ;;  %v630_v27 = vld [vmem:[#allocation6 + $0x10d0] sm:$0xff]  ;;  %v631_v29 = vld [vmem:[#allocation6 + $0x10d8] sm:$0xff] }
 0x193   :  { %6058 = vmatpush1.bf16.msra.mxu0 %v8845_v24  ;;  %6222 = vmatpush1.bf16.msra.mxu1 %v8847_v49  ;;  %v8957_v24 = vcombine.low %v526_v15, %v534_v35  ;;  %v8959_v49 = vcombine.low %v527_v36, %v535_v37  ;;  %v638_v15 = vld [vmem:[#allocation6 + $0x1110] sm:$0xff]  ;;  %v639_v36 = vld [vmem:[#allocation6 + $0x1118] sm:$0xff] }
 0x194   :  { %6059 = vmatprep.subr.bf16.mxu0 %v8862_v50  ;;  %6223 = vmatprep.subr.bf16.mxu1 %v8864_v51  ;;  %v8974_v50 = vcombine.high %v542_v44, %v550_v45  ;;  %v8976_v51 = vcombine.high %v543_v47, %v551_v48  ;;  %v646_v35 = vld [vmem:[#allocation6 + $0x1150] sm:$0xff]  ;;  %v647_v37 = vld [vmem:[#allocation6 + $0x1158] sm:$0xff] }
 0x197   :  { %6060 = vmatpush1.bf16.msra.mxu0 %v8861_v59  ;;  %6224 = vmatpush1.bf16.msra.mxu1 %v8863_v60  ;;  %v8973_v59 = vcombine.low %v542_v44, %v550_v45  ;;  %v8975_v60 = vcombine.low %v543_v47, %v551_v48  ;;  %v654_v44 = vld [vmem:[#allocation6 + $0x1190] sm:$0xff]  ;;  %v655_v47 = vld [vmem:[#allocation6 + $0x1198] sm:$0xff] }
 0x198   :  { %6061 = vmatprep.subr.bf16.mxu0 %v8878_v61  ;;  %6225 = vmatprep.subr.bf16.mxu1 %v8880_v62  ;;  %v8990_v61 = vcombine.high %v558_v52, %v566_v54  ;;  %v8992_v62 = vcombine.high %v559_v56, %v567_v58  ;;  %v662_v45 = vld [vmem:[#allocation6 + $0x11d0] sm:$0xff]  ;;  %v663_v48 = vld [vmem:[#allocation6 + $0x11d8] sm:$0xff] }
 0x19b   :  { %6062 = vmatpush1.bf16.msra.mxu0 %v8877_v38  ;;  %6226 = vmatpush1.bf16.msra.mxu1 %v8879_v3  ;;  %v8989_v38 = vcombine.low %v558_v52, %v566_v54  ;;  %v8991_v3 = vcombine.low %v559_v56, %v567_v58  ;;  %v670_v52 = vld [vmem:[#allocation6 + $0x1210] sm:$0xff]  ;;  %v671_v56 = vld [vmem:[#allocation6 + $0x1218] sm:$0xff] }
 0x19c   :  { %6063 = vmatprep.subr.bf16.mxu0 %v8894_v4  ;;  %6227 = vmatprep.subr.bf16.mxu1 %v8896_v5  ;;  %v9006_v4 = vcombine.high %v574_v63, %v582_v0  ;;  %v9008_v5 = vcombine.high %v575_v1, %v583_v2  ;;  %v678_v54 = vld [vmem:[#allocation6 + $0x1250] sm:$0xff]  ;;  %v679_v58 = vld [vmem:[#allocation6 + $0x1258] sm:$0xff] }
 0x19f   :  { %6064 = vmatpush1.bf16.msra.mxu0 %v8893_v10  ;;  %6228 = vmatpush1.bf16.msra.mxu1 %v8895_v11  ;;  %v9005_v10 = vcombine.low %v574_v63, %v582_v0  ;;  %v9007_v11 = vcombine.low %v575_v1, %v583_v2  ;;  %v686_v63 = vld [vmem:[#allocation6 + $0x1290] sm:$0xff]  ;;  %v687_v1 = vld [vmem:[#allocation6 + $0x1298] sm:$0xff] }
 0x1a0   :  { %6065 = vmatprep.subr.bf16.mxu0 %v8910_v13  ;;  %6229 = vmatprep.subr.bf16.mxu1 %v8912_v14  ;;  %v9022_v13 = vcombine.high %v590_v6, %v598_v7  ;;  %v9024_v14 = vcombine.high %v591_v8, %v599_v9  ;;  %v694_v0 = vld [vmem:[#allocation6 + $0x12d0] sm:$0xff]  ;;  %v695_v2 = vld [vmem:[#allocation6 + $0x12d8] sm:$0xff] }
 0x1a3   :  { %6066 = vmatpush1.bf16.msra.mxu0 %v8909_v20  ;;  %6230 = vmatpush1.bf16.msra.mxu1 %v8911_v21  ;;  %v9021_v20 = vcombine.low %v590_v6, %v598_v7  ;;  %v9023_v21 = vcombine.low %v591_v8, %v599_v9  ;;  %v702_v6 = vld [vmem:[#allocation6 + $0x1310] sm:$0xff]  ;;  %v703_v8 = vld [vmem:[#allocation6 + $0x1318] sm:$0xff] }
 0x1a4   :  { %6067 = vmatprep.subr.bf16.mxu0 %v8926_v22  ;;  %6231 = vmatprep.subr.bf16.mxu1 %v8928_v23  ;;  %v9038_v22 = vcombine.high %v606_v16, %v614_v17  ;;  %v9040_v23 = vcombine.high %v607_v18, %v615_v19  ;;  %v710_v7 = vld [vmem:[#allocation6 + $0x1350] sm:$0xff]  ;;  %v711_v9 = vld [vmem:[#allocation6 + $0x1358] sm:$0xff] }
 0x1a7   :  { %6068 = vmatpush1.bf16.msra.mxu0 %v8925_v30  ;;  %6232 = vmatpush1.bf16.msra.mxu1 %v8927_v31  ;;  %v9037_v30 = vcombine.low %v606_v16, %v614_v17  ;;  %v9039_v31 = vcombine.low %v607_v18, %v615_v19  ;;  %v718_v16 = vld [vmem:[#allocation6 + $0x1390] sm:$0xff]  ;;  %v719_v18 = vld [vmem:[#allocation6 + $0x1398] sm:$0xff] }
 0x1a8   :  { %6069 = vmatprep.subr.bf16.mxu0 %v8942_v32  ;;  %6233 = vmatprep.subr.bf16.mxu1 %v8944_v33  ;;  %v9054_v32 = vcombine.high %v622_v26, %v630_v27  ;;  %v9056_v33 = vcombine.high %v623_v28, %v631_v29  ;;  %v726_v17 = vld [vmem:[#allocation6 + $0x13d0] sm:$0xff]  ;;  %v727_v19 = vld [vmem:[#allocation6 + $0x13d8] sm:$0xff] }
 0x1ab   :  { %6070 = vmatpush1.bf16.msra.mxu0 %v8941_v40  ;;  %6234 = vmatpush1.bf16.msra.mxu1 %v8943_v41  ;;  %v9053_v40 = vcombine.low %v622_v26, %v630_v27  ;;  %v9055_v41 = vcombine.low %v623_v28, %v631_v29  ;;  %v734_v26 = vld [vmem:[#allocation6 + $0x1410] sm:$0xff]  ;;  %v735_v28 = vld [vmem:[#allocation6 + $0x1418] sm:$0xff] }
 0x1ac   :  { %6071 = vmatprep.subr.bf16.mxu0 %v8958_v42  ;;  %6235 = vmatprep.subr.bf16.mxu1 %v8960_v43  ;;  %v9070_v42 = vcombine.high %v638_v15, %v646_v35  ;;  %v9072_v43 = vcombine.high %v639_v36, %v647_v37  ;;  %v742_v27 = vld [vmem:[#allocation6 + $0x1450] sm:$0xff]  ;;  %v743_v29 = vld [vmem:[#allocation6 + $0x1458] sm:$0xff] }
 0x1af   :  { %6072 = vmatpush1.bf16.msra.mxu0 %v8957_v24  ;;  %6236 = vmatpush1.bf16.msra.mxu1 %v8959_v49  ;;  %v9069_v24 = vcombine.low %v638_v15, %v646_v35  ;;  %v9071_v49 = vcombine.low %v639_v36, %v647_v37  ;;  %v750_v15 = vld [vmem:[#allocation6 + $0x1490] sm:$0xff]  ;;  %v751_v36 = vld [vmem:[#allocation6 + $0x1498] sm:$0xff] }
 0x1b0   :  { %6073 = vmatprep.subr.bf16.mxu0 %v8974_v50  ;;  %6237 = vmatprep.subr.bf16.mxu1 %v8976_v51  ;;  %v9086_v50 = vcombine.high %v654_v44, %v662_v45  ;;  %v9088_v51 = vcombine.high %v655_v47, %v663_v48  ;;  %v758_v35 = vld [vmem:[#allocation6 + $0x14d0] sm:$0xff]  ;;  %v759_v37 = vld [vmem:[#allocation6 + $0x14d8] sm:$0xff] }
 0x1b3   :  { %6074 = vmatpush1.bf16.msra.mxu0 %v8973_v59  ;;  %6238 = vmatpush1.bf16.msra.mxu1 %v8975_v60  ;;  %v9085_v59 = vcombine.low %v654_v44, %v662_v45  ;;  %v9087_v60 = vcombine.low %v655_v47, %v663_v48  ;;  %v766_v44 = vld [vmem:[#allocation6 + $0x1510] sm:$0xff]  ;;  %v767_v47 = vld [vmem:[#allocation6 + $0x1518] sm:$0xff] }
 0x1b4   :  { %6075 = vmatprep.subr.bf16.mxu0 %v8990_v61  ;;  %6239 = vmatprep.subr.bf16.mxu1 %v8992_v62  ;;  %v9102_v61 = vcombine.high %v670_v52, %v678_v54  ;;  %v9104_v62 = vcombine.high %v671_v56, %v679_v58  ;;  %v774_v45 = vld [vmem:[#allocation6 + $0x1550] sm:$0xff]  ;;  %v775_v48 = vld [vmem:[#allocation6 + $0x1558] sm:$0xff] }
 0x1b7   :  { %6076 = vmatpush1.bf16.msra.mxu0 %v8989_v38  ;;  %6240 = vmatpush1.bf16.msra.mxu1 %v8991_v3  ;;  %v9101_v38 = vcombine.low %v670_v52, %v678_v54  ;;  %v9103_v3 = vcombine.low %v671_v56, %v679_v58  ;;  %v782_v52 = vld [vmem:[#allocation6 + $0x1590] sm:$0xff]  ;;  %v783_v56 = vld [vmem:[#allocation6 + $0x1598] sm:$0xff] }
 0x1b8   :  { %6077 = vmatprep.subr.bf16.mxu0 %v9006_v4  ;;  %6241 = vmatprep.subr.bf16.mxu1 %v9008_v5  ;;  %v9118_v4 = vcombine.high %v686_v63, %v694_v0  ;;  %v9120_v5 = vcombine.high %v687_v1, %v695_v2  ;;  %v790_v54 = vld [vmem:[#allocation6 + $0x15d0] sm:$0xff]  ;;  %v791_v58 = vld [vmem:[#allocation6 + $0x15d8] sm:$0xff] }
 0x1bb   :  { %6078 = vmatpush1.bf16.msra.mxu0 %v9005_v10  ;;  %6242 = vmatpush1.bf16.msra.mxu1 %v9007_v11  ;;  %v9117_v10 = vcombine.low %v686_v63, %v694_v0  ;;  %v9119_v11 = vcombine.low %v687_v1, %v695_v2  ;;  %v798_v63 = vld [vmem:[#allocation6 + $0x1610] sm:$0xff]  ;;  %v799_v1 = vld [vmem:[#allocation6 + $0x1618] sm:$0xff] }
 0x1bc   :  { %6079 = vmatprep.subr.bf16.mxu0 %v9022_v13  ;;  %6243 = vmatprep.subr.bf16.mxu1 %v9024_v14  ;;  %v9134_v13 = vcombine.high %v702_v6, %v710_v7  ;;  %v9136_v14 = vcombine.high %v703_v8, %v711_v9  ;;  %v806_v0 = vld [vmem:[#allocation6 + $0x1650] sm:$0xff]  ;;  %v807_v2 = vld [vmem:[#allocation6 + $0x1658] sm:$0xff] }
 0x1bf   :  { %6080 = vmatpush1.bf16.msra.mxu0 %v9021_v20  ;;  %6244 = vmatpush1.bf16.msra.mxu1 %v9023_v21  ;;  %v9133_v20 = vcombine.low %v702_v6, %v710_v7  ;;  %v9135_v21 = vcombine.low %v703_v8, %v711_v9  ;;  %v814_v6 = vld [vmem:[#allocation6 + $0x1690] sm:$0xff]  ;;  %v815_v8 = vld [vmem:[#allocation6 + $0x1698] sm:$0xff] }
 0x1c0   :  { %6090 = vmatprep.subr.bf16.mxu0 %v9038_v22  ;;  %6254 = vmatprep.subr.bf16.mxu1 %v9040_v23  ;;  %v9150_v22 = vcombine.high %v718_v16, %v726_v17  ;;  %v9152_v23 = vcombine.high %v719_v18, %v727_v19  ;;  %v822_v7 = vld [vmem:[#allocation6 + $0x16d0] sm:$0xff]  ;;  %v823_v9 = vld [vmem:[#allocation6 + $0x16d8] sm:$0xff] }
 0x1c2   :  { %6082 = vmatmul.mubr.bf16.vlgmr.msra.gmra.mrb[4].mxu0 %v10340_v25  ;;  %6246 = vmatmul.mubr.bf16.vlgmr.msra.gmra.mrb[4].mxu1 %v10340_v25 }
 0x1c3   :  { %6091 = vmatpush1.bf16.msra.mxu0 %v9037_v30  ;;  %6255 = vmatpush1.bf16.msra.mxu1 %v9039_v31  ;;  %v9149_v30 = vcombine.low %v718_v16, %v726_v17  ;;  %v9151_v31 = vcombine.low %v719_v18, %v727_v19  ;;  %v830_v16 = vld [vmem:[#allocation6 + $0x1710] sm:$0xff]  ;;  %v831_v18 = vld [vmem:[#allocation6 + $0x1718] sm:$0xff] }
 0x1c4   :  { %6092 = vmatprep.subr.bf16.mxu0 %v9054_v32  ;;  %6256 = vmatprep.subr.bf16.mxu1 %v9056_v33  ;;  %v9166_v32 = vcombine.high %v734_v26, %v742_v27  ;;  %v9168_v33 = vcombine.high %v735_v28, %v743_v29  ;;  %v838_v17 = vld [vmem:[#allocation6 + $0x1750] sm:$0xff]  ;;  %v839_v19 = vld [vmem:[#allocation6 + $0x1758] sm:$0xff] }
 0x1c5   :  { %6122 = vmatprep.mubr.bf16.mxu0 %v10344_v34  ;;  %6286 = vmatprep.mubr.bf16.mxu1 %v10344_v34 }
 0x1c7   :  { %6093 = vmatpush1.bf16.msra.mxu0 %v9053_v40  ;;  %6257 = vmatpush1.bf16.msra.mxu1 %v9055_v41  ;;  %v9165_v40 = vcombine.low %v734_v26, %v742_v27  ;;  %v9167_v41 = vcombine.low %v735_v28, %v743_v29  ;;  %v846_v26 = vld [vmem:[#allocation6 + $0x1790] sm:$0xff]  ;;  %v847_v28 = vld [vmem:[#allocation6 + $0x1798] sm:$0xff] }
 0x1c8   :  { %6094 = vmatprep.subr.bf16.mxu0 %v9070_v42  ;;  %6258 = vmatprep.subr.bf16.mxu1 %v9072_v43  ;;  %v9182_v42 = vcombine.high %v750_v15, %v758_v35  ;;  %v9184_v43 = vcombine.high %v751_v36, %v759_v37  ;;  %v854_v27 = vld [vmem:[#allocation6 + $0x17d0] sm:$0xff]  ;;  %v855_v29 = vld [vmem:[#allocation6 + $0x17d8] sm:$0xff] }
 0x1cb   :  { %6095 = vmatpush1.bf16.msra.mxu0 %v9069_v24  ;;  %6259 = vmatpush1.bf16.msra.mxu1 %v9071_v49  ;;  %v9181_v24 = vcombine.low %v750_v15, %v758_v35  ;;  %v9183_v49 = vcombine.low %v751_v36, %v759_v37  ;;  %v862_v15 = vld [vmem:[#allocation6 + $0x1810] sm:$0xff]  ;;  %v863_v36 = vld [vmem:[#allocation6 + $0x1818] sm:$0xff] }
 0x1cc   :  { %6096 = vmatprep.subr.bf16.mxu0 %v9086_v50  ;;  %6260 = vmatprep.subr.bf16.mxu1 %v9088_v51  ;;  %v9198_v50 = vcombine.high %v766_v44, %v774_v45  ;;  %v9200_v51 = vcombine.high %v767_v47, %v775_v48  ;;  %v870_v35 = vld [vmem:[#allocation6 + $0x1850] sm:$0xff]  ;;  %v871_v37 = vld [vmem:[#allocation6 + $0x1858] sm:$0xff] }
 0x1cf   :  { %6097 = vmatpush1.bf16.msra.mxu0 %v9085_v59  ;;  %6261 = vmatpush1.bf16.msra.mxu1 %v9087_v60  ;;  %v9197_v59 = vcombine.low %v766_v44, %v774_v45  ;;  %v9199_v60 = vcombine.low %v767_v47, %v775_v48  ;;  %v878_v44 = vld [vmem:[#allocation6 + $0x1890] sm:$0xff]  ;;  %v879_v47 = vld [vmem:[#allocation6 + $0x1898] sm:$0xff] }
 0x1d0   :  { %6098 = vmatprep.subr.bf16.mxu0 %v9102_v61  ;;  %6262 = vmatprep.subr.bf16.mxu1 %v9104_v62  ;;  %v9214_v61 = vcombine.high %v782_v52, %v790_v54  ;;  %v9216_v62 = vcombine.high %v783_v56, %v791_v58  ;;  %v886_v45 = vld [vmem:[#allocation6 + $0x18d0] sm:$0xff]  ;;  %v887_v48 = vld [vmem:[#allocation6 + $0x18d8] sm:$0xff] }
 0x1d3   :  { %6099 = vmatpush1.bf16.msra.mxu0 %v9101_v38  ;;  %6263 = vmatpush1.bf16.msra.mxu1 %v9103_v3  ;;  %v9213_v38 = vcombine.low %v782_v52, %v790_v54  ;;  %v9215_v3 = vcombine.low %v783_v56, %v791_v58  ;;  %v894_v52 = vld [vmem:[#allocation6 + $0x1910] sm:$0xff]  ;;  %v895_v56 = vld [vmem:[#allocation6 + $0x1918] sm:$0xff] }
 0x1d4   :  { %6100 = vmatprep.subr.bf16.mxu0 %v9118_v4  ;;  %6264 = vmatprep.subr.bf16.mxu1 %v9120_v5  ;;  %v9230_v4 = vcombine.high %v798_v63, %v806_v0  ;;  %v9232_v5 = vcombine.high %v799_v1, %v807_v2  ;;  %v902_v54 = vld [vmem:[#allocation6 + $0x1950] sm:$0xff]  ;;  %v903_v58 = vld [vmem:[#allocation6 + $0x1958] sm:$0xff] }
 0x1d7   :  { %6101 = vmatpush1.bf16.msra.mxu0 %v9117_v10  ;;  %6265 = vmatpush1.bf16.msra.mxu1 %v9119_v11  ;;  %v9229_v10 = vcombine.low %v798_v63, %v806_v0  ;;  %v9231_v11 = vcombine.low %v799_v1, %v807_v2  ;;  %v910_v63 = vld [vmem:[#allocation6 + $0x1990] sm:$0xff]  ;;  %v911_v1 = vld [vmem:[#allocation6 + $0x1998] sm:$0xff] }
 0x1d8   :  { %6102 = vmatprep.subr.bf16.mxu0 %v9134_v13  ;;  %6266 = vmatprep.subr.bf16.mxu1 %v9136_v14  ;;  %v9246_v13 = vcombine.high %v814_v6, %v822_v7  ;;  %v9248_v14 = vcombine.high %v815_v8, %v823_v9  ;;  %v918_v0 = vld [vmem:[#allocation6 + $0x19d0] sm:$0xff]  ;;  %v919_v2 = vld [vmem:[#allocation6 + $0x19d8] sm:$0xff] }
 0x1db   :  { %6103 = vmatpush1.bf16.msra.mxu0 %v9133_v20  ;;  %6267 = vmatpush1.bf16.msra.mxu1 %v9135_v21  ;;  %v9245_v20 = vcombine.low %v814_v6, %v822_v7  ;;  %v9247_v21 = vcombine.low %v815_v8, %v823_v9  ;;  %v926_v6 = vld [vmem:[#allocation6 + $0x1a10] sm:$0xff]  ;;  %v927_v8 = vld [vmem:[#allocation6 + $0x1a18] sm:$0xff] }
 0x1dc   :  { %6104 = vmatprep.subr.bf16.mxu0 %v9150_v22  ;;  %6268 = vmatprep.subr.bf16.mxu1 %v9152_v23  ;;  %v9262_v22 = vcombine.high %v830_v16, %v838_v17  ;;  %v9264_v23 = vcombine.high %v831_v18, %v839_v19  ;;  %v934_v7 = vld [vmem:[#allocation6 + $0x1a50] sm:$0xff]  ;;  %v935_v9 = vld [vmem:[#allocation6 + $0x1a58] sm:$0xff] }
 0x1df   :  { %6105 = vmatpush1.bf16.msra.mxu0 %v9149_v30  ;;  %6269 = vmatpush1.bf16.msra.mxu1 %v9151_v31  ;;  %v9261_v30 = vcombine.low %v830_v16, %v838_v17  ;;  %v9263_v31 = vcombine.low %v831_v18, %v839_v19  ;;  %v942_v16 = vld [vmem:[#allocation6 + $0x1a90] sm:$0xff]  ;;  %v943_v18 = vld [vmem:[#allocation6 + $0x1a98] sm:$0xff] }
 0x1e0   :  { %6106 = vmatprep.subr.bf16.mxu0 %v9166_v32  ;;  %6270 = vmatprep.subr.bf16.mxu1 %v9168_v33  ;;  %v9278_v32 = vcombine.high %v846_v26, %v854_v27  ;;  %v9280_v33 = vcombine.high %v847_v28, %v855_v29  ;;  %v950_v17 = vld [vmem:[#allocation6 + $0x1ad0] sm:$0xff]  ;;  %v951_v19 = vld [vmem:[#allocation6 + $0x1ad8] sm:$0xff] }
 0x1e3   :  { %6107 = vmatpush1.bf16.msra.mxu0 %v9165_v40  ;;  %6271 = vmatpush1.bf16.msra.mxu1 %v9167_v41  ;;  %v9277_v40 = vcombine.low %v846_v26, %v854_v27  ;;  %v9279_v41 = vcombine.low %v847_v28, %v855_v29  ;;  %v958_v26 = vld [vmem:[#allocation6 + $0x1b10] sm:$0xff]  ;;  %v959_v28 = vld [vmem:[#allocation6 + $0x1b18] sm:$0xff] }
 0x1e4   :  { %6108 = vmatprep.subr.bf16.mxu0 %v9182_v42  ;;  %6272 = vmatprep.subr.bf16.mxu1 %v9184_v43  ;;  %v9294_v42 = vcombine.high %v862_v15, %v870_v35  ;;  %v9296_v43 = vcombine.high %v863_v36, %v871_v37  ;;  %v966_v27 = vld [vmem:[#allocation6 + $0x1b50] sm:$0xff]  ;;  %v967_v29 = vld [vmem:[#allocation6 + $0x1b58] sm:$0xff] }
 0x1e7   :  { %6109 = vmatpush1.bf16.msra.mxu0 %v9181_v24  ;;  %6273 = vmatpush1.bf16.msra.mxu1 %v9183_v49  ;;  %v9293_v24 = vcombine.low %v862_v15, %v870_v35  ;;  %v9295_v49 = vcombine.low %v863_v36, %v871_v37  ;;  %v9392_v15 = vcombine.high %v959_v28, %v967_v29  ;;  %v974_v35 = vld [vmem:[#allocation6 + $0x1b90] sm:$0xff] }
 0x1e8   :  { %6110 = vmatprep.subr.bf16.mxu0 %v9198_v50  ;;  %6274 = vmatprep.subr.bf16.mxu1 %v9200_v51  ;;  %v9310_v50 = vcombine.high %v878_v44, %v886_v45  ;;  %v9312_v51 = vcombine.high %v879_v47, %v887_v48  ;;  %v982_v36 = vld [vmem:[#allocation6 + $0x1bd0] sm:$0xff] }
 0x1eb   :  { %6111 = vmatpush1.bf16.msra.mxu0 %v9197_v59  ;;  %6275 = vmatpush1.bf16.msra.mxu1 %v9199_v60  ;;  %v9309_v59 = vcombine.low %v878_v44, %v886_v45  ;;  %v9311_v60 = vcombine.low %v879_v47, %v887_v48  ;;  %v9389_v45 = vcombine.low %v958_v26, %v966_v27 }
 0x1ec   :  { %6112 = vmatprep.subr.bf16.mxu0 %v9214_v61  ;;  %6276 = vmatprep.subr.bf16.mxu1 %v9216_v62  ;;  %v9326_v61 = vcombine.high %v894_v52, %v902_v54  ;;  %v9328_v62 = vcombine.high %v895_v56, %v903_v58 }
 0x1ef   :  { %6113 = vmatpush1.bf16.msra.mxu0 %v9213_v38  ;;  %6277 = vmatpush1.bf16.msra.mxu1 %v9215_v3  ;;  %v9325_v38 = vcombine.low %v894_v52, %v902_v54  ;;  %v9327_v3 = vcombine.low %v895_v56, %v903_v58  ;;  %v990_v52 = vld [vmem:[#allocation6 + $0x1c10] sm:$0x33]  ;;  %v991_v54 = vld [vmem:[#allocation6 + $0x1c18] sm:$0x33]  ;;  %v9405_v56 = vcombine.low %v974_v35, %v982_v36 }
 0x1f0   :  { %6114 = vmatprep.subr.bf16.mxu0 %v9230_v4  ;;  %6278 = vmatprep.subr.bf16.mxu1 %v9232_v5  ;;  %v9342_v4 = vcombine.high %v910_v63, %v918_v0  ;;  %v9344_v5 = vcombine.high %v911_v1, %v919_v2 }
 0x1f3   :  { %6115 = vmatpush1.bf16.msra.mxu0 %v9229_v10  ;;  %6279 = vmatpush1.bf16.msra.mxu1 %v9231_v11  ;;  %v9341_v10 = vcombine.low %v910_v63, %v918_v0  ;;  %v9343_v11 = vcombine.low %v911_v1, %v919_v2  ;;  %v96_v63 = vld [vmem:[#allocation6 + $0x20] sm:$0xff]  ;;  %v97_v1 = vld [vmem:[#allocation6 + $0x28] sm:$0xff] }
 0x1f4   :  { %6116 = vmatprep.subr.bf16.mxu0 %v9246_v13  ;;  %6280 = vmatprep.subr.bf16.mxu1 %v9248_v14  ;;  %v9358_v13 = vcombine.high %v926_v6, %v934_v7  ;;  %v9360_v14 = vcombine.high %v927_v8, %v935_v9  ;;  %v104_v0 = vld [vmem:[#allocation6 + $0x60] sm:$0xff]  ;;  %v105_v2 = vld [vmem:[#allocation6 + $0x68] sm:$0xff] }
 0x1f7   :  { %6117 = vmatpush1.bf16.msra.mxu0 %v9245_v20  ;;  %6281 = vmatpush1.bf16.msra.mxu1 %v9247_v21  ;;  %v9357_v20 = vcombine.low %v926_v6, %v934_v7  ;;  %v9359_v21 = vcombine.low %v927_v8, %v935_v9  ;;  %v112_v6 = vld [vmem:[#allocation6 + $0xa0] sm:$0xff]  ;;  %v113_v8 = vld [vmem:[#allocation6 + $0xa8] sm:$0xff] }
 0x1f8   :  { %6118 = vmatprep.subr.bf16.mxu0 %v9262_v22  ;;  %6282 = vmatprep.subr.bf16.mxu1 %v9264_v23  ;;  %v9374_v22 = vcombine.high %v942_v16, %v950_v17  ;;  %v9376_v23 = vcombine.high %v943_v18, %v951_v19  ;;  %v120_v7 = vld [vmem:[#allocation6 + $0xe0] sm:$0xff]  ;;  %v121_v9 = vld [vmem:[#allocation6 + $0xe8] sm:$0xff] }
 0x1fb   :  { %6119 = vmatpush1.bf16.msra.mxu0 %v9261_v30  ;;  %6283 = vmatpush1.bf16.msra.mxu1 %v9263_v31  ;;  %v9373_v30 = vcombine.low %v942_v16, %v950_v17  ;;  %v9375_v31 = vcombine.low %v943_v18, %v951_v19  ;;  %v128_v16 = vld [vmem:[#allocation6 + $0x120] sm:$0xff]  ;;  %v129_v18 = vld [vmem:[#allocation6 + $0x128] sm:$0xff] }
 0x1fc   :  { %6120 = vmatprep.subr.bf16.mxu0 %v9278_v32  ;;  %6284 = vmatprep.subr.bf16.mxu1 %v9280_v33  ;;  %v9390_v32 = vcombine.high %v958_v26, %v966_v27  ;;  %v136_v17 = vld [vmem:[#allocation6 + $0x160] sm:$0xff]  ;;  %v137_v19 = vld [vmem:[#allocation6 + $0x168] sm:$0xff] }
 0x1fd   :  { %v144_v26 = vld [vmem:[#allocation6 + $0x1a0] sm:$0xff] }
 0x1fe   :  { %v152_v27 = vld [vmem:[#allocation6 + $0x1e0] sm:$0xff] }
 0x1ff   :  { %6121 = vmatpush1.bf16.msra.mxu0 %v9277_v40  ;;  %6285 = vmatpush1.bf16.msra.mxu1 %v9279_v41  ;;  %v975_v41 = vld [vmem:[#allocation6 + $0x1b98] sm:$0xff] }
 0x200   :  { %6131 = vmatprep.subr.bf16.mxu0 %v9294_v42  ;;  %6295 = vmatprep.subr.bf16.mxu1 %v9296_v43  ;;  %v983_v42 = vld [vmem:[#allocation6 + $0x1bd8] sm:$0xff] }
 0x201   :  { %v9407_v58 = vcombine.low %v975_v41, %v983_v42 }
 0x202   :  { %6123 = vmatmul.mubr.bf16.vlgmr.msra.gmra.mrb[4].mxu0 %v10354_v39  ;;  %6287 = vmatmul.mubr.bf16.vlgmr.msra.gmra.mrb[4].mxu1 %v10354_v39 }
 0x203   :  { %6132 = vmatpush1.bf16.msra.mxu0 %v9293_v24  ;;  %6296 = vmatpush1.bf16.msra.mxu1 %v9295_v49  ;;  %v9391_v24 = vcombine.low %v959_v28, %v967_v29  ;;  %v9406_v49 = vcombine.high %v974_v35, %v982_v36  ;;  %v145_v28 = vld [vmem:[#allocation6 + $0x1a8] sm:$0xff]  ;;  %v160_v35 = vld [vmem:[#allocation6 + $0x220] sm:$0xff] }
 0x204   :  { %6133 = vmatprep.subr.bf16.mxu0 %v9310_v50  ;;  %6297 = vmatprep.subr.bf16.mxu1 %v9312_v51  ;;  %v9408_v51 = vcombine.high %v975_v41, %v983_v42  ;;  %v153_v29 = vld [vmem:[#allocation6 + $0x1e8] sm:$0xff]  ;;  %v168_v36 = vld [vmem:[#allocation6 + $0x260] sm:$0xff] }
 0x205   :  { %9438 = vmatprep.mubr.msk.bf16.mxu0 %vm5627_vm0, %v10358_v46  ;;  %9440 = vmatprep.mubr.msk.bf16.mxu1 %vm5627_vm0, %v10358_v46  ;;  %v161_v41 = vld [vmem:[#allocation6 + $0x228] sm:$0xff] }
 0x206   :  { %v169_v42 = vld [vmem:[#allocation6 + $0x268] sm:$0xff] }
 0x207   :  { %6134 = vmatpush1.bf16.msra.mxu0 %v9309_v59  ;;  %6298 = vmatpush1.bf16.msra.mxu1 %v9311_v60  ;;  %v9422_v59 = vcombine.high %v990_v52, %v990_v52  ;;  %v9421_v60 = vcombine.low %v990_v52, %v990_v52  ;;  %v8593_v52 = vcombine.low %v160_v35, %v168_v36 }
 0x208   :  { %6135 = vmatprep.subr.bf16.mxu0 %v9326_v61  ;;  %6299 = vmatprep.subr.bf16.mxu1 %v9328_v62  ;;  %v9424_v61 = vcombine.high %v991_v54, %v991_v54  ;;  %v9423_v62 = vcombine.low %v991_v54, %v991_v54  ;;  %v8595_v54 = vcombine.low %v161_v41, %v169_v42 }
 0x20b   :  { %6136 = vmatpush1.bf16.msra.mxu0 %v9325_v38  ;;  %6300 = vmatpush1.bf16.msra.mxu1 %v9327_v3  ;;  %v5645_v38 = vsel %vm5631_vm1, %v9421_v60, 0  ;;  %v8530_v3 = vcombine.high %v96_v63, %v104_v0  ;;  %v200_v60 = vld [vmem:[#allocation6 + $0x360] sm:$0xff] }
 0x20c   :  { %6137 = vmatprep.subr.bf16.mxu0 %v9342_v4  ;;  %6301 = vmatprep.subr.bf16.mxu1 %v9344_v5  ;;  %v5651_v4 = vsel %vm5631_vm1, %v9423_v62, 0  ;;  %v8532_v5 = vcombine.high %v97_v1, %v105_v2  ;;  %v201_v62 = vld [vmem:[#allocation6 + $0x368] sm:$0xff] }
 0x20f   :  { %6138 = vmatpush1.bf16.msra.mxu0 %v9341_v10  ;;  %6302 = vmatpush1.bf16.msra.mxu1 %v9343_v11  ;;  %v8529_v10 = vcombine.low %v96_v63, %v104_v0  ;;  %v8531_v11 = vcombine.low %v97_v1, %v105_v2 }
 0x210   :  { %6139 = vmatprep.subr.bf16.mxu0 %v9358_v13  ;;  %6303 = vmatprep.subr.bf16.mxu1 %v9360_v14  ;;  %v8546_v13 = vcombine.high %v112_v6, %v120_v7  ;;  %v8548_v14 = vcombine.high %v113_v8, %v121_v9 }
 0x213   :  { %6140 = vmatpush1.bf16.msra.mxu0 %v9357_v20  ;;  %6304 = vmatpush1.bf16.msra.mxu1 %v9359_v21  ;;  %v8545_v20 = vcombine.low %v112_v6, %v120_v7  ;;  %v8547_v21 = vcombine.low %v113_v8, %v121_v9 }
 0x214   :  { %6141 = vmatprep.subr.bf16.mxu0 %v9374_v22  ;;  %6305 = vmatprep.subr.bf16.mxu1 %v9376_v23  ;;  %v8562_v22 = vcombine.high %v128_v16, %v136_v17  ;;  %v8564_v23 = vcombine.high %v129_v18, %v137_v19 }
 0x215   :  { %v10392_v33 = vpop.f32.mrb[0].mxu0  ;;  %v10394_v37 = vpop.f32.mrb[0].mxu1 }
 0x216   :  { %v10396_v40 = vpop.f32.mrb[1].mxu0  ;;  %v10398_v43 = vpop.f32.mrb[1].mxu1 }
 0x217   :  { %v5841_v44 = vpop.f32.mrb[2].mxu0  ;;  %6142 = vmatpush1.bf16.msra.mxu0 %v9373_v30  ;;  %v6005_v47 = vpop.f32.mrb[2].mxu1  ;;  %6306 = vmatpush1.bf16.msra.mxu1 %v9375_v31  ;;  %v8561_v30 = vcombine.low %v128_v16, %v136_v17  ;;  %v8563_v31 = vcombine.low %v129_v18, %v137_v19 }
 0x218   :  { %v5842_v48 = vpop.f32.mrb[3].mxu0  ;;  %6143 = vmatprep.subr.bf16.mxu0 %v9390_v32  ;;  %v6006_v50 = vpop.f32.mrb[3].mxu1  ;;  %6307 = vmatprep.subr.bf16.mxu1 %v9392_v15  ;;  %v8578_v32 = vcombine.high %v144_v26, %v152_v27  ;;  %v8580_v15 = vcombine.high %v145_v28, %v153_v29  ;;  %v8577_v44 = vcombine.low %v144_v26, %v152_v27 }
 0x219   :  { %v8594_v47 = vcombine.high %v160_v35, %v168_v36  ;;  %v8596_v48 = vcombine.high %v161_v41, %v169_v42  ;;  %v177_v50 = vld [vmem:[#allocation6 + $0x2a8] sm:$0xff] }
 0x21b   :  { %6144 = vmatpush1.bf16.msra.mxu0 %v9389_v45  ;;  %6308 = vmatpush1.bf16.msra.mxu1 %v9391_v24  ;;  %v8579_v45 = vcombine.low %v145_v28, %v153_v29  ;;  %v176_v24 = vld [vmem:[#allocation6 + $0x2a0] sm:$0xff] }
 0x21c   :  { %6145 = vmatprep.subr.bf16.mxu0 %v9406_v49  ;;  %6309 = vmatprep.subr.bf16.mxu1 %v9408_v51  ;;  %v184_v49 = vld [vmem:[#allocation6 + $0x2e0] sm:$0xff]  ;;  %v185_v51 = vld [vmem:[#allocation6 + $0x2e8] sm:$0xff] }
 0x21d   :  { %v8609_v63 = vcombine.low %v176_v24, %v184_v49  ;;  %v8611_v0 = vcombine.low %v177_v50, %v185_v51 }
 0x21f   :  { %6146 = vmatpush1.bf16.msra.mxu0 %v9405_v56  ;;  %6310 = vmatpush1.bf16.msra.mxu1 %v9407_v58  ;;  %v8610_v56 = vcombine.high %v176_v24, %v184_v49  ;;  %v8612_v58 = vcombine.high %v177_v50, %v185_v51 }
 0x220   :  { %9437 = vmatprep.subr.msk.bf16.mxu0 %vm5631_vm1, %v9422_v59  ;;  %9439 = vmatprep.subr.msk.bf16.mxu1 %vm5631_vm1, %v9424_v61  ;;  %v192_v59 = vld [vmem:[#allocation6 + $0x320] sm:$0xff]  ;;  %v193_v61 = vld [vmem:[#allocation6 + $0x328] sm:$0xff] }
 0x221   :  { %v8626_v1 = vcombine.high %v192_v59, %v200_v60  ;;  %v8628_v2 = vcombine.high %v193_v61, %v201_v62  ;;  %v8625_v6 = vcombine.low %v192_v59, %v200_v60  ;;  %v8627_v7 = vcombine.low %v193_v61, %v201_v62 }
 0x223   :  { %6148 = vmatpush1.bf16.msra.mxu0 %v5645_v38  ;;  %6312 = vmatpush1.bf16.msra.mxu1 %v5651_v4  ;;  %v208_v38 = vld [vmem:[#allocation6 + $0x3a0] sm:$0xff]  ;;  %v209_v4 = vld [vmem:[#allocation6 + $0x3a8] sm:$0xff] }
 0x224   :  { %6336 = vmatprep.subr.bf16.mxu0 %v8530_v3  ;;  %6500 = vmatprep.subr.bf16.mxu1 %v8532_v5  ;;  %v216_v3 = vld [vmem:[#allocation6 + $0x3e0] sm:$0xff]  ;;  %v217_v5 = vld [vmem:[#allocation6 + $0x3e8] sm:$0xff] }
 0x225   :  { %v8642_v8 = vcombine.high %v208_v38, %v216_v3  ;;  %v8644_v9 = vcombine.high %v209_v4, %v217_v5  ;;  %v8641_v16 = vcombine.low %v208_v38, %v216_v3  ;;  %v8643_v17 = vcombine.low %v209_v4, %v217_v5 }
 0x226   :  { %6164 = vmatmul.mubr.bf16.vlgmr.msra.gmra.mrb[4].mxu0 %v10372_v55  ;;  %6328 = vmatmul.mubr.bf16.vlgmr.msra.gmra.mrb[4].mxu1 %v10372_v55 }
 0x227   :  { %6337 = vmatpush1.bf16.msra.mxu0 %v8529_v10  ;;  %6501 = vmatpush1.bf16.msra.mxu1 %v8531_v11  ;;  %v224_v10 = vld [vmem:[#allocation6 + $0x420] sm:$0xff] }
 0x228   :  { %6338 = vmatprep.subr.bf16.mxu0 %v8546_v13  ;;  %6502 = vmatprep.subr.bf16.mxu1 %v8548_v14  ;;  %v232_v11 = vld [vmem:[#allocation6 + $0x460] sm:$0xff]  ;;  %v225_v13 = vld [vmem:[#allocation6 + $0x428] sm:$0xff] }
 0x229   :  { %6368 = vmatprep.mubr.bf16.mxu0 %v10318_v57  ;;  %6532 = vmatprep.mubr.bf16.mxu1 %v10318_v57  ;;  %v233_v14 = vld [vmem:[#allocation6 + $0x468] sm:$0xff]  ;;  %v8658_v18 = vcombine.high %v224_v10, %v232_v11  ;;  %v8657_v26 = vcombine.low %v224_v10, %v232_v11 }
 0x22a   :  { %v8660_v19 = vcombine.high %v225_v13, %v233_v14  ;;  %v8659_v27 = vcombine.low %v225_v13, %v233_v14 }
 0x22b   :  { %6339 = vmatpush1.bf16.msra.mxu0 %v8545_v20  ;;  %6503 = vmatpush1.bf16.msra.mxu1 %v8547_v21  ;;  %v240_v20 = vld [vmem:[#allocation6 + $0x4a0] sm:$0xff] }
 0x22c   :  { %6340 = vmatprep.subr.bf16.mxu0 %v8562_v22  ;;  %6504 = vmatprep.subr.bf16.mxu1 %v8564_v23  ;;  %v248_v21 = vld [vmem:[#allocation6 + $0x4e0] sm:$0xff]  ;;  %v241_v22 = vld [vmem:[#allocation6 + $0x4a8] sm:$0xff] }
 0x22d   :  { %v249_v23 = vld [vmem:[#allocation6 + $0x4e8] sm:$0xff]  ;;  %v8674_v28 = vcombine.high %v240_v20, %v248_v21  ;;  %v8673_v35 = vcombine.low %v240_v20, %v248_v21 }
 0x22e   :  { %v8676_v29 = vcombine.high %v241_v22, %v249_v23  ;;  %v8675_v36 = vcombine.low %v241_v22, %v249_v23 }
 0x22f   :  { %6341 = vmatpush1.bf16.msra.mxu0 %v8561_v30  ;;  %6505 = vmatpush1.bf16.msra.mxu1 %v8563_v31  ;;  %v256_v30 = vld [vmem:[#allocation6 + $0x520] sm:$0xff] }
 0x230   :  { %6342 = vmatprep.subr.bf16.mxu0 %v8578_v32  ;;  %6506 = vmatprep.subr.bf16.mxu1 %v8580_v15  ;;  %v264_v31 = vld [vmem:[#allocation6 + $0x560] sm:$0xff]  ;;  %v257_v32 = vld [vmem:[#allocation6 + $0x528] sm:$0xff] }
 0x231   :  { %v265_v15 = vld [vmem:[#allocation6 + $0x568] sm:$0xff]  ;;  %v8690_v41 = vcombine.high %v256_v30, %v264_v31  ;;  %v8689_v24 = vcombine.low %v256_v30, %v264_v31 }
 0x232   :  { %v8692_v42 = vcombine.high %v257_v32, %v265_v15  ;;  %v8691_v49 = vcombine.low %v257_v32, %v265_v15 }
 0x233   :  { %6343 = vmatpush1.bf16.msra.mxu0 %v8577_v44  ;;  %6507 = vmatpush1.bf16.msra.mxu1 %v8579_v45  ;;  %v272_v44 = vld [vmem:[#allocation6 + $0x5a0] sm:$0xff] }
 0x234   :  { %6344 = vmatprep.subr.bf16.mxu0 %v8594_v47  ;;  %6508 = vmatprep.subr.bf16.mxu1 %v8596_v48  ;;  %v280_v45 = vld [vmem:[#allocation6 + $0x5e0] sm:$0xff]  ;;  %v273_v47 = vld [vmem:[#allocation6 + $0x5a8] sm:$0xff] }
 0x235   :  { %v281_v48 = vld [vmem:[#allocation6 + $0x5e8] sm:$0xff]  ;;  %v8706_v50 = vcombine.high %v272_v44, %v280_v45  ;;  %v8705_v59 = vcombine.low %v272_v44, %v280_v45 }
 0x236   :  { %v8708_v51 = vcombine.high %v273_v47, %v281_v48  ;;  %v8707_v60 = vcombine.low %v273_v47, %v281_v48 }
 0x237   :  { %6345 = vmatpush1.bf16.msra.mxu0 %v8593_v52  ;;  %6509 = vmatpush1.bf16.msra.mxu1 %v8595_v54  ;;  %v288_v52 = vld [vmem:[#allocation6 + $0x620] sm:$0xff] }
 0x238   :  { %6346 = vmatprep.subr.bf16.mxu0 %v8610_v56  ;;  %6510 = vmatprep.subr.bf16.mxu1 %v8612_v58  ;;  %v296_v54 = vld [vmem:[#allocation6 + $0x660] sm:$0xff]  ;;  %v289_v56 = vld [vmem:[#allocation6 + $0x628] sm:$0xff] }
 0x239   :  { %v297_v58 = vld [vmem:[#allocation6 + $0x668] sm:$0xff]  ;;  %v8722_v61 = vcombine.high %v288_v52, %v296_v54  ;;  %v8721_v38 = vcombine.low %v288_v52, %v296_v54 }
 0x23a   :  { %v8724_v62 = vcombine.high %v289_v56, %v297_v58  ;;  %v8723_v3 = vcombine.low %v289_v56, %v297_v58 }
 0x23b   :  { %6347 = vmatpush1.bf16.msra.mxu0 %v8609_v63  ;;  %6511 = vmatpush1.bf16.msra.mxu1 %v8611_v0  ;;  %v304_v63 = vld [vmem:[#allocation6 + $0x6a0] sm:$0xff] }
 0x23c   :  { %6348 = vmatprep.subr.bf16.mxu0 %v8626_v1  ;;  %6512 = vmatprep.subr.bf16.mxu1 %v8628_v2  ;;  %v312_v0 = vld [vmem:[#allocation6 + $0x6e0] sm:$0xff]  ;;  %v305_v1 = vld [vmem:[#allocation6 + $0x6a8] sm:$0xff] }
 0x23d   :  { %v313_v2 = vld [vmem:[#allocation6 + $0x6e8] sm:$0xff]  ;;  %v8738_v4 = vcombine.high %v304_v63, %v312_v0  ;;  %v8737_v10 = vcombine.low %v304_v63, %v312_v0 }
 0x23e   :  { %v8740_v5 = vcombine.high %v305_v1, %v313_v2  ;;  %v8739_v11 = vcombine.low %v305_v1, %v313_v2 }
 0x23f   :  { %6349 = vmatpush1.bf16.msra.mxu0 %v8625_v6  ;;  %6513 = vmatpush1.bf16.msra.mxu1 %v8627_v7  ;;  %v320_v6 = vld [vmem:[#allocation6 + $0x720] sm:$0xff] }
 0x240   :  { %6350 = vmatprep.subr.bf16.mxu0 %v8642_v8  ;;  %6514 = vmatprep.subr.bf16.mxu1 %v8644_v9  ;;  %v328_v7 = vld [vmem:[#allocation6 + $0x760] sm:$0xff]  ;;  %v321_v8 = vld [vmem:[#allocation6 + $0x728] sm:$0xff] }
 0x241   :  { %v329_v9 = vld [vmem:[#allocation6 + $0x768] sm:$0xff]  ;;  %v8754_v13 = vcombine.high %v320_v6, %v328_v7  ;;  %v8753_v20 = vcombine.low %v320_v6, %v328_v7 }
 0x242   :  { %v8756_v14 = vcombine.high %v321_v8, %v329_v9  ;;  %v8755_v21 = vcombine.low %v321_v8, %v329_v9 }
 0x243   :  { %6351 = vmatpush1.bf16.msra.mxu0 %v8641_v16  ;;  %6515 = vmatpush1.bf16.msra.mxu1 %v8643_v17  ;;  %v336_v16 = vld [vmem:[#allocation6 + $0x7a0] sm:$0xff] }
 0x244   :  { %6352 = vmatprep.subr.bf16.mxu0 %v8658_v18  ;;  %6516 = vmatprep.subr.bf16.mxu1 %v8660_v19  ;;  %v344_v17 = vld [vmem:[#allocation6 + $0x7e0] sm:$0xff]  ;;  %v337_v18 = vld [vmem:[#allocation6 + $0x7a8] sm:$0xff] }
 0x245   :  { %v345_v19 = vld [vmem:[#allocation6 + $0x7e8] sm:$0xff]  ;;  %v8770_v22 = vcombine.high %v336_v16, %v344_v17  ;;  %v8769_v30 = vcombine.low %v336_v16, %v344_v17 }
 0x246   :  { %v8772_v23 = vcombine.high %v337_v18, %v345_v19  ;;  %v8771_v31 = vcombine.low %v337_v18, %v345_v19 }
 0x247   :  { %6353 = vmatpush1.bf16.msra.mxu0 %v8657_v26  ;;  %6517 = vmatpush1.bf16.msra.mxu1 %v8659_v27  ;;  %v352_v26 = vld [vmem:[#allocation6 + $0x820] sm:$0xff] }
 0x248   :  { %6354 = vmatprep.subr.bf16.mxu0 %v8674_v28  ;;  %6518 = vmatprep.subr.bf16.mxu1 %v8676_v29  ;;  %v360_v27 = vld [vmem:[#allocation6 + $0x860] sm:$0xff]  ;;  %v353_v28 = vld [vmem:[#allocation6 + $0x828] sm:$0xff] }
 0x249   :  { %v361_v29 = vld [vmem:[#allocation6 + $0x868] sm:$0xff]  ;;  %v8786_v32 = vcombine.high %v352_v26, %v360_v27  ;;  %v8785_v44 = vcombine.low %v352_v26, %v360_v27 }
 0x24a   :  { %v8788_v15 = vcombine.high %v353_v28, %v361_v29  ;;  %v8787_v45 = vcombine.low %v353_v28, %v361_v29 }
 0x24b   :  { %6355 = vmatpush1.bf16.msra.mxu0 %v8673_v35  ;;  %6519 = vmatpush1.bf16.msra.mxu1 %v8675_v36  ;;  %v368_v35 = vld [vmem:[#allocation6 + $0x8a0] sm:$0xff] }
 0x24c   :  { %6356 = vmatprep.subr.bf16.mxu0 %v8690_v41  ;;  %6520 = vmatprep.subr.bf16.mxu1 %v8692_v42  ;;  %v376_v36 = vld [vmem:[#allocation6 + $0x8e0] sm:$0xff]  ;;  %v369_v41 = vld [vmem:[#allocation6 + $0x8a8] sm:$0xff] }
 0x24d   :  { %v377_v42 = vld [vmem:[#allocation6 + $0x8e8] sm:$0xff]  ;;  %v8802_v47 = vcombine.high %v368_v35, %v376_v36  ;;  %v8801_v52 = vcombine.low %v368_v35, %v376_v36 }
 0x24e   :  { %v8804_v48 = vcombine.high %v369_v41, %v377_v42  ;;  %v8803_v54 = vcombine.low %v369_v41, %v377_v42 }
 0x24f   :  { %6357 = vmatpush1.bf16.msra.mxu0 %v8689_v24  ;;  %6521 = vmatpush1.bf16.msra.mxu1 %v8691_v49  ;;  %v384_v24 = vld [vmem:[#allocation6 + $0x920] sm:$0xff] }
 0x250   :  { %6358 = vmatprep.subr.bf16.mxu0 %v8706_v50  ;;  %6522 = vmatprep.subr.bf16.mxu1 %v8708_v51  ;;  %v392_v49 = vld [vmem:[#allocation6 + $0x960] sm:$0xff]  ;;  %v385_v50 = vld [vmem:[#allocation6 + $0x928] sm:$0xff] }
 0x251   :  { %v393_v51 = vld [vmem:[#allocation6 + $0x968] sm:$0xff]  ;;  %v8818_v56 = vcombine.high %v384_v24, %v392_v49  ;;  %v8817_v63 = vcombine.low %v384_v24, %v392_v49 }
 0x252   :  { %v8820_v58 = vcombine.high %v385_v50, %v393_v51  ;;  %v8819_v0 = vcombine.low %v385_v50, %v393_v51 }
 0x253   :  { %6359 = vmatpush1.bf16.msra.mxu0 %v8705_v59  ;;  %6523 = vmatpush1.bf16.msra.mxu1 %v8707_v60  ;;  %v400_v59 = vld [vmem:[#allocation6 + $0x9a0] sm:$0xff] }
 0x254   :  { %6360 = vmatprep.subr.bf16.mxu0 %v8722_v61  ;;  %6524 = vmatprep.subr.bf16.mxu1 %v8724_v62  ;;  %v408_v60 = vld [vmem:[#allocation6 + $0x9e0] sm:$0xff]  ;;  %v401_v61 = vld [vmem:[#allocation6 + $0x9a8] sm:$0xff] }
 0x255   :  { %v409_v62 = vld [vmem:[#allocation6 + $0x9e8] sm:$0xff]  ;;  %v8834_v1 = vcombine.high %v400_v59, %v408_v60  ;;  %v8833_v6 = vcombine.low %v400_v59, %v408_v60 }
 0x256   :  { %v8836_v2 = vcombine.high %v401_v61, %v409_v62  ;;  %v8835_v7 = vcombine.low %v401_v61, %v409_v62 }
 0x257   :  { %6361 = vmatpush1.bf16.msra.mxu0 %v8721_v38  ;;  %6525 = vmatpush1.bf16.msra.mxu1 %v8723_v3  ;;  %v416_v38 = vld [vmem:[#allocation6 + $0xa20] sm:$0xff] }
 0x258   :  { %6362 = vmatprep.subr.bf16.mxu0 %v8738_v4  ;;  %6526 = vmatprep.subr.bf16.mxu1 %v8740_v5  ;;  %v424_v3 = vld [vmem:[#allocation6 + $0xa60] sm:$0xff]  ;;  %v417_v4 = vld [vmem:[#allocation6 + $0xa28] sm:$0xff] }
 0x259   :  { %v425_v5 = vld [vmem:[#allocation6 + $0xa68] sm:$0xff]  ;;  %v8850_v8 = vcombine.high %v416_v38, %v424_v3  ;;  %v8849_v16 = vcombine.low %v416_v38, %v424_v3 }
 0x25a   :  { %v8852_v9 = vcombine.high %v417_v4, %v425_v5  ;;  %v8851_v17 = vcombine.low %v417_v4, %v425_v5 }
 0x25b   :  { %6363 = vmatpush1.bf16.msra.mxu0 %v8737_v10  ;;  %6527 = vmatpush1.bf16.msra.mxu1 %v8739_v11  ;;  %v432_v10 = vld [vmem:[#allocation6 + $0xaa0] sm:$0xff] }
 0x25c   :  { %6364 = vmatprep.subr.bf16.mxu0 %v8754_v13  ;;  %6528 = vmatprep.subr.bf16.mxu1 %v8756_v14  ;;  %v440_v11 = vld [vmem:[#allocation6 + $0xae0] sm:$0xff]  ;;  %v433_v13 = vld [vmem:[#allocation6 + $0xaa8] sm:$0xff] }
 0x25d   :  { %v441_v14 = vld [vmem:[#allocation6 + $0xae8] sm:$0xff]  ;;  %v8866_v18 = vcombine.high %v432_v10, %v440_v11  ;;  %v8865_v26 = vcombine.low %v432_v10, %v440_v11 }
 0x25e   :  { %v8868_v19 = vcombine.high %v433_v13, %v441_v14  ;;  %v8867_v27 = vcombine.low %v433_v13, %v441_v14 }
 0x25f   :  { %6365 = vmatpush1.bf16.msra.mxu0 %v8753_v20  ;;  %6529 = vmatpush1.bf16.msra.mxu1 %v8755_v21  ;;  %v448_v20 = vld [vmem:[#allocation6 + $0xb20] sm:$0xff] }
 0x260   :  { %6366 = vmatprep.subr.bf16.mxu0 %v8770_v22  ;;  %6530 = vmatprep.subr.bf16.mxu1 %v8772_v23  ;;  %v456_v21 = vld [vmem:[#allocation6 + $0xb60] sm:$0xff]  ;;  %v449_v22 = vld [vmem:[#allocation6 + $0xb28] sm:$0xff] }
 0x261   :  { %v457_v23 = vld [vmem:[#allocation6 + $0xb68] sm:$0xff]  ;;  %v8882_v28 = vcombine.high %v448_v20, %v456_v21  ;;  %v8881_v35 = vcombine.low %v448_v20, %v456_v21 }
 0x262   :  { %v8884_v29 = vcombine.high %v449_v22, %v457_v23  ;;  %v8883_v36 = vcombine.low %v449_v22, %v457_v23 }
 0x263   :  { %6367 = vmatpush1.bf16.msra.mxu0 %v8769_v30  ;;  %6531 = vmatpush1.bf16.msra.mxu1 %v8771_v31  ;;  %v464_v30 = vld [vmem:[#allocation6 + $0xba0] sm:$0xff] }
 0x264   :  { %6377 = vmatprep.subr.bf16.mxu0 %v8786_v32  ;;  %6541 = vmatprep.subr.bf16.mxu1 %v8788_v15  ;;  %v472_v31 = vld [vmem:[#allocation6 + $0xbe0] sm:$0xff]  ;;  %v465_v32 = vld [vmem:[#allocation6 + $0xba8] sm:$0xff] }
 0x265   :  { %v473_v15 = vld [vmem:[#allocation6 + $0xbe8] sm:$0xff]  ;;  %v8898_v41 = vcombine.high %v464_v30, %v472_v31  ;;  %v8897_v24 = vcombine.low %v464_v30, %v472_v31 }
 0x266   :  { %6369 = vmatmul.mubr.bf16.vlgmr.msra.gmra.mrb[8].mxu0 %v10324_v12  ;;  %6533 = vmatmul.mubr.bf16.vlgmr.msra.gmra.mrb[8].mxu1 %v10324_v12  ;;  %v8900_v42 = vcombine.high %v465_v32, %v473_v15  ;;  %v8899_v49 = vcombine.low %v465_v32, %v473_v15 }
 0x267   :  { %6378 = vmatpush1.bf16.msra.mxu0 %v8785_v44  ;;  %6542 = vmatpush1.bf16.msra.mxu1 %v8787_v45  ;;  %v480_v44 = vld [vmem:[#allocation6 + $0xc20] sm:$0xff] }
 0x268   :  { %6379 = vmatprep.subr.bf16.mxu0 %v8802_v47  ;;  %6543 = vmatprep.subr.bf16.mxu1 %v8804_v48  ;;  %v488_v45 = vld [vmem:[#allocation6 + $0xc60] sm:$0xff]  ;;  %v481_v47 = vld [vmem:[#allocation6 + $0xc28] sm:$0xff] }
 0x269   :  { %6409 = vmatprep.mubr.bf16.mxu0 %v10330_v53  ;;  %6573 = vmatprep.mubr.bf16.mxu1 %v10330_v53  ;;  %v489_v48 = vld [vmem:[#allocation6 + $0xc68] sm:$0xff]  ;;  %v8914_v50 = vcombine.high %v480_v44, %v488_v45  ;;  %v8913_v59 = vcombine.low %v480_v44, %v488_v45 }
 0x26a   :  { %v8916_v51 = vcombine.high %v481_v47, %v489_v48  ;;  %v8915_v60 = vcombine.low %v481_v47, %v489_v48 }
 0x26b   :  { %6380 = vmatpush1.bf16.msra.mxu0 %v8801_v52  ;;  %6544 = vmatpush1.bf16.msra.mxu1 %v8803_v54  ;;  %v496_v52 = vld [vmem:[#allocation6 + $0xca0] sm:$0xff] }
 0x26c   :  { %6381 = vmatprep.subr.bf16.mxu0 %v8818_v56  ;;  %6545 = vmatprep.subr.bf16.mxu1 %v8820_v58  ;;  %v504_v54 = vld [vmem:[#allocation6 + $0xce0] sm:$0xff]  ;;  %v497_v56 = vld [vmem:[#allocation6 + $0xca8] sm:$0xff] }
 0x26d   :  { %v505_v58 = vld [vmem:[#allocation6 + $0xce8] sm:$0xff]  ;;  %v8930_v61 = vcombine.high %v496_v52, %v504_v54  ;;  %v8929_v38 = vcombine.low %v496_v52, %v504_v54 }
 0x26e   :  { %v8932_v62 = vcombine.high %v497_v56, %v505_v58  ;;  %v8931_v3 = vcombine.low %v497_v56, %v505_v58 }
 0x26f   :  { %6382 = vmatpush1.bf16.msra.mxu0 %v8817_v63  ;;  %6546 = vmatpush1.bf16.msra.mxu1 %v8819_v0  ;;  %v512_v63 = vld [vmem:[#allocation6 + $0xd20] sm:$0xff] }
 0x270   :  { %6383 = vmatprep.subr.bf16.mxu0 %v8834_v1  ;;  %6547 = vmatprep.subr.bf16.mxu1 %v8836_v2  ;;  %v520_v0 = vld [vmem:[#allocation6 + $0xd60] sm:$0xff]  ;;  %v513_v1 = vld [vmem:[#allocation6 + $0xd28] sm:$0xff] }
 0x271   :  { %v521_v2 = vld [vmem:[#allocation6 + $0xd68] sm:$0xff]  ;;  %v8946_v4 = vcombine.high %v512_v63, %v520_v0  ;;  %v8945_v10 = vcombine.low %v512_v63, %v520_v0 }
 0x272   :  { %v8948_v5 = vcombine.high %v513_v1, %v521_v2  ;;  %v8947_v11 = vcombine.low %v513_v1, %v521_v2 }
 0x273   :  { %6384 = vmatpush1.bf16.msra.mxu0 %v8833_v6  ;;  %6548 = vmatpush1.bf16.msra.mxu1 %v8835_v7  ;;  %v528_v6 = vld [vmem:[#allocation6 + $0xda0] sm:$0xff] }
 0x274   :  { %6385 = vmatprep.subr.bf16.mxu0 %v8850_v8  ;;  %6549 = vmatprep.subr.bf16.mxu1 %v8852_v9  ;;  %v536_v7 = vld [vmem:[#allocation6 + $0xde0] sm:$0xff]  ;;  %v529_v8 = vld [vmem:[#allocation6 + $0xda8] sm:$0xff] }
 0x275   :  { %v537_v9 = vld [vmem:[#allocation6 + $0xde8] sm:$0xff]  ;;  %v8962_v13 = vcombine.high %v528_v6, %v536_v7  ;;  %v8961_v20 = vcombine.low %v528_v6, %v536_v7 }
 0x276   :  { %v8964_v14 = vcombine.high %v529_v8, %v537_v9  ;;  %v8963_v21 = vcombine.low %v529_v8, %v537_v9 }
 0x277   :  { %6386 = vmatpush1.bf16.msra.mxu0 %v8849_v16  ;;  %6550 = vmatpush1.bf16.msra.mxu1 %v8851_v17  ;;  %v544_v16 = vld [vmem:[#allocation6 + $0xe20] sm:$0xff] }
 0x278   :  { %6387 = vmatprep.subr.bf16.mxu0 %v8866_v18  ;;  %6551 = vmatprep.subr.bf16.mxu1 %v8868_v19  ;;  %v552_v17 = vld [vmem:[#allocation6 + $0xe60] sm:$0xff]  ;;  %v545_v18 = vld [vmem:[#allocation6 + $0xe28] sm:$0xff] }
 0x279   :  { %v553_v19 = vld [vmem:[#allocation6 + $0xe68] sm:$0xff]  ;;  %v8978_v22 = vcombine.high %v544_v16, %v552_v17  ;;  %v8977_v30 = vcombine.low %v544_v16, %v552_v17 }
 0x27a   :  { %v8980_v23 = vcombine.high %v545_v18, %v553_v19  ;;  %v8979_v31 = vcombine.low %v545_v18, %v553_v19 }
 0x27b   :  { %6388 = vmatpush1.bf16.msra.mxu0 %v8865_v26  ;;  %6552 = vmatpush1.bf16.msra.mxu1 %v8867_v27  ;;  %v560_v26 = vld [vmem:[#allocation6 + $0xea0] sm:$0xff] }
 0x27c   :  { %6389 = vmatprep.subr.bf16.mxu0 %v8882_v28  ;;  %6553 = vmatprep.subr.bf16.mxu1 %v8884_v29  ;;  %v568_v27 = vld [vmem:[#allocation6 + $0xee0] sm:$0xff]  ;;  %v561_v28 = vld [vmem:[#allocation6 + $0xea8] sm:$0xff] }
 0x27d   :  { %v569_v29 = vld [vmem:[#allocation6 + $0xee8] sm:$0xff]  ;;  %v8994_v32 = vcombine.high %v560_v26, %v568_v27  ;;  %v8993_v44 = vcombine.low %v560_v26, %v568_v27 }
 0x27e   :  { %v8996_v15 = vcombine.high %v561_v28, %v569_v29  ;;  %v8995_v45 = vcombine.low %v561_v28, %v569_v29 }
 0x27f   :  { %6390 = vmatpush1.bf16.msra.mxu0 %v8881_v35  ;;  %6554 = vmatpush1.bf16.msra.mxu1 %v8883_v36  ;;  %v576_v35 = vld [vmem:[#allocation6 + $0xf20] sm:$0xff] }
 0x280   :  { %6391 = vmatprep.subr.bf16.mxu0 %v8898_v41  ;;  %6555 = vmatprep.subr.bf16.mxu1 %v8900_v42  ;;  %v584_v36 = vld [vmem:[#allocation6 + $0xf60] sm:$0xff]  ;;  %v577_v41 = vld [vmem:[#allocation6 + $0xf28] sm:$0xff] }
 0x281   :  { %v585_v42 = vld [vmem:[#allocation6 + $0xf68] sm:$0xff]  ;;  %v9010_v47 = vcombine.high %v576_v35, %v584_v36  ;;  %v9009_v52 = vcombine.low %v576_v35, %v584_v36 }
 0x282   :  { %v9012_v48 = vcombine.high %v577_v41, %v585_v42  ;;  %v9011_v54 = vcombine.low %v577_v41, %v585_v42 }
 0x283   :  { %6392 = vmatpush1.bf16.msra.mxu0 %v8897_v24  ;;  %6556 = vmatpush1.bf16.msra.mxu1 %v8899_v49  ;;  %v592_v24 = vld [vmem:[#allocation6 + $0xfa0] sm:$0xff] }
 0x284   :  { %6393 = vmatprep.subr.bf16.mxu0 %v8914_v50  ;;  %6557 = vmatprep.subr.bf16.mxu1 %v8916_v51  ;;  %v600_v49 = vld [vmem:[#allocation6 + $0xfe0] sm:$0xff]  ;;  %v593_v50 = vld [vmem:[#allocation6 + $0xfa8] sm:$0xff] }
 0x285   :  { %v601_v51 = vld [vmem:[#allocation6 + $0xfe8] sm:$0xff]  ;;  %v9026_v56 = vcombine.high %v592_v24, %v600_v49  ;;  %v9025_v63 = vcombine.low %v592_v24, %v600_v49 }
 0x286   :  { %v9028_v58 = vcombine.high %v593_v50, %v601_v51  ;;  %v9027_v0 = vcombine.low %v593_v50, %v601_v51 }
 0x287   :  { %6394 = vmatpush1.bf16.msra.mxu0 %v8913_v59  ;;  %6558 = vmatpush1.bf16.msra.mxu1 %v8915_v60  ;;  %v608_v59 = vld [vmem:[#allocation6 + $0x1020] sm:$0xff] }
 0x288   :  { %6395 = vmatprep.subr.bf16.mxu0 %v8930_v61  ;;  %6559 = vmatprep.subr.bf16.mxu1 %v8932_v62  ;;  %v616_v60 = vld [vmem:[#allocation6 + $0x1060] sm:$0xff]  ;;  %v609_v61 = vld [vmem:[#allocation6 + $0x1028] sm:$0xff] }
 0x289   :  { %v617_v62 = vld [vmem:[#allocation6 + $0x1068] sm:$0xff]  ;;  %v9042_v1 = vcombine.high %v608_v59, %v616_v60  ;;  %v9041_v6 = vcombine.low %v608_v59, %v616_v60 }
 0x28a   :  { %v9044_v2 = vcombine.high %v609_v61, %v617_v62  ;;  %v9043_v7 = vcombine.low %v609_v61, %v617_v62 }
 0x28b   :  { %6396 = vmatpush1.bf16.msra.mxu0 %v8929_v38  ;;  %6560 = vmatpush1.bf16.msra.mxu1 %v8931_v3  ;;  %v624_v38 = vld [vmem:[#allocation6 + $0x10a0] sm:$0xff] }
 0x28c   :  { %6397 = vmatprep.subr.bf16.mxu0 %v8946_v4  ;;  %6561 = vmatprep.subr.bf16.mxu1 %v8948_v5  ;;  %v632_v3 = vld [vmem:[#allocation6 + $0x10e0] sm:$0xff]  ;;  %v625_v4 = vld [vmem:[#allocation6 + $0x10a8] sm:$0xff] }
 0x28d   :  { %v633_v5 = vld [vmem:[#allocation6 + $0x10e8] sm:$0xff]  ;;  %v9058_v8 = vcombine.high %v624_v38, %v632_v3  ;;  %v9057_v16 = vcombine.low %v624_v38, %v632_v3 }
 0x28e   :  { %v9060_v9 = vcombine.high %v625_v4, %v633_v5  ;;  %v9059_v17 = vcombine.low %v625_v4, %v633_v5 }
 0x28f   :  { %6398 = vmatpush1.bf16.msra.mxu0 %v8945_v10  ;;  %6562 = vmatpush1.bf16.msra.mxu1 %v8947_v11  ;;  %v640_v10 = vld [vmem:[#allocation6 + $0x1120] sm:$0xff] }
 0x290   :  { %6399 = vmatprep.subr.bf16.mxu0 %v8962_v13  ;;  %6563 = vmatprep.subr.bf16.mxu1 %v8964_v14  ;;  %v648_v11 = vld [vmem:[#allocation6 + $0x1160] sm:$0xff]  ;;  %v641_v13 = vld [vmem:[#allocation6 + $0x1128] sm:$0xff] }
 0x291   :  { %v649_v14 = vld [vmem:[#allocation6 + $0x1168] sm:$0xff]  ;;  %v9074_v18 = vcombine.high %v640_v10, %v648_v11  ;;  %v9073_v26 = vcombine.low %v640_v10, %v648_v11 }
 0x292   :  { %v9076_v19 = vcombine.high %v641_v13, %v649_v14  ;;  %v9075_v27 = vcombine.low %v641_v13, %v649_v14 }
 0x293   :  { %6400 = vmatpush1.bf16.msra.mxu0 %v8961_v20  ;;  %6564 = vmatpush1.bf16.msra.mxu1 %v8963_v21  ;;  %v656_v20 = vld [vmem:[#allocation6 + $0x11a0] sm:$0xff] }
 0x294   :  { %6401 = vmatprep.subr.bf16.mxu0 %v8978_v22  ;;  %6565 = vmatprep.subr.bf16.mxu1 %v8980_v23  ;;  %v664_v21 = vld [vmem:[#allocation6 + $0x11e0] sm:$0xff]  ;;  %v657_v22 = vld [vmem:[#allocation6 + $0x11a8] sm:$0xff] }
 0x295   :  { %v665_v23 = vld [vmem:[#allocation6 + $0x11e8] sm:$0xff]  ;;  %v9090_v28 = vcombine.high %v656_v20, %v664_v21  ;;  %v9089_v35 = vcombine.low %v656_v20, %v664_v21 }
 0x296   :  { %v9092_v29 = vcombine.high %v657_v22, %v665_v23  ;;  %v9091_v36 = vcombine.low %v657_v22, %v665_v23 }
 0x297   :  { %6402 = vmatpush1.bf16.msra.mxu0 %v8977_v30  ;;  %6566 = vmatpush1.bf16.msra.mxu1 %v8979_v31  ;;  %v672_v30 = vld [vmem:[#allocation6 + $0x1220] sm:$0xff] }
 0x298   :  { %6403 = vmatprep.subr.bf16.mxu0 %v8994_v32  ;;  %6567 = vmatprep.subr.bf16.mxu1 %v8996_v15  ;;  %v680_v31 = vld [vmem:[#allocation6 + $0x1260] sm:$0xff]  ;;  %v673_v32 = vld [vmem:[#allocation6 + $0x1228] sm:$0xff] }
 0x299   :  { %v681_v15 = vld [vmem:[#allocation6 + $0x1268] sm:$0xff]  ;;  %v9106_v41 = vcombine.high %v672_v30, %v680_v31  ;;  %v9105_v24 = vcombine.low %v672_v30, %v680_v31 }
 0x29a   :  { %v9108_v42 = vcombine.high %v673_v32, %v681_v15  ;;  %v9107_v49 = vcombine.low %v673_v32, %v681_v15 }
 0x29b   :  { %6404 = vmatpush1.bf16.msra.mxu0 %v8993_v44  ;;  %6568 = vmatpush1.bf16.msra.mxu1 %v8995_v45  ;;  %v688_v44 = vld [vmem:[#allocation6 + $0x12a0] sm:$0xff] }
 0x29c   :  { %6405 = vmatprep.subr.bf16.mxu0 %v9010_v47  ;;  %6569 = vmatprep.subr.bf16.mxu1 %v9012_v48  ;;  %v696_v45 = vld [vmem:[#allocation6 + $0x12e0] sm:$0xff]  ;;  %v689_v47 = vld [vmem:[#allocation6 + $0x12a8] sm:$0xff] }
 0x29d   :  { %v697_v48 = vld [vmem:[#allocation6 + $0x12e8] sm:$0xff]  ;;  %v9122_v50 = vcombine.high %v688_v44, %v696_v45  ;;  %v9121_v59 = vcombine.low %v688_v44, %v696_v45 }
 0x29e   :  { %v9124_v51 = vcombine.high %v689_v47, %v697_v48  ;;  %v9123_v60 = vcombine.low %v689_v47, %v697_v48 }
 0x29f   :  { %6406 = vmatpush1.bf16.msra.mxu0 %v9009_v52  ;;  %6570 = vmatpush1.bf16.msra.mxu1 %v9011_v54  ;;  %v704_v52 = vld [vmem:[#allocation6 + $0x1320] sm:$0xff] }
 0x2a0   :  { %6407 = vmatprep.subr.bf16.mxu0 %v9026_v56  ;;  %6571 = vmatprep.subr.bf16.mxu1 %v9028_v58  ;;  %v712_v54 = vld [vmem:[#allocation6 + $0x1360] sm:$0xff]  ;;  %v705_v56 = vld [vmem:[#allocation6 + $0x1328] sm:$0xff] }
 0x2a1   :  { %v713_v58 = vld [vmem:[#allocation6 + $0x1368] sm:$0xff]  ;;  %v9138_v61 = vcombine.high %v704_v52, %v712_v54  ;;  %v9137_v38 = vcombine.low %v704_v52, %v712_v54 }
 0x2a2   :  { %v9140_v62 = vcombine.high %v705_v56, %v713_v58  ;;  %v9139_v3 = vcombine.low %v705_v56, %v713_v58 }
 0x2a3   :  { %6408 = vmatpush1.bf16.msra.mxu0 %v9025_v63  ;;  %6572 = vmatpush1.bf16.msra.mxu1 %v9027_v0  ;;  %v720_v63 = vld [vmem:[#allocation6 + $0x13a0] sm:$0xff] }
 0x2a4   :  { %6418 = vmatprep.subr.bf16.mxu0 %v9042_v1  ;;  %6582 = vmatprep.subr.bf16.mxu1 %v9044_v2  ;;  %v728_v0 = vld [vmem:[#allocation6 + $0x13e0] sm:$0xff]  ;;  %v721_v1 = vld [vmem:[#allocation6 + $0x13a8] sm:$0xff] }
 0x2a5   :  { %v729_v2 = vld [vmem:[#allocation6 + $0x13e8] sm:$0xff]  ;;  %v9154_v4 = vcombine.high %v720_v63, %v728_v0  ;;  %v9153_v10 = vcombine.low %v720_v63, %v728_v0 }
 0x2a6   :  { %6410 = vmatmul.mubr.bf16.vlgmr.msra.gmra.mrb[8].mxu0 %v10340_v25  ;;  %6574 = vmatmul.mubr.bf16.vlgmr.msra.gmra.mrb[8].mxu1 %v10340_v25  ;;  %v9156_v5 = vcombine.high %v721_v1, %v729_v2  ;;  %v9155_v11 = vcombine.low %v721_v1, %v729_v2 }
 0x2a7   :  { %6419 = vmatpush1.bf16.msra.mxu0 %v9041_v6  ;;  %6583 = vmatpush1.bf16.msra.mxu1 %v9043_v7  ;;  %v736_v6 = vld [vmem:[#allocation6 + $0x1420] sm:$0xff] }
 0x2a8   :  { %6420 = vmatprep.subr.bf16.mxu0 %v9058_v8  ;;  %6584 = vmatprep.subr.bf16.mxu1 %v9060_v9  ;;  %v744_v7 = vld [vmem:[#allocation6 + $0x1460] sm:$0xff]  ;;  %v737_v8 = vld [vmem:[#allocation6 + $0x1428] sm:$0xff] }
 0x2a9   :  { %6450 = vmatprep.mubr.bf16.mxu0 %v10344_v34  ;;  %6614 = vmatprep.mubr.bf16.mxu1 %v10344_v34  ;;  %v745_v9 = vld [vmem:[#allocation6 + $0x1468] sm:$0xff]  ;;  %v9170_v13 = vcombine.high %v736_v6, %v744_v7  ;;  %v9169_v20 = vcombine.low %v736_v6, %v744_v7 }
 0x2aa   :  { %v9172_v14 = vcombine.high %v737_v8, %v745_v9  ;;  %v9171_v21 = vcombine.low %v737_v8, %v745_v9 }
 0x2ab   :  { %6421 = vmatpush1.bf16.msra.mxu0 %v9057_v16  ;;  %6585 = vmatpush1.bf16.msra.mxu1 %v9059_v17  ;;  %v752_v16 = vld [vmem:[#allocation6 + $0x14a0] sm:$0xff] }
 0x2ac   :  { %6422 = vmatprep.subr.bf16.mxu0 %v9074_v18  ;;  %6586 = vmatprep.subr.bf16.mxu1 %v9076_v19  ;;  %v760_v17 = vld [vmem:[#allocation6 + $0x14e0] sm:$0xff]  ;;  %v753_v18 = vld [vmem:[#allocation6 + $0x14a8] sm:$0xff] }
 0x2ad   :  { %v761_v19 = vld [vmem:[#allocation6 + $0x14e8] sm:$0xff]  ;;  %v9186_v22 = vcombine.high %v752_v16, %v760_v17  ;;  %v9185_v30 = vcombine.low %v752_v16, %v760_v17 }
 0x2ae   :  { %v9188_v23 = vcombine.high %v753_v18, %v761_v19  ;;  %v9187_v31 = vcombine.low %v753_v18, %v761_v19 }
 0x2af   :  { %6423 = vmatpush1.bf16.msra.mxu0 %v9073_v26  ;;  %6587 = vmatpush1.bf16.msra.mxu1 %v9075_v27  ;;  %v768_v26 = vld [vmem:[#allocation6 + $0x1520] sm:$0xff] }
 0x2b0   :  { %6424 = vmatprep.subr.bf16.mxu0 %v9090_v28  ;;  %6588 = vmatprep.subr.bf16.mxu1 %v9092_v29  ;;  %v776_v27 = vld [vmem:[#allocation6 + $0x1560] sm:$0xff]  ;;  %v769_v28 = vld [vmem:[#allocation6 + $0x1528] sm:$0xff] }
 0x2b1   :  { %v777_v29 = vld [vmem:[#allocation6 + $0x1568] sm:$0xff]  ;;  %v9202_v32 = vcombine.high %v768_v26, %v776_v27  ;;  %v9201_v44 = vcombine.low %v768_v26, %v776_v27 }
 0x2b2   :  { %v9204_v15 = vcombine.high %v769_v28, %v777_v29  ;;  %v9203_v45 = vcombine.low %v769_v28, %v777_v29 }
 0x2b3   :  { %6425 = vmatpush1.bf16.msra.mxu0 %v9089_v35  ;;  %6589 = vmatpush1.bf16.msra.mxu1 %v9091_v36  ;;  %v784_v35 = vld [vmem:[#allocation6 + $0x15a0] sm:$0xff] }
 0x2b4   :  { %6426 = vmatprep.subr.bf16.mxu0 %v9106_v41  ;;  %6590 = vmatprep.subr.bf16.mxu1 %v9108_v42  ;;  %v792_v36 = vld [vmem:[#allocation6 + $0x15e0] sm:$0xff]  ;;  %v785_v41 = vld [vmem:[#allocation6 + $0x15a8] sm:$0xff] }
 0x2b5   :  { %v793_v42 = vld [vmem:[#allocation6 + $0x15e8] sm:$0xff]  ;;  %v9218_v47 = vcombine.high %v784_v35, %v792_v36  ;;  %v9217_v52 = vcombine.low %v784_v35, %v792_v36 }
 0x2b6   :  { %v9220_v48 = vcombine.high %v785_v41, %v793_v42  ;;  %v9219_v54 = vcombine.low %v785_v41, %v793_v42 }
 0x2b7   :  { %6427 = vmatpush1.bf16.msra.mxu0 %v9105_v24  ;;  %6591 = vmatpush1.bf16.msra.mxu1 %v9107_v49  ;;  %v800_v24 = vld [vmem:[#allocation6 + $0x1620] sm:$0xff] }
 0x2b8   :  { %6428 = vmatprep.subr.bf16.mxu0 %v9122_v50  ;;  %6592 = vmatprep.subr.bf16.mxu1 %v9124_v51  ;;  %v808_v49 = vld [vmem:[#allocation6 + $0x1660] sm:$0xff]  ;;  %v801_v50 = vld [vmem:[#allocation6 + $0x1628] sm:$0xff] }
 0x2b9   :  { %v809_v51 = vld [vmem:[#allocation6 + $0x1668] sm:$0xff]  ;;  %v9234_v56 = vcombine.high %v800_v24, %v808_v49  ;;  %v9233_v63 = vcombine.low %v800_v24, %v808_v49 }
 0x2ba   :  { %v9236_v58 = vcombine.high %v801_v50, %v809_v51  ;;  %v9235_v0 = vcombine.low %v801_v50, %v809_v51 }
 0x2bb   :  { %6429 = vmatpush1.bf16.msra.mxu0 %v9121_v59  ;;  %6593 = vmatpush1.bf16.msra.mxu1 %v9123_v60  ;;  %v816_v59 = vld [vmem:[#allocation6 + $0x16a0] sm:$0xff] }
 0x2bc   :  { %6430 = vmatprep.subr.bf16.mxu0 %v9138_v61  ;;  %6594 = vmatprep.subr.bf16.mxu1 %v9140_v62  ;;  %v824_v60 = vld [vmem:[#allocation6 + $0x16e0] sm:$0xff]  ;;  %v817_v61 = vld [vmem:[#allocation6 + $0x16a8] sm:$0xff] }
 0x2bd   :  { %v825_v62 = vld [vmem:[#allocation6 + $0x16e8] sm:$0xff]  ;;  %v9250_v1 = vcombine.high %v816_v59, %v824_v60  ;;  %v9249_v6 = vcombine.low %v816_v59, %v824_v60 }
 0x2be   :  { %v9252_v2 = vcombine.high %v817_v61, %v825_v62  ;;  %v9251_v7 = vcombine.low %v817_v61, %v825_v62 }
 0x2bf   :  { %6431 = vmatpush1.bf16.msra.mxu0 %v9137_v38  ;;  %6595 = vmatpush1.bf16.msra.mxu1 %v9139_v3  ;;  %v832_v38 = vld [vmem:[#allocation6 + $0x1720] sm:$0xff] }
 0x2c0   :  { %6432 = vmatprep.subr.bf16.mxu0 %v9154_v4  ;;  %6596 = vmatprep.subr.bf16.mxu1 %v9156_v5  ;;  %v840_v3 = vld [vmem:[#allocation6 + $0x1760] sm:$0xff]  ;;  %v833_v4 = vld [vmem:[#allocation6 + $0x1728] sm:$0xff] }
 0x2c1   :  { %v841_v5 = vld [vmem:[#allocation6 + $0x1768] sm:$0xff]  ;;  %v9266_v8 = vcombine.high %v832_v38, %v840_v3  ;;  %v9265_v16 = vcombine.low %v832_v38, %v840_v3 }
 0x2c2   :  { %v9268_v9 = vcombine.high %v833_v4, %v841_v5  ;;  %v9267_v17 = vcombine.low %v833_v4, %v841_v5 }
 0x2c3   :  { %6433 = vmatpush1.bf16.msra.mxu0 %v9153_v10  ;;  %6597 = vmatpush1.bf16.msra.mxu1 %v9155_v11  ;;  %v848_v10 = vld [vmem:[#allocation6 + $0x17a0] sm:$0xff] }
 0x2c4   :  { %6434 = vmatprep.subr.bf16.mxu0 %v9170_v13  ;;  %6598 = vmatprep.subr.bf16.mxu1 %v9172_v14  ;;  %v856_v11 = vld [vmem:[#allocation6 + $0x17e0] sm:$0xff]  ;;  %v849_v13 = vld [vmem:[#allocation6 + $0x17a8] sm:$0xff] }
 0x2c5   :  { %v857_v14 = vld [vmem:[#allocation6 + $0x17e8] sm:$0xff]  ;;  %v9282_v18 = vcombine.high %v848_v10, %v856_v11  ;;  %v9281_v26 = vcombine.low %v848_v10, %v856_v11 }
 0x2c6   :  { %v9284_v19 = vcombine.high %v849_v13, %v857_v14  ;;  %v9283_v27 = vcombine.low %v849_v13, %v857_v14 }
 0x2c7   :  { %6435 = vmatpush1.bf16.msra.mxu0 %v9169_v20  ;;  %6599 = vmatpush1.bf16.msra.mxu1 %v9171_v21  ;;  %v864_v20 = vld [vmem:[#allocation6 + $0x1820] sm:$0xff] }
 0x2c8   :  { %6436 = vmatprep.subr.bf16.mxu0 %v9186_v22  ;;  %6600 = vmatprep.subr.bf16.mxu1 %v9188_v23  ;;  %v872_v21 = vld [vmem:[#allocation6 + $0x1860] sm:$0xff]  ;;  %v865_v22 = vld [vmem:[#allocation6 + $0x1828] sm:$0xff] }
 0x2c9   :  { %v873_v23 = vld [vmem:[#allocation6 + $0x1868] sm:$0xff]  ;;  %v9298_v28 = vcombine.high %v864_v20, %v872_v21  ;;  %v9297_v35 = vcombine.low %v864_v20, %v872_v21 }
 0x2ca   :  { %v9300_v29 = vcombine.high %v865_v22, %v873_v23  ;;  %v9299_v36 = vcombine.low %v865_v22, %v873_v23 }
 0x2cb   :  { %6437 = vmatpush1.bf16.msra.mxu0 %v9185_v30  ;;  %6601 = vmatpush1.bf16.msra.mxu1 %v9187_v31  ;;  %v880_v30 = vld [vmem:[#allocation6 + $0x18a0] sm:$0xff] }
 0x2cc   :  { %6438 = vmatprep.subr.bf16.mxu0 %v9202_v32  ;;  %6602 = vmatprep.subr.bf16.mxu1 %v9204_v15  ;;  %v888_v31 = vld [vmem:[#allocation6 + $0x18e0] sm:$0xff]  ;;  %v881_v32 = vld [vmem:[#allocation6 + $0x18a8] sm:$0xff] }
 0x2cd   :  { %v889_v15 = vld [vmem:[#allocation6 + $0x18e8] sm:$0xff]  ;;  %v9314_v41 = vcombine.high %v880_v30, %v888_v31  ;;  %v9313_v24 = vcombine.low %v880_v30, %v888_v31 }
 0x2ce   :  { %v9316_v42 = vcombine.high %v881_v32, %v889_v15  ;;  %v9315_v49 = vcombine.low %v881_v32, %v889_v15  ;;  %v977_v31 = vld [vmem:[#allocation6 + $0x1ba8] sm:$0xff] }
 0x2cf   :  { %6439 = vmatpush1.bf16.msra.mxu0 %v9201_v44  ;;  %6603 = vmatpush1.bf16.msra.mxu1 %v9203_v45  ;;  %v896_v44 = vld [vmem:[#allocation6 + $0x1920] sm:$0xff]  ;;  %v985_v32 = vld [vmem:[#allocation6 + $0x1be8] sm:$0xff] }
 0x2d0   :  { %6440 = vmatprep.subr.bf16.mxu0 %v9218_v47  ;;  %6604 = vmatprep.subr.bf16.mxu1 %v9220_v48  ;;  %v904_v45 = vld [vmem:[#allocation6 + $0x1960] sm:$0xff]  ;;  %v897_v47 = vld [vmem:[#allocation6 + $0x1928] sm:$0xff] }
 0x2d1   :  { %v905_v48 = vld [vmem:[#allocation6 + $0x1968] sm:$0xff]  ;;  %v9330_v50 = vcombine.high %v896_v44, %v904_v45  ;;  %v9329_v59 = vcombine.low %v896_v44, %v904_v45 }
 0x2d2   :  { %v9332_v51 = vcombine.high %v897_v47, %v905_v48  ;;  %v9331_v60 = vcombine.low %v897_v47, %v905_v48  ;;  %v9412_v48 = vcombine.high %v977_v31, %v985_v32 }
 0x2d3   :  { %6441 = vmatpush1.bf16.msra.mxu0 %v9217_v52  ;;  %6605 = vmatpush1.bf16.msra.mxu1 %v9219_v54  ;;  %v912_v52 = vld [vmem:[#allocation6 + $0x19a0] sm:$0xff] }
 0x2d4   :  { %6442 = vmatprep.subr.bf16.mxu0 %v9234_v56  ;;  %6606 = vmatprep.subr.bf16.mxu1 %v9236_v58  ;;  %v920_v54 = vld [vmem:[#allocation6 + $0x19e0] sm:$0xff]  ;;  %v913_v56 = vld [vmem:[#allocation6 + $0x19a8] sm:$0xff] }
 0x2d5   :  { %v921_v58 = vld [vmem:[#allocation6 + $0x19e8] sm:$0xff]  ;;  %v9346_v61 = vcombine.high %v912_v52, %v920_v54  ;;  %v9345_v38 = vcombine.low %v912_v52, %v920_v54 }
 0x2d6   :  { %v9348_v62 = vcombine.high %v913_v56, %v921_v58  ;;  %v9347_v3 = vcombine.low %v913_v56, %v921_v58 }
 0x2d7   :  { %6443 = vmatpush1.bf16.msra.mxu0 %v9233_v63  ;;  %6607 = vmatpush1.bf16.msra.mxu1 %v9235_v0  ;;  %v928_v63 = vld [vmem:[#allocation6 + $0x1a20] sm:$0xff] }
 0x2d8   :  { %6444 = vmatprep.subr.bf16.mxu0 %v9250_v1  ;;  %6608 = vmatprep.subr.bf16.mxu1 %v9252_v2  ;;  %v936_v0 = vld [vmem:[#allocation6 + $0x1a60] sm:$0xff]  ;;  %v929_v1 = vld [vmem:[#allocation6 + $0x1a28] sm:$0xff] }
 0x2d9   :  { %v937_v2 = vld [vmem:[#allocation6 + $0x1a68] sm:$0xff]  ;;  %v9362_v4 = vcombine.high %v928_v63, %v936_v0  ;;  %v9361_v10 = vcombine.low %v928_v63, %v936_v0 }
 0x2da   :  { %v9364_v5 = vcombine.high %v929_v1, %v937_v2  ;;  %v9363_v11 = vcombine.low %v929_v1, %v937_v2 }
 0x2db   :  { %6445 = vmatpush1.bf16.msra.mxu0 %v9249_v6  ;;  %6609 = vmatpush1.bf16.msra.mxu1 %v9251_v7  ;;  %v944_v6 = vld [vmem:[#allocation6 + $0x1aa0] sm:$0xff] }
 0x2dc   :  { %6446 = vmatprep.subr.bf16.mxu0 %v9266_v8  ;;  %6610 = vmatprep.subr.bf16.mxu1 %v9268_v9  ;;  %v952_v7 = vld [vmem:[#allocation6 + $0x1ae0] sm:$0xff]  ;;  %v945_v8 = vld [vmem:[#allocation6 + $0x1aa8] sm:$0xff] }
 0x2dd   :  { %v953_v9 = vld [vmem:[#allocation6 + $0x1ae8] sm:$0xff]  ;;  %v9378_v13 = vcombine.high %v944_v6, %v952_v7  ;;  %v9377_v20 = vcombine.low %v944_v6, %v952_v7 }
 0x2de   :  { %v9380_v14 = vcombine.high %v945_v8, %v953_v9  ;;  %v9379_v21 = vcombine.low %v945_v8, %v953_v9 }
 0x2df   :  { %6447 = vmatpush1.bf16.msra.mxu0 %v9265_v16  ;;  %6611 = vmatpush1.bf16.msra.mxu1 %v9267_v17  ;;  %v960_v16 = vld [vmem:[#allocation6 + $0x1b20] sm:$0xff] }
 0x2e0   :  { %6448 = vmatprep.subr.bf16.mxu0 %v9282_v18  ;;  %6612 = vmatprep.subr.bf16.mxu1 %v9284_v19  ;;  %v968_v17 = vld [vmem:[#allocation6 + $0x1b60] sm:$0xff]  ;;  %v961_v18 = vld [vmem:[#allocation6 + $0x1b28] sm:$0xff] }
 0x2e1   :  { %v969_v19 = vld [vmem:[#allocation6 + $0x1b68] sm:$0xff]  ;;  %v9394_v22 = vcombine.high %v960_v16, %v968_v17 }
 0x2e2   :  { %v9395_v44 = vcombine.low %v961_v18, %v969_v19 }
 0x2e3   :  { %6449 = vmatpush1.bf16.msra.mxu0 %v9281_v26  ;;  %6613 = vmatpush1.bf16.msra.mxu1 %v9283_v27  ;;  %v9396_v26 = vcombine.high %v961_v18, %v969_v19  ;;  %v976_v27 = vld [vmem:[#allocation6 + $0x1ba0] sm:$0xff] }
 0x2e4   :  { %6459 = vmatprep.subr.bf16.mxu0 %v9298_v28  ;;  %6623 = vmatprep.subr.bf16.mxu1 %v9300_v29  ;;  %v984_v28 = vld [vmem:[#allocation6 + $0x1be0] sm:$0xff] }
 0x2e5   :  { %v9410_v45 = vcombine.high %v976_v27, %v984_v28 }
 0x2e6   :  { %6451 = vmatmul.mubr.bf16.vlgmr.msra.gmra.mrb[8].mxu0 %v10354_v39  ;;  %6615 = vmatmul.mubr.bf16.vlgmr.msra.gmra.mrb[8].mxu1 %v10354_v39 }
 0x2e7   :  { %6460 = vmatpush1.bf16.msra.mxu0 %v9297_v35  ;;  %6624 = vmatpush1.bf16.msra.mxu1 %v9299_v36  ;;  %v9393_v36 = vcombine.low %v960_v16, %v968_v17 }
 0x2e8   :  { %6461 = vmatprep.subr.bf16.mxu0 %v9314_v41  ;;  %6625 = vmatprep.subr.bf16.mxu1 %v9316_v42 }
 0x2e9   :  { %9442 = vmatprep.mubr.msk.bf16.mxu0 %vm5627_vm0, %v10358_v46  ;;  %9444 = vmatprep.mubr.msk.bf16.mxu1 %vm5627_vm0, %v10358_v46 }
 0x2eb   :  { %6462 = vmatpush1.bf16.msra.mxu0 %v9313_v24  ;;  %6626 = vmatpush1.bf16.msra.mxu1 %v9315_v49  ;;  %v992_v24 = vld [vmem:[#allocation6 + $0x1c20] sm:$0x33]  ;;  %v993_v49 = vld [vmem:[#allocation6 + $0x1c28] sm:$0x33] }
 0x2ec   :  { %6463 = vmatprep.subr.bf16.mxu0 %v9330_v50  ;;  %6627 = vmatprep.subr.bf16.mxu1 %v9332_v51  ;;  %v9409_v50 = vcombine.low %v976_v27, %v984_v28  ;;  %v9411_v51 = vcombine.low %v977_v31, %v985_v32  ;;  %v9426_v52 = vcombine.high %v992_v24, %v992_v24 }
 0x2ed   :  { %v9425_v54 = vcombine.low %v992_v24, %v992_v24  ;;  %v9428_v56 = vcombine.high %v993_v49, %v993_v49  ;;  %v9427_v58 = vcombine.low %v993_v49, %v993_v49  ;;  %v186_v24 = vld [vmem:[#allocation6 + $0x2f0] sm:$0xff]  ;;  %v179_v49 = vld [vmem:[#allocation6 + $0x2b8] sm:$0xff] }
 0x2ef   :  { %6464 = vmatpush1.bf16.msra.mxu0 %v9329_v59  ;;  %6628 = vmatpush1.bf16.msra.mxu1 %v9331_v60  ;;  %v98_v59 = vld [vmem:[#allocation6 + $0x30] sm:$0xff]  ;;  %v5657_v63 = vsel %vm5631_vm1, %v9425_v54, 0  ;;  %v5663_v1 = vsel %vm5631_vm1, %v9427_v58, 0 }
 0x2f0   :  { %6465 = vmatprep.subr.bf16.mxu0 %v9346_v61  ;;  %6629 = vmatprep.subr.bf16.mxu1 %v9348_v62  ;;  %v106_v60 = vld [vmem:[#allocation6 + $0x70] sm:$0xff]  ;;  %v99_v61 = vld [vmem:[#allocation6 + $0x38] sm:$0xff] }
 0x2f1   :  { %v107_v62 = vld [vmem:[#allocation6 + $0x78] sm:$0xff]  ;;  %v8534_v0 = vcombine.high %v98_v59, %v106_v60  ;;  %v8533_v6 = vcombine.low %v98_v59, %v106_v60  ;;  %v194_v58 = vld [vmem:[#allocation6 + $0x330] sm:$0xff] }
 0x2f2   :  { %v8536_v2 = vcombine.high %v99_v61, %v107_v62  ;;  %v8535_v7 = vcombine.low %v99_v61, %v107_v62  ;;  %v202_v59 = vld [vmem:[#allocation6 + $0x370] sm:$0xff]  ;;  %v195_v60 = vld [vmem:[#allocation6 + $0x338] sm:$0xff] }
 0x2f3   :  { %6466 = vmatpush1.bf16.msra.mxu0 %v9345_v38  ;;  %6630 = vmatpush1.bf16.msra.mxu1 %v9347_v3  ;;  %v114_v38 = vld [vmem:[#allocation6 + $0xb0] sm:$0xff]  ;;  %v203_v61 = vld [vmem:[#allocation6 + $0x378] sm:$0xff] }
 0x2f4   :  { %6467 = vmatprep.subr.bf16.mxu0 %v9362_v4  ;;  %6631 = vmatprep.subr.bf16.mxu1 %v9364_v5  ;;  %v122_v3 = vld [vmem:[#allocation6 + $0xf0] sm:$0xff]  ;;  %v115_v4 = vld [vmem:[#allocation6 + $0xb8] sm:$0xff] }
 0x2f5   :  { %v123_v5 = vld [vmem:[#allocation6 + $0xf8] sm:$0xff]  ;;  %v8550_v8 = vcombine.high %v114_v38, %v122_v3  ;;  %v8549_v16 = vcombine.low %v114_v38, %v122_v3  ;;  %v218_v38 = vld [vmem:[#allocation6 + $0x3f0] sm:$0xff] }
 0x2f6   :  { %v8552_v9 = vcombine.high %v115_v4, %v123_v5  ;;  %v8551_v17 = vcombine.low %v115_v4, %v123_v5  ;;  %v211_v3 = vld [vmem:[#allocation6 + $0x3b8] sm:$0xff]  ;;  %v8629_v5 = vcombine.low %v194_v58, %v202_v59 }
 0x2f7   :  { %6468 = vmatpush1.bf16.msra.mxu0 %v9361_v10  ;;  %6632 = vmatpush1.bf16.msra.mxu1 %v9363_v11  ;;  %v130_v10 = vld [vmem:[#allocation6 + $0x130] sm:$0xff]  ;;  %v219_v4 = vld [vmem:[#allocation6 + $0x3f8] sm:$0xff] }
 0x2f8   :  { %6469 = vmatprep.subr.bf16.mxu0 %v9378_v13  ;;  %6633 = vmatprep.subr.bf16.mxu1 %v9380_v14  ;;  %v138_v11 = vld [vmem:[#allocation6 + $0x170] sm:$0xff]  ;;  %v131_v13 = vld [vmem:[#allocation6 + $0x138] sm:$0xff] }
 0x2f9   :  { %v10422_v23 = vpop.f32.mrb[4].mxu0  ;;  %v10424_v29 = vpop.f32.mrb[4].mxu1  ;;  %v139_v14 = vld [vmem:[#allocation6 + $0x178] sm:$0xff]  ;;  %v8566_v18 = vcombine.high %v130_v10, %v138_v11  ;;  %v8565_v27 = vcombine.low %v130_v10, %v138_v11  ;;  %v234_v10 = vld [vmem:[#allocation6 + $0x470] sm:$0xff] }
 0x2fa   :  { %v10426_v30 = vpop.f32.mrb[5].mxu0  ;;  %v10428_v15 = vpop.f32.mrb[5].mxu1  ;;  %v8568_v19 = vcombine.high %v131_v13, %v139_v14  ;;  %v8567_v28 = vcombine.low %v131_v13, %v139_v14  ;;  %v227_v11 = vld [vmem:[#allocation6 + $0x438] sm:$0xff] }
 0x2fb   :  { %v6169_v35 = vpop.f32.mrb[6].mxu0  ;;  %6470 = vmatpush1.bf16.msra.mxu0 %v9377_v20  ;;  %v6333_v41 = vpop.f32.mrb[6].mxu1  ;;  %6634 = vmatpush1.bf16.msra.mxu1 %v9379_v21  ;;  %v146_v20 = vld [vmem:[#allocation6 + $0x1b0] sm:$0xff]  ;;  %v235_v13 = vld [vmem:[#allocation6 + $0x478] sm:$0xff] }
 0x2fc   :  { %v6170_v42 = vpop.f32.mrb[7].mxu0  ;;  %6471 = vmatprep.subr.bf16.mxu0 %v9394_v22  ;;  %v6334_v47 = vpop.f32.mrb[7].mxu1  ;;  %6635 = vmatprep.subr.bf16.mxu1 %v9396_v26  ;;  %v154_v21 = vld [vmem:[#allocation6 + $0x1f0] sm:$0xff]  ;;  %v147_v22 = vld [vmem:[#allocation6 + $0x1b8] sm:$0xff] }
 0x2fd   :  { %v155_v26 = vld [vmem:[#allocation6 + $0x1f8] sm:$0xff]  ;;  %v8582_v31 = vcombine.high %v146_v20, %v154_v21  ;;  %v162_v35 = vld [vmem:[#allocation6 + $0x230] sm:$0xff] }
 0x2fe   :  { %v8584_v32 = vcombine.high %v147_v22, %v155_v26  ;;  %v163_v41 = vld [vmem:[#allocation6 + $0x238] sm:$0xff] }
 0x2ff   :  { %6472 = vmatpush1.bf16.msra.mxu0 %v9393_v36  ;;  %6636 = vmatpush1.bf16.msra.mxu1 %v9395_v44  ;;  %v170_v36 = vld [vmem:[#allocation6 + $0x270] sm:$0xff]  ;;  %v171_v42 = vld [vmem:[#allocation6 + $0x278] sm:$0xff]  ;;  %v8581_v44 = vcombine.low %v146_v20, %v154_v21 }
 0x300   :  { %6473 = vmatprep.subr.bf16.mxu0 %v9410_v45  ;;  %6637 = vmatprep.subr.bf16.mxu1 %v9412_v48  ;;  %v8583_v45 = vcombine.low %v147_v22, %v155_v26  ;;  %v8598_v47 = vcombine.high %v162_v35, %v170_v36  ;;  %v178_v48 = vld [vmem:[#allocation6 + $0x2b0] sm:$0xff]  ;;  %v243_v21 = vld [vmem:[#allocation6 + $0x4b8] sm:$0xff] }
 0x301   :  { %v8614_v54 = vcombine.high %v178_v48, %v186_v24  ;;  %v8613_v62 = vcombine.low %v178_v48, %v186_v24  ;;  %v250_v20 = vld [vmem:[#allocation6 + $0x4f0] sm:$0xff]  ;;  %v251_v22 = vld [vmem:[#allocation6 + $0x4f8] sm:$0xff] }
 0x302   :  { %v282_v48 = vld [vmem:[#allocation6 + $0x5f0] sm:$0xff]  ;;  %v275_v24 = vld [vmem:[#allocation6 + $0x5b8] sm:$0xff] }
 0x303   :  { %6474 = vmatpush1.bf16.msra.mxu0 %v9409_v50  ;;  %6638 = vmatpush1.bf16.msra.mxu1 %v9411_v51  ;;  %v187_v50 = vld [vmem:[#allocation6 + $0x2f8] sm:$0xff]  ;;  %v8597_v51 = vcombine.low %v162_v35, %v170_v36  ;;  %v266_v35 = vld [vmem:[#allocation6 + $0x570] sm:$0xff] }
 0x304   :  { %9441 = vmatprep.subr.msk.bf16.mxu0 %vm5631_vm1, %v9426_v52  ;;  %9443 = vmatprep.subr.msk.bf16.mxu1 %vm5631_vm1, %v9428_v56  ;;  %v8599_v52 = vcombine.low %v163_v41, %v171_v42  ;;  %v8616_v56 = vcombine.high %v179_v49, %v187_v50  ;;  %v259_v36 = vld [vmem:[#allocation6 + $0x538] sm:$0xff] }
 0x307   :  { %6476 = vmatpush1.bf16.msra.mxu0 %v5657_v63  ;;  %6640 = vmatpush1.bf16.msra.mxu1 %v5663_v1  ;;  %v8615_v63 = vcombine.low %v179_v49, %v187_v50  ;;  %v8632_v1 = vcombine.high %v195_v60, %v203_v61  ;;  %v283_v49 = vld [vmem:[#allocation6 + $0x5f8] sm:$0xff] }
 0x308   :  { %6664 = vmatprep.subr.bf16.mxu0 %v8534_v0  ;;  %6828 = vmatprep.subr.bf16.mxu1 %v8536_v2  ;;  %v8630_v0 = vcombine.high %v194_v58, %v202_v59  ;;  %v210_v2 = vld [vmem:[#allocation6 + $0x3b0] sm:$0xff]  ;;  %v291_v59 = vld [vmem:[#allocation6 + $0x638] sm:$0xff] }
 0x309   :  { %v8645_v14 = vcombine.low %v210_v2, %v218_v38  ;;  %v298_v58 = vld [vmem:[#allocation6 + $0x670] sm:$0xff] }
 0x30a   :  { %6492 = vmatmul.mubr.bf16.vlgmr.msra.gmra.mrb[8].mxu0 %v10372_v55  ;;  %6656 = vmatmul.mubr.bf16.vlgmr.msra.gmra.mrb[8].mxu1 %v10372_v55 }
 0x30b   :  { %6665 = vmatpush1.bf16.msra.mxu0 %v8533_v6  ;;  %6829 = vmatpush1.bf16.msra.mxu1 %v8535_v7  ;;  %v8631_v6 = vcombine.low %v195_v60, %v203_v61  ;;  %v8646_v7 = vcombine.high %v210_v2, %v218_v38  ;;  %v299_v60 = vld [vmem:[#allocation6 + $0x678] sm:$0xff]  ;;  %v314_v2 = vld [vmem:[#allocation6 + $0x6f0] sm:$0xff] }
 0x30c   :  { %6666 = vmatprep.subr.bf16.mxu0 %v8550_v8  ;;  %6830 = vmatprep.subr.bf16.mxu1 %v8552_v9  ;;  %v8648_v8 = vcombine.high %v211_v3, %v219_v4  ;;  %v226_v9 = vld [vmem:[#allocation6 + $0x430] sm:$0xff]  ;;  %v307_v38 = vld [vmem:[#allocation6 + $0x6b8] sm:$0xff] }
 0x30d   :  { %6696 = vmatprep.mubr.bf16.mxu0 %v10318_v57  ;;  %6860 = vmatprep.mubr.bf16.mxu1 %v10318_v57  ;;  %v8600_v57 = vcombine.high %v163_v41, %v171_v42  ;;  %v8661_v26 = vcombine.low %v226_v9, %v234_v10  ;;  %v267_v41 = vld [vmem:[#allocation6 + $0x578] sm:$0xff] }
 0x30f   :  { %6667 = vmatpush1.bf16.msra.mxu0 %v8549_v16  ;;  %6831 = vmatpush1.bf16.msra.mxu1 %v8551_v17  ;;  %v8647_v16 = vcombine.low %v211_v3, %v219_v4  ;;  %v8662_v17 = vcombine.high %v226_v9, %v234_v10  ;;  %v315_v3 = vld [vmem:[#allocation6 + $0x6f8] sm:$0xff]  ;;  %v330_v9 = vld [vmem:[#allocation6 + $0x770] sm:$0xff] }
 0x310   :  { %6668 = vmatprep.subr.bf16.mxu0 %v8566_v18  ;;  %6832 = vmatprep.subr.bf16.mxu1 %v8568_v19  ;;  %v8664_v18 = vcombine.high %v227_v11, %v235_v13  ;;  %v242_v19 = vld [vmem:[#allocation6 + $0x4b0] sm:$0xff]  ;;  %v323_v10 = vld [vmem:[#allocation6 + $0x738] sm:$0xff] }
 0x311   :  { %v8677_v42 = vcombine.low %v242_v19, %v250_v20 }
 0x313   :  { %6669 = vmatpush1.bf16.msra.mxu0 %v8565_v27  ;;  %6833 = vmatpush1.bf16.msra.mxu1 %v8567_v28  ;;  %v8663_v27 = vcombine.low %v227_v11, %v235_v13  ;;  %v8678_v28 = vcombine.high %v242_v19, %v250_v20  ;;  %v331_v11 = vld [vmem:[#allocation6 + $0x778] sm:$0xff]  ;;  %v346_v19 = vld [vmem:[#allocation6 + $0x7f0] sm:$0xff] }
 0x314   :  { %6670 = vmatprep.subr.bf16.mxu0 %v8582_v31  ;;  %6834 = vmatprep.subr.bf16.mxu1 %v8584_v32  ;;  %v8680_v31 = vcombine.high %v243_v21, %v251_v22  ;;  %v258_v32 = vld [vmem:[#allocation6 + $0x530] sm:$0xff]  ;;  %v339_v20 = vld [vmem:[#allocation6 + $0x7b8] sm:$0xff] }
 0x315   :  { %v8693_v50 = vcombine.low %v258_v32, %v266_v35 }
 0x317   :  { %6671 = vmatpush1.bf16.msra.mxu0 %v8581_v44  ;;  %6835 = vmatpush1.bf16.msra.mxu1 %v8583_v45  ;;  %v8679_v44 = vcombine.low %v243_v21, %v251_v22  ;;  %v8694_v45 = vcombine.high %v258_v32, %v266_v35  ;;  %v347_v21 = vld [vmem:[#allocation6 + $0x7f8] sm:$0xff]  ;;  %v362_v32 = vld [vmem:[#allocation6 + $0x870] sm:$0xff] }
 0x318   :  { %6672 = vmatprep.subr.bf16.mxu0 %v8598_v47  ;;  %6836 = vmatprep.subr.bf16.mxu1 %v8600_v57  ;;  %v8696_v47 = vcombine.high %v259_v36, %v267_v41  ;;  %v274_v57 = vld [vmem:[#allocation6 + $0x5b0] sm:$0xff]  ;;  %v355_v35 = vld [vmem:[#allocation6 + $0x838] sm:$0xff] }
 0x319   :  { %v8709_v61 = vcombine.low %v274_v57, %v282_v48 }
 0x31b   :  { %6673 = vmatpush1.bf16.msra.mxu0 %v8597_v51  ;;  %6837 = vmatpush1.bf16.msra.mxu1 %v8599_v52  ;;  %v8695_v51 = vcombine.low %v259_v36, %v267_v41  ;;  %v8710_v52 = vcombine.high %v274_v57, %v282_v48  ;;  %v363_v36 = vld [vmem:[#allocation6 + $0x878] sm:$0xff]  ;;  %v378_v57 = vld [vmem:[#allocation6 + $0x8f0] sm:$0xff] }
 0x31c   :  { %6674 = vmatprep.subr.bf16.mxu0 %v8614_v54  ;;  %6838 = vmatprep.subr.bf16.mxu1 %v8616_v56  ;;  %v8712_v54 = vcombine.high %v275_v24, %v283_v49  ;;  %v290_v56 = vld [vmem:[#allocation6 + $0x630] sm:$0xff]  ;;  %v371_v48 = vld [vmem:[#allocation6 + $0x8b8] sm:$0xff] }
 0x31d   :  { %v8725_v4 = vcombine.low %v290_v56, %v298_v58 }
 0x31f   :  { %6675 = vmatpush1.bf16.msra.mxu0 %v8613_v62  ;;  %6839 = vmatpush1.bf16.msra.mxu1 %v8615_v63  ;;  %v8711_v62 = vcombine.low %v275_v24, %v283_v49  ;;  %v8726_v63 = vcombine.high %v290_v56, %v298_v58  ;;  %v379_v24 = vld [vmem:[#allocation6 + $0x8f8] sm:$0xff]  ;;  %v394_v56 = vld [vmem:[#allocation6 + $0x970] sm:$0xff] }
 0x320   :  { %6676 = vmatprep.subr.bf16.mxu0 %v8630_v0  ;;  %6840 = vmatprep.subr.bf16.mxu1 %v8632_v1  ;;  %v8728_v0 = vcombine.high %v291_v59, %v299_v60  ;;  %v306_v1 = vld [vmem:[#allocation6 + $0x6b0] sm:$0xff]  ;;  %v387_v58 = vld [vmem:[#allocation6 + $0x938] sm:$0xff] }
 0x321   :  { %v8741_v13 = vcombine.low %v306_v1, %v314_v2 }
 0x323   :  { %6677 = vmatpush1.bf16.msra.mxu0 %v8629_v5  ;;  %6841 = vmatpush1.bf16.msra.mxu1 %v8631_v6  ;;  %v8727_v5 = vcombine.low %v291_v59, %v299_v60  ;;  %v8742_v6 = vcombine.high %v306_v1, %v314_v2  ;;  %v395_v59 = vld [vmem:[#allocation6 + $0x978] sm:$0xff]  ;;  %v410_v1 = vld [vmem:[#allocation6 + $0x9f0] sm:$0xff] }
 0x324   :  { %6678 = vmatprep.subr.bf16.mxu0 %v8646_v7  ;;  %6842 = vmatprep.subr.bf16.mxu1 %v8648_v8  ;;  %v8744_v7 = vcombine.high %v307_v38, %v315_v3  ;;  %v322_v8 = vld [vmem:[#allocation6 + $0x730] sm:$0xff]  ;;  %v403_v2 = vld [vmem:[#allocation6 + $0x9b8] sm:$0xff] }
 0x325   :  { %v8757_v22 = vcombine.low %v322_v8, %v330_v9 }
 0x327   :  { %6679 = vmatpush1.bf16.msra.mxu0 %v8645_v14  ;;  %6843 = vmatpush1.bf16.msra.mxu1 %v8647_v16  ;;  %v8743_v14 = vcombine.low %v307_v38, %v315_v3  ;;  %v8758_v16 = vcombine.high %v322_v8, %v330_v9  ;;  %v411_v38 = vld [vmem:[#allocation6 + $0x9f8] sm:$0xff] }
 0x328   :  { %6680 = vmatprep.subr.bf16.mxu0 %v8662_v17  ;;  %6844 = vmatprep.subr.bf16.mxu1 %v8664_v18  ;;  %v8760_v17 = vcombine.high %v323_v10, %v331_v11  ;;  %v338_v18 = vld [vmem:[#allocation6 + $0x7b0] sm:$0xff]  ;;  %v419_v8 = vld [vmem:[#allocation6 + $0xa38] sm:$0xff] }
 0x329   :  { %v8773_v41 = vcombine.low %v338_v18, %v346_v19  ;;  %v427_v9 = vld [vmem:[#allocation6 + $0xa78] sm:$0xff] }
 0x32b   :  { %6681 = vmatpush1.bf16.msra.mxu0 %v8661_v26  ;;  %6845 = vmatpush1.bf16.msra.mxu1 %v8663_v27  ;;  %v8759_v26 = vcombine.low %v323_v10, %v331_v11  ;;  %v8774_v27 = vcombine.high %v338_v18, %v346_v19  ;;  %v8839_v11 = vcombine.low %v403_v2, %v411_v38  ;;  %v443_v18 = vld [vmem:[#allocation6 + $0xaf8] sm:$0xff] }
 0x32c   :  { %6682 = vmatprep.subr.bf16.mxu0 %v8678_v28  ;;  %6846 = vmatprep.subr.bf16.mxu1 %v8680_v31  ;;  %v8776_v28 = vcombine.high %v339_v20, %v347_v21  ;;  %v354_v31 = vld [vmem:[#allocation6 + $0x830] sm:$0xff] }
 0x32d   :  { %v8789_v49 = vcombine.low %v354_v31, %v362_v32 }
 0x32f   :  { %6683 = vmatpush1.bf16.msra.mxu0 %v8677_v42  ;;  %6847 = vmatpush1.bf16.msra.mxu1 %v8679_v44  ;;  %v8775_v42 = vcombine.low %v339_v20, %v347_v21  ;;  %v8790_v44 = vcombine.high %v354_v31, %v362_v32  ;;  %v8855_v20 = vcombine.low %v419_v8, %v427_v9  ;;  %v459_v31 = vld [vmem:[#allocation6 + $0xb78] sm:$0xff] }
 0x330   :  { %6684 = vmatprep.subr.bf16.mxu0 %v8694_v45  ;;  %6848 = vmatprep.subr.bf16.mxu1 %v8696_v47  ;;  %v8792_v45 = vcombine.high %v355_v35, %v363_v36  ;;  %v370_v47 = vld [vmem:[#allocation6 + $0x8b0] sm:$0xff] }
 0x331   :  { %v8805_v60 = vcombine.low %v370_v47, %v378_v57 }
 0x333   :  { %6685 = vmatpush1.bf16.msra.mxu0 %v8693_v50  ;;  %6849 = vmatpush1.bf16.msra.mxu1 %v8695_v51  ;;  %v8791_v50 = vcombine.low %v355_v35, %v363_v36  ;;  %v8806_v51 = vcombine.high %v370_v47, %v378_v57  ;;  %v475_v47 = vld [vmem:[#allocation6 + $0xbf8] sm:$0xff] }
 0x334   :  { %6686 = vmatprep.subr.bf16.mxu0 %v8710_v52  ;;  %6850 = vmatprep.subr.bf16.mxu1 %v8712_v54  ;;  %v8808_v52 = vcombine.high %v371_v48, %v379_v24  ;;  %v386_v54 = vld [vmem:[#allocation6 + $0x930] sm:$0xff] }
 0x335   :  { %v8821_v3 = vcombine.low %v386_v54, %v394_v56 }
 0x337   :  { %6687 = vmatpush1.bf16.msra.mxu0 %v8709_v61  ;;  %6851 = vmatpush1.bf16.msra.mxu1 %v8711_v62  ;;  %v8807_v61 = vcombine.low %v371_v48, %v379_v24  ;;  %v8822_v62 = vcombine.high %v386_v54, %v394_v56  ;;  %v491_v54 = vld [vmem:[#allocation6 + $0xc78] sm:$0xff] }
 0x338   :  { %6688 = vmatprep.subr.bf16.mxu0 %v8726_v63  ;;  %6852 = vmatprep.subr.bf16.mxu1 %v8728_v0  ;;  %v8824_v63 = vcombine.high %v387_v58, %v395_v59  ;;  %v402_v0 = vld [vmem:[#allocation6 + $0x9b0] sm:$0xff] }
 0x339   :  { %v8837_v10 = vcombine.low %v402_v0, %v410_v1 }
 0x33b   :  { %6689 = vmatpush1.bf16.msra.mxu0 %v8725_v4  ;;  %6853 = vmatpush1.bf16.msra.mxu1 %v8727_v5  ;;  %v8838_v4 = vcombine.high %v402_v0, %v410_v1  ;;  %v8840_v5 = vcombine.high %v403_v2, %v411_v38  ;;  %v507_v0 = vld [vmem:[#allocation6 + $0xcf8] sm:$0xff] }
 0x33c   :  { %6690 = vmatprep.subr.bf16.mxu0 %v8742_v6  ;;  %6854 = vmatprep.subr.bf16.mxu1 %v8744_v7  ;;  %v418_v6 = vld [vmem:[#allocation6 + $0xa30] sm:$0xff] }
 0x33d   :  { %v426_v7 = vld [vmem:[#allocation6 + $0xa70] sm:$0xff] }
 0x33e   :  { %v8853_v19 = vcombine.low %v418_v6, %v426_v7 }
 0x33f   :  { %6691 = vmatpush1.bf16.msra.mxu0 %v8741_v13  ;;  %6855 = vmatpush1.bf16.msra.mxu1 %v8743_v14  ;;  %v8854_v13 = vcombine.high %v418_v6, %v426_v7  ;;  %v434_v14 = vld [vmem:[#allocation6 + $0xab0] sm:$0xff]  ;;  %v523_v6 = vld [vmem:[#allocation6 + $0xd78] sm:$0xff] }
 0x340   :  { %6692 = vmatprep.subr.bf16.mxu0 %v8758_v16  ;;  %6856 = vmatprep.subr.bf16.mxu1 %v8760_v17  ;;  %v442_v16 = vld [vmem:[#allocation6 + $0xaf0] sm:$0xff]  ;;  %v435_v17 = vld [vmem:[#allocation6 + $0xab8] sm:$0xff] }
 0x341   :  { %v8870_v21 = vcombine.high %v434_v14, %v442_v16  ;;  %v8869_v32 = vcombine.low %v434_v14, %v442_v16  ;;  %v8871_v35 = vcombine.low %v435_v17, %v443_v18  ;;  %v539_v14 = vld [vmem:[#allocation6 + $0xdf8] sm:$0xff] }
 0x343   :  { %6693 = vmatpush1.bf16.msra.mxu0 %v8757_v22  ;;  %6857 = vmatpush1.bf16.msra.mxu1 %v8759_v26  ;;  %v8872_v22 = vcombine.high %v435_v17, %v443_v18  ;;  %v450_v26 = vld [vmem:[#allocation6 + $0xb30] sm:$0xff] }
 0x344   :  { %6694 = vmatprep.subr.bf16.mxu0 %v8774_v27  ;;  %6858 = vmatprep.subr.bf16.mxu1 %v8776_v28  ;;  %v458_v27 = vld [vmem:[#allocation6 + $0xb70] sm:$0xff]  ;;  %v451_v28 = vld [vmem:[#allocation6 + $0xb38] sm:$0xff] }
 0x345   :  { %v8886_v36 = vcombine.high %v450_v26, %v458_v27  ;;  %v8885_v57 = vcombine.low %v450_v26, %v458_v27  ;;  %v8887_v48 = vcombine.low %v451_v28, %v459_v31  ;;  %v555_v26 = vld [vmem:[#allocation6 + $0xe78] sm:$0xff] }
 0x347   :  { %6695 = vmatpush1.bf16.msra.mxu0 %v8773_v41  ;;  %6859 = vmatpush1.bf16.msra.mxu1 %v8775_v42  ;;  %v8888_v41 = vcombine.high %v451_v28, %v459_v31  ;;  %v466_v42 = vld [vmem:[#allocation6 + $0xbb0] sm:$0xff] }
 0x348   :  { %6705 = vmatprep.subr.bf16.mxu0 %v8790_v44  ;;  %6869 = vmatprep.subr.bf16.mxu1 %v8792_v45  ;;  %v474_v44 = vld [vmem:[#allocation6 + $0xbf0] sm:$0xff]  ;;  %v467_v45 = vld [vmem:[#allocation6 + $0xbb8] sm:$0xff] }
 0x349   :  { %v8902_v24 = vcombine.high %v466_v42, %v474_v44  ;;  %v8901_v56 = vcombine.low %v466_v42, %v474_v44  ;;  %v571_v42 = vld [vmem:[#allocation6 + $0xef8] sm:$0xff] }
 0x34a   :  { %6697 = vmatmul.mubr.bf16.vlgmr.msra.gmra.mrb[12].mxu0 %v10324_v12  ;;  %6861 = vmatmul.mubr.bf16.vlgmr.msra.gmra.mrb[12].mxu1 %v10324_v12  ;;  %v8823_v12 = vcombine.low %v387_v58, %v395_v59  ;;  %v8903_v58 = vcombine.low %v467_v45, %v475_v47 }
 0x34b   :  { %6706 = vmatpush1.bf16.msra.mxu0 %v8789_v49  ;;  %6870 = vmatpush1.bf16.msra.mxu1 %v8791_v50  ;;  %v8904_v49 = vcombine.high %v467_v45, %v475_v47  ;;  %v482_v50 = vld [vmem:[#allocation6 + $0xc30] sm:$0xff] }
 0x34c   :  { %6707 = vmatprep.subr.bf16.mxu0 %v8806_v51  ;;  %6871 = vmatprep.subr.bf16.mxu1 %v8808_v52  ;;  %v490_v51 = vld [vmem:[#allocation6 + $0xc70] sm:$0xff]  ;;  %v483_v52 = vld [vmem:[#allocation6 + $0xc38] sm:$0xff] }
 0x34d   :  { %6737 = vmatprep.mubr.bf16.mxu0 %v10330_v53  ;;  %6901 = vmatprep.mubr.bf16.mxu1 %v10330_v53  ;;  %v8856_v53 = vcombine.high %v419_v8, %v427_v9  ;;  %v8918_v59 = vcombine.high %v482_v50, %v490_v51  ;;  %v8917_v1 = vcombine.low %v482_v50, %v490_v51  ;;  %v587_v50 = vld [vmem:[#allocation6 + $0xf78] sm:$0xff] }
 0x34e   :  { %v8919_v2 = vcombine.low %v483_v52, %v491_v54 }
 0x34f   :  { %6708 = vmatpush1.bf16.msra.mxu0 %v8805_v60  ;;  %6872 = vmatpush1.bf16.msra.mxu1 %v8807_v61  ;;  %v8920_v60 = vcombine.high %v483_v52, %v491_v54  ;;  %v498_v61 = vld [vmem:[#allocation6 + $0xcb0] sm:$0xff] }
 0x350   :  { %6709 = vmatprep.subr.bf16.mxu0 %v8822_v62  ;;  %6873 = vmatprep.subr.bf16.mxu1 %v8824_v63  ;;  %v506_v62 = vld [vmem:[#allocation6 + $0xcf0] sm:$0xff]  ;;  %v499_v63 = vld [vmem:[#allocation6 + $0xcb8] sm:$0xff] }
 0x351   :  { %v8934_v38 = vcombine.high %v498_v61, %v506_v62  ;;  %v8933_v7 = vcombine.low %v498_v61, %v506_v62  ;;  %v8935_v8 = vcombine.low %v499_v63, %v507_v0  ;;  %v603_v61 = vld [vmem:[#allocation6 + $0xff8] sm:$0xff] }
 0x353   :  { %6710 = vmatpush1.bf16.msra.mxu0 %v8821_v3  ;;  %6874 = vmatpush1.bf16.msra.mxu1 %v8823_v12  ;;  %v8936_v3 = vcombine.high %v499_v63, %v507_v0  ;;  %v514_v12 = vld [vmem:[#allocation6 + $0xd30] sm:$0xff] }
 0x354   :  { %6711 = vmatprep.subr.bf16.mxu0 %v8838_v4  ;;  %6875 = vmatprep.subr.bf16.mxu1 %v8840_v5  ;;  %v522_v4 = vld [vmem:[#allocation6 + $0xd70] sm:$0xff]  ;;  %v515_v5 = vld [vmem:[#allocation6 + $0xd38] sm:$0xff] }
 0x355   :  { %v8950_v9 = vcombine.high %v514_v12, %v522_v4  ;;  %v8949_v16 = vcombine.low %v514_v12, %v522_v4  ;;  %v8951_v17 = vcombine.low %v515_v5, %v523_v6  ;;  %v619_v12 = vld [vmem:[#allocation6 + $0x1078] sm:$0xff] }
 0x357   :  { %6712 = vmatpush1.bf16.msra.mxu0 %v8837_v10  ;;  %6876 = vmatpush1.bf16.msra.mxu1 %v8839_v11  ;;  %v8952_v10 = vcombine.high %v515_v5, %v523_v6  ;;  %v530_v11 = vld [vmem:[#allocation6 + $0xdb0] sm:$0xff] }
 0x358   :  { %6713 = vmatprep.subr.bf16.mxu0 %v8854_v13  ;;  %6877 = vmatprep.subr.bf16.mxu1 %v8856_v53  ;;  %v538_v13 = vld [vmem:[#allocation6 + $0xdf0] sm:$0xff]  ;;  %v531_v53 = vld [vmem:[#allocation6 + $0xdb8] sm:$0xff] }
 0x359   :  { %v8966_v18 = vcombine.high %v530_v11, %v538_v13  ;;  %v8965_v27 = vcombine.low %v530_v11, %v538_v13  ;;  %v8967_v28 = vcombine.low %v531_v53, %v539_v14  ;;  %v635_v11 = vld [vmem:[#allocation6 + $0x10f8] sm:$0xff] }
 0x35b   :  { %6714 = vmatpush1.bf16.msra.mxu0 %v8853_v19  ;;  %6878 = vmatpush1.bf16.msra.mxu1 %v8855_v20  ;;  %v8968_v19 = vcombine.high %v531_v53, %v539_v14  ;;  %v546_v20 = vld [vmem:[#allocation6 + $0xe30] sm:$0xff] }
 0x35c   :  { %6715 = vmatprep.subr.bf16.mxu0 %v8870_v21  ;;  %6879 = vmatprep.subr.bf16.mxu1 %v8872_v22  ;;  %v554_v21 = vld [vmem:[#allocation6 + $0xe70] sm:$0xff]  ;;  %v547_v22 = vld [vmem:[#allocation6 + $0xe38] sm:$0xff] }
 0x35d   :  { %v8982_v31 = vcombine.high %v546_v20, %v554_v21  ;;  %v8981_v44 = vcombine.low %v546_v20, %v554_v21  ;;  %v8983_v45 = vcombine.low %v547_v22, %v555_v26  ;;  %v651_v20 = vld [vmem:[#allocation6 + $0x1178] sm:$0xff] }
 0x35f   :  { %6716 = vmatpush1.bf16.msra.mxu0 %v8869_v32  ;;  %6880 = vmatpush1.bf16.msra.mxu1 %v8871_v35  ;;  %v8984_v32 = vcombine.high %v547_v22, %v555_v26  ;;  %v562_v35 = vld [vmem:[#allocation6 + $0xeb0] sm:$0xff] }
 0x360   :  { %6717 = vmatprep.subr.bf16.mxu0 %v8886_v36  ;;  %6881 = vmatprep.subr.bf16.mxu1 %v8888_v41  ;;  %v570_v36 = vld [vmem:[#allocation6 + $0xef0] sm:$0xff]  ;;  %v563_v41 = vld [vmem:[#allocation6 + $0xeb8] sm:$0xff] }
 0x361   :  { %v8998_v47 = vcombine.high %v562_v35, %v570_v36  ;;  %v8997_v51 = vcombine.low %v562_v35, %v570_v36  ;;  %v8999_v52 = vcombine.low %v563_v41, %v571_v42  ;;  %v667_v35 = vld [vmem:[#allocation6 + $0x11f8] sm:$0xff] }
 0x363   :  { %6718 = vmatpush1.bf16.msra.mxu0 %v8885_v57  ;;  %6882 = vmatpush1.bf16.msra.mxu1 %v8887_v48  ;;  %v9000_v57 = vcombine.high %v563_v41, %v571_v42  ;;  %v578_v48 = vld [vmem:[#allocation6 + $0xf30] sm:$0xff] }
 0x364   :  { %6719 = vmatprep.subr.bf16.mxu0 %v8902_v24  ;;  %6883 = vmatprep.subr.bf16.mxu1 %v8904_v49  ;;  %v586_v24 = vld [vmem:[#allocation6 + $0xf70] sm:$0xff]  ;;  %v579_v49 = vld [vmem:[#allocation6 + $0xf38] sm:$0xff] }
 0x365   :  { %v9014_v54 = vcombine.high %v578_v48, %v586_v24  ;;  %v9013_v62 = vcombine.low %v578_v48, %v586_v24  ;;  %v9015_v63 = vcombine.low %v579_v49, %v587_v50 }
 0x367   :  { %6720 = vmatpush1.bf16.msra.mxu0 %v8901_v56  ;;  %6884 = vmatpush1.bf16.msra.mxu1 %v8903_v58  ;;  %v9016_v56 = vcombine.high %v579_v49, %v587_v50  ;;  %v594_v58 = vld [vmem:[#allocation6 + $0xfb0] sm:$0xff] }
 0x368   :  { %6721 = vmatprep.subr.bf16.mxu0 %v8918_v59  ;;  %6885 = vmatprep.subr.bf16.mxu1 %v8920_v60  ;;  %v602_v59 = vld [vmem:[#allocation6 + $0xff0] sm:$0xff]  ;;  %v595_v60 = vld [vmem:[#allocation6 + $0xfb8] sm:$0xff] }
 0x369   :  { %v9030_v0 = vcombine.high %v594_v58, %v602_v59  ;;  %v9029_v4 = vcombine.low %v594_v58, %v602_v59  ;;  %v9031_v5 = vcombine.low %v595_v60, %v603_v61  ;;  %v690_v50 = vld [vmem:[#allocation6 + $0x12b0] sm:$0xff] }
 0x36b   :  { %6722 = vmatpush1.bf16.msra.mxu0 %v8917_v1  ;;  %6886 = vmatpush1.bf16.msra.mxu1 %v8919_v2  ;;  %v9032_v1 = vcombine.high %v595_v60, %v603_v61  ;;  %v610_v2 = vld [vmem:[#allocation6 + $0x1030] sm:$0xff] }
 0x36c   :  { %6723 = vmatprep.subr.bf16.mxu0 %v8934_v38  ;;  %6887 = vmatprep.subr.bf16.mxu1 %v8936_v3  ;;  %v618_v38 = vld [vmem:[#allocation6 + $0x1070] sm:$0xff]  ;;  %v611_v3 = vld [vmem:[#allocation6 + $0x1038] sm:$0xff] }
 0x36d   :  { %v9046_v6 = vcombine.high %v610_v2, %v618_v38  ;;  %v9045_v13 = vcombine.low %v610_v2, %v618_v38  ;;  %v9047_v53 = vcombine.low %v611_v3, %v619_v12  ;;  %v706_v61 = vld [vmem:[#allocation6 + $0x1330] sm:$0xff] }
 0x36f   :  { %6724 = vmatpush1.bf16.msra.mxu0 %v8933_v7  ;;  %6888 = vmatpush1.bf16.msra.mxu1 %v8935_v8  ;;  %v9048_v7 = vcombine.high %v611_v3, %v619_v12  ;;  %v626_v8 = vld [vmem:[#allocation6 + $0x10b0] sm:$0xff] }
 0x370   :  { %6725 = vmatprep.subr.bf16.mxu0 %v8950_v9  ;;  %6889 = vmatprep.subr.bf16.mxu1 %v8952_v10  ;;  %v634_v9 = vld [vmem:[#allocation6 + $0x10f0] sm:$0xff]  ;;  %v627_v10 = vld [vmem:[#allocation6 + $0x10b8] sm:$0xff] }
 0x371   :  { %v9062_v14 = vcombine.high %v626_v8, %v634_v9  ;;  %v9061_v21 = vcombine.low %v626_v8, %v634_v9  ;;  %v9063_v22 = vcombine.low %v627_v10, %v635_v11  ;;  %v722_v12 = vld [vmem:[#allocation6 + $0x13b0] sm:$0xff] }
 0x373   :  { %6726 = vmatpush1.bf16.msra.mxu0 %v8949_v16  ;;  %6890 = vmatpush1.bf16.msra.mxu1 %v8951_v17  ;;  %v9064_v16 = vcombine.high %v627_v10, %v635_v11  ;;  %v642_v17 = vld [vmem:[#allocation6 + $0x1130] sm:$0xff] }
 0x374   :  { %6727 = vmatprep.subr.bf16.mxu0 %v8966_v18  ;;  %6891 = vmatprep.subr.bf16.mxu1 %v8968_v19  ;;  %v650_v18 = vld [vmem:[#allocation6 + $0x1170] sm:$0xff]  ;;  %v643_v19 = vld [vmem:[#allocation6 + $0x1138] sm:$0xff] }
 0x375   :  { %v9078_v26 = vcombine.high %v642_v17, %v650_v18  ;;  %v9077_v36 = vcombine.low %v642_v17, %v650_v18  ;;  %v738_v11 = vld [vmem:[#allocation6 + $0x1430] sm:$0xff] }
 0x377   :  { %6728 = vmatpush1.bf16.msra.mxu0 %v8965_v27  ;;  %6892 = vmatpush1.bf16.msra.mxu1 %v8967_v28  ;;  %v9080_v27 = vcombine.high %v643_v19, %v651_v20  ;;  %v658_v28 = vld [vmem:[#allocation6 + $0x11b0] sm:$0xff] }
 0x378   :  { %6729 = vmatprep.subr.bf16.mxu0 %v8982_v31  ;;  %6893 = vmatprep.subr.bf16.mxu1 %v8984_v32  ;;  %v666_v31 = vld [vmem:[#allocation6 + $0x11f0] sm:$0xff]  ;;  %v659_v32 = vld [vmem:[#allocation6 + $0x11b8] sm:$0xff] }
 0x379   :  { %v9094_v41 = vcombine.high %v658_v28, %v666_v31  ;;  %v9096_v42 = vcombine.high %v659_v32, %v667_v35  ;;  %v9093_v48 = vcombine.low %v658_v28, %v666_v31  ;;  %v9095_v24 = vcombine.low %v659_v32, %v667_v35  ;;  %v770_v35 = vld [vmem:[#allocation6 + $0x1530] sm:$0xff] }
 0x37b   :  { %6730 = vmatpush1.bf16.msra.mxu0 %v8981_v44  ;;  %6894 = vmatpush1.bf16.msra.mxu1 %v8983_v45  ;;  %v674_v44 = vld [vmem:[#allocation6 + $0x1230] sm:$0xff] }
 0x37c   :  { %6731 = vmatprep.subr.bf16.mxu0 %v8998_v47  ;;  %6895 = vmatprep.subr.bf16.mxu1 %v9000_v57  ;;  %v682_v45 = vld [vmem:[#allocation6 + $0x1270] sm:$0xff]  ;;  %v675_v47 = vld [vmem:[#allocation6 + $0x1238] sm:$0xff] }
 0x37d   :  { %v683_v57 = vld [vmem:[#allocation6 + $0x1278] sm:$0xff]  ;;  %v9110_v49 = vcombine.high %v674_v44, %v682_v45 }
 0x37e   :  { %v9111_v58 = vcombine.low %v675_v47, %v683_v57 }
 0x37f   :  { %6732 = vmatpush1.bf16.msra.mxu0 %v8997_v51  ;;  %6896 = vmatpush1.bf16.msra.mxu1 %v8999_v52  ;;  %v698_v51 = vld [vmem:[#allocation6 + $0x12f0] sm:$0xff]  ;;  %v691_v52 = vld [vmem:[#allocation6 + $0x12b8] sm:$0xff] }
 0x380   :  { %6733 = vmatprep.subr.bf16.mxu0 %v9014_v54  ;;  %6897 = vmatprep.subr.bf16.mxu1 %v9016_v56  ;;  %v699_v54 = vld [vmem:[#allocation6 + $0x12f8] sm:$0xff]  ;;  %v9109_v56 = vcombine.low %v674_v44, %v682_v45  ;;  %v9126_v59 = vcombine.high %v690_v50, %v698_v51 }
 0x381   :  { %v9128_v60 = vcombine.high %v691_v52, %v699_v54  ;;  %v9127_v2 = vcombine.low %v691_v52, %v699_v54  ;;  %v802_v54 = vld [vmem:[#allocation6 + $0x1630] sm:$0xff] }
 0x383   :  { %6734 = vmatpush1.bf16.msra.mxu0 %v9013_v62  ;;  %6898 = vmatpush1.bf16.msra.mxu1 %v9015_v63  ;;  %v714_v62 = vld [vmem:[#allocation6 + $0x1370] sm:$0xff]  ;;  %v707_v63 = vld [vmem:[#allocation6 + $0x1338] sm:$0xff] }
 0x384   :  { %6735 = vmatprep.subr.bf16.mxu0 %v9030_v0  ;;  %6899 = vmatprep.subr.bf16.mxu1 %v9032_v1  ;;  %v715_v0 = vld [vmem:[#allocation6 + $0x1378] sm:$0xff]  ;;  %v9125_v1 = vcombine.low %v690_v50, %v698_v51  ;;  %v9142_v38 = vcombine.high %v706_v61, %v714_v62 }
 0x385   :  { %v9144_v3 = vcombine.high %v707_v63, %v715_v0  ;;  %v9143_v8 = vcombine.low %v707_v63, %v715_v0  ;;  %v818_v0 = vld [vmem:[#allocation6 + $0x16b0] sm:$0xff] }
 0x387   :  { %6736 = vmatpush1.bf16.msra.mxu0 %v9029_v4  ;;  %6900 = vmatpush1.bf16.msra.mxu1 %v9031_v5  ;;  %v730_v4 = vld [vmem:[#allocation6 + $0x13f0] sm:$0xff]  ;;  %v723_v5 = vld [vmem:[#allocation6 + $0x13b8] sm:$0xff] }
 0x388   :  { %6746 = vmatprep.subr.bf16.mxu0 %v9046_v6  ;;  %6910 = vmatprep.subr.bf16.mxu1 %v9048_v7  ;;  %v731_v6 = vld [vmem:[#allocation6 + $0x13f8] sm:$0xff]  ;;  %v9141_v7 = vcombine.low %v706_v61, %v714_v62  ;;  %v9158_v9 = vcombine.high %v722_v12, %v730_v4 }
 0x389   :  { %v9160_v10 = vcombine.high %v723_v5, %v731_v6  ;;  %v9159_v17 = vcombine.low %v723_v5, %v731_v6  ;;  %v834_v6 = vld [vmem:[#allocation6 + $0x1730] sm:$0xff] }
 0x38a   :  { %6738 = vmatmul.mubr.bf16.vlgmr.msra.gmra.mrb[12].mxu0 %v10340_v25  ;;  %6902 = vmatmul.mubr.bf16.vlgmr.msra.gmra.mrb[12].mxu1 %v10340_v25  ;;  %v9079_v25 = vcombine.low %v643_v19, %v651_v20  ;;  %v754_v20 = vld [vmem:[#allocation6 + $0x14b0] sm:$0xff] }
 0x38b   :  { %6747 = vmatpush1.bf16.msra.mxu0 %v9045_v13  ;;  %6911 = vmatpush1.bf16.msra.mxu1 %v9047_v53  ;;  %v746_v13 = vld [vmem:[#allocation6 + $0x1470] sm:$0xff]  ;;  %v739_v53 = vld [vmem:[#allocation6 + $0x1438] sm:$0xff] }
 0x38c   :  { %6748 = vmatprep.subr.bf16.mxu0 %v9062_v14  ;;  %6912 = vmatprep.subr.bf16.mxu1 %v9064_v16  ;;  %v747_v14 = vld [vmem:[#allocation6 + $0x1478] sm:$0xff]  ;;  %v9157_v16 = vcombine.low %v722_v12, %v730_v4  ;;  %v9174_v18 = vcombine.high %v738_v11, %v746_v13 }
 0x38d   :  { %6778 = vmatprep.mubr.bf16.mxu0 %v10344_v34  ;;  %6942 = vmatprep.mubr.bf16.mxu1 %v10344_v34  ;;  %v9112_v34 = vcombine.high %v675_v47, %v683_v57  ;;  %v9176_v19 = vcombine.high %v739_v53, %v747_v14  ;;  %v9175_v28 = vcombine.low %v739_v53, %v747_v14  ;;  %v786_v57 = vld [vmem:[#allocation6 + $0x15b0] sm:$0xff] }
 0x38e   :  { %v850_v14 = vld [vmem:[#allocation6 + $0x17b0] sm:$0xff] }
 0x38f   :  { %6749 = vmatpush1.bf16.msra.mxu0 %v9061_v21  ;;  %6913 = vmatpush1.bf16.msra.mxu1 %v9063_v22  ;;  %v762_v21 = vld [vmem:[#allocation6 + $0x14f0] sm:$0xff]  ;;  %v755_v22 = vld [vmem:[#allocation6 + $0x14b8] sm:$0xff] }
 0x390   :  { %6750 = vmatprep.subr.bf16.mxu0 %v9078_v26  ;;  %6914 = vmatprep.subr.bf16.mxu1 %v9080_v27  ;;  %v763_v26 = vld [vmem:[#allocation6 + $0x14f8] sm:$0xff]  ;;  %v9173_v27 = vcombine.low %v738_v11, %v746_v13  ;;  %v9190_v31 = vcombine.high %v754_v20, %v762_v21 }
 0x391   :  { %v9192_v32 = vcombine.high %v755_v22, %v763_v26  ;;  %v9191_v44 = vcombine.low %v755_v22, %v763_v26  ;;  %v866_v26 = vld [vmem:[#allocation6 + $0x1830] sm:$0xff] }
 0x393   :  { %6751 = vmatpush1.bf16.msra.mxu0 %v9077_v36  ;;  %6915 = vmatpush1.bf16.msra.mxu1 %v9079_v25  ;;  %v778_v36 = vld [vmem:[#allocation6 + $0x1570] sm:$0xff]  ;;  %v771_v25 = vld [vmem:[#allocation6 + $0x1538] sm:$0xff] }
 0x394   :  { %6752 = vmatprep.subr.bf16.mxu0 %v9094_v41  ;;  %6916 = vmatprep.subr.bf16.mxu1 %v9096_v42  ;;  %v779_v41 = vld [vmem:[#allocation6 + $0x1578] sm:$0xff]  ;;  %v9189_v42 = vcombine.low %v754_v20, %v762_v21  ;;  %v9206_v45 = vcombine.high %v770_v35, %v778_v36 }
 0x395   :  { %v9208_v47 = vcombine.high %v771_v25, %v779_v41  ;;  %v9207_v50 = vcombine.low %v771_v25, %v779_v41  ;;  %v882_v41 = vld [vmem:[#allocation6 + $0x18b0] sm:$0xff] }
 0x397   :  { %6753 = vmatpush1.bf16.msra.mxu0 %v9093_v48  ;;  %6917 = vmatpush1.bf16.msra.mxu1 %v9095_v24  ;;  %v794_v48 = vld [vmem:[#allocation6 + $0x15f0] sm:$0xff]  ;;  %v787_v24 = vld [vmem:[#allocation6 + $0x15b8] sm:$0xff] }
 0x398   :  { %6754 = vmatprep.subr.bf16.mxu0 %v9110_v49  ;;  %6918 = vmatprep.subr.bf16.mxu1 %v9112_v34  ;;  %v795_v49 = vld [vmem:[#allocation6 + $0x15f8] sm:$0xff]  ;;  %v9205_v34 = vcombine.low %v770_v35, %v778_v36  ;;  %v9222_v51 = vcombine.high %v786_v57, %v794_v48 }
 0x399   :  { %v9224_v52 = vcombine.high %v787_v24, %v795_v49  ;;  %v9223_v61 = vcombine.low %v787_v24, %v795_v49  ;;  %v898_v49 = vld [vmem:[#allocation6 + $0x1930] sm:$0xff] }
 0x39b   :  { %6755 = vmatpush1.bf16.msra.mxu0 %v9109_v56  ;;  %6919 = vmatpush1.bf16.msra.mxu1 %v9111_v58  ;;  %v810_v56 = vld [vmem:[#allocation6 + $0x1670] sm:$0xff]  ;;  %v803_v58 = vld [vmem:[#allocation6 + $0x1638] sm:$0xff] }
 0x39c   :  { %6756 = vmatprep.subr.bf16.mxu0 %v9126_v59  ;;  %6920 = vmatprep.subr.bf16.mxu1 %v9128_v60  ;;  %v811_v59 = vld [vmem:[#allocation6 + $0x1678] sm:$0xff]  ;;  %v9221_v60 = vcombine.low %v786_v57, %v794_v48  ;;  %v9238_v62 = vcombine.high %v802_v54, %v810_v56 }
 0x39d   :  { %v9240_v63 = vcombine.high %v803_v58, %v811_v59  ;;  %v9239_v12 = vcombine.low %v803_v58, %v811_v59  ;;  %v914_v59 = vld [vmem:[#allocation6 + $0x19b0] sm:$0xff] }
 0x39f   :  { %6757 = vmatpush1.bf16.msra.mxu0 %v9125_v1  ;;  %6921 = vmatpush1.bf16.msra.mxu1 %v9127_v2  ;;  %v826_v1 = vld [vmem:[#allocation6 + $0x16f0] sm:$0xff]  ;;  %v819_v2 = vld [vmem:[#allocation6 + $0x16b8] sm:$0xff] }
 0x3a0   :  { %6758 = vmatprep.subr.bf16.mxu0 %v9142_v38  ;;  %6922 = vmatprep.subr.bf16.mxu1 %v9144_v3  ;;  %v827_v38 = vld [vmem:[#allocation6 + $0x16f8] sm:$0xff]  ;;  %v9237_v3 = vcombine.low %v802_v54, %v810_v56  ;;  %v9254_v4 = vcombine.high %v818_v0, %v826_v1 }
 0x3a1   :  { %v9256_v5 = vcombine.high %v819_v2, %v827_v38  ;;  %v9255_v11 = vcombine.low %v819_v2, %v827_v38  ;;  %v930_v38 = vld [vmem:[#allocation6 + $0x1a30] sm:$0xff] }
 0x3a3   :  { %6759 = vmatpush1.bf16.msra.mxu0 %v9141_v7  ;;  %6923 = vmatpush1.bf16.msra.mxu1 %v9143_v8  ;;  %v842_v7 = vld [vmem:[#allocation6 + $0x1770] sm:$0xff]  ;;  %v835_v8 = vld [vmem:[#allocation6 + $0x1738] sm:$0xff] }
 0x3a4   :  { %6760 = vmatprep.subr.bf16.mxu0 %v9158_v9  ;;  %6924 = vmatprep.subr.bf16.mxu1 %v9160_v10  ;;  %v843_v9 = vld [vmem:[#allocation6 + $0x1778] sm:$0xff]  ;;  %v9253_v10 = vcombine.low %v818_v0, %v826_v1  ;;  %v9270_v13 = vcombine.high %v834_v6, %v842_v7 }
 0x3a5   :  { %v9272_v53 = vcombine.high %v835_v8, %v843_v9  ;;  %v9271_v20 = vcombine.low %v835_v8, %v843_v9  ;;  %v946_v9 = vld [vmem:[#allocation6 + $0x1ab0] sm:$0xff] }
 0x3a7   :  { %6761 = vmatpush1.bf16.msra.mxu0 %v9157_v16  ;;  %6925 = vmatpush1.bf16.msra.mxu1 %v9159_v17  ;;  %v858_v16 = vld [vmem:[#allocation6 + $0x17f0] sm:$0xff]  ;;  %v851_v17 = vld [vmem:[#allocation6 + $0x17b8] sm:$0xff] }
 0x3a8   :  { %6762 = vmatprep.subr.bf16.mxu0 %v9174_v18  ;;  %6926 = vmatprep.subr.bf16.mxu1 %v9176_v19  ;;  %v859_v18 = vld [vmem:[#allocation6 + $0x17f8] sm:$0xff]  ;;  %v9269_v19 = vcombine.low %v834_v6, %v842_v7  ;;  %v9286_v21 = vcombine.high %v850_v14, %v858_v16 }
 0x3a9   :  { %v9288_v22 = vcombine.high %v851_v17, %v859_v18  ;;  %v9287_v35 = vcombine.low %v851_v17, %v859_v18 }
 0x3ab   :  { %6763 = vmatpush1.bf16.msra.mxu0 %v9173_v27  ;;  %6927 = vmatpush1.bf16.msra.mxu1 %v9175_v28  ;;  %v874_v27 = vld [vmem:[#allocation6 + $0x1870] sm:$0xff]  ;;  %v867_v28 = vld [vmem:[#allocation6 + $0x1838] sm:$0xff] }
 0x3ac   :  { %6764 = vmatprep.subr.bf16.mxu0 %v9190_v31  ;;  %6928 = vmatprep.subr.bf16.mxu1 %v9192_v32  ;;  %v875_v31 = vld [vmem:[#allocation6 + $0x1878] sm:$0xff]  ;;  %v9285_v32 = vcombine.low %v850_v14, %v858_v16  ;;  %v9302_v36 = vcombine.high %v866_v26, %v874_v27  ;;  %v10454_v14 = vld [vmem:[#allocation8 + $0x8] sm:$0xff] }
 0x3ad   :  { %v9304_v25 = vcombine.high %v867_v28, %v875_v31  ;;  %v9303_v57 = vcombine.low %v867_v28, %v875_v31  ;;  %v963_v31 = vld [vmem:[#allocation6 + $0x1b38] sm:$0xff] }
 0x3af   :  { %6765 = vmatpush1.bf16.msra.mxu0 %v9189_v42  ;;  %6929 = vmatpush1.bf16.msra.mxu1 %v9191_v44  ;;  %v890_v42 = vld [vmem:[#allocation6 + $0x18f0] sm:$0xff]  ;;  %v883_v44 = vld [vmem:[#allocation6 + $0x18b8] sm:$0xff] }
 0x3b0   :  { %6766 = vmatprep.subr.bf16.mxu0 %v9206_v45  ;;  %6930 = vmatprep.subr.bf16.mxu1 %v9208_v47  ;;  %v891_v45 = vld [vmem:[#allocation6 + $0x18f8] sm:$0xff]  ;;  %v9301_v47 = vcombine.low %v866_v26, %v874_v27  ;;  %v9318_v48 = vcombine.high %v882_v41, %v890_v42  ;;  %v970_v26 = vld [vmem:[#allocation6 + $0x1b70] sm:$0xff] }
 0x3b1   :  { %v9320_v24 = vcombine.high %v883_v44, %v891_v45  ;;  %v9319_v54 = vcombine.low %v883_v44, %v891_v45 }
 0x3b3   :  { %6767 = vmatpush1.bf16.msra.mxu0 %v9205_v34  ;;  %6931 = vmatpush1.bf16.msra.mxu1 %v9207_v50  ;;  %v906_v34 = vld [vmem:[#allocation6 + $0x1970] sm:$0xff]  ;;  %v899_v50 = vld [vmem:[#allocation6 + $0x1938] sm:$0xff] }
 0x3b4   :  { %6768 = vmatprep.subr.bf16.mxu0 %v9222_v51  ;;  %6932 = vmatprep.subr.bf16.mxu1 %v9224_v52  ;;  %v907_v51 = vld [vmem:[#allocation6 + $0x1978] sm:$0xff]  ;;  %v9317_v52 = vcombine.low %v882_v41, %v890_v42  ;;  %v9334_v56 = vcombine.high %v898_v49, %v906_v34 }
 0x3b5   :  { %v9336_v58 = vcombine.high %v899_v50, %v907_v51  ;;  %v9335_v0 = vcombine.low %v899_v50, %v907_v51  ;;  %v979_v50 = vld [vmem:[#allocation6 + $0x1bb8] sm:$0xff] }
 0x3b6   :  { %v987_v51 = vld [vmem:[#allocation6 + $0x1bf8] sm:$0xff] }
 0x3b7   :  { %6769 = vmatpush1.bf16.msra.mxu0 %v9221_v60  ;;  %6933 = vmatpush1.bf16.msra.mxu1 %v9223_v61  ;;  %v922_v60 = vld [vmem:[#allocation6 + $0x19f0] sm:$0xff]  ;;  %v915_v61 = vld [vmem:[#allocation6 + $0x19b8] sm:$0xff] }
 0x3b8   :  { %6770 = vmatprep.subr.bf16.mxu0 %v9238_v62  ;;  %6934 = vmatprep.subr.bf16.mxu1 %v9240_v63  ;;  %v923_v62 = vld [vmem:[#allocation6 + $0x19f8] sm:$0xff]  ;;  %v9333_v63 = vcombine.low %v898_v49, %v906_v34  ;;  %v9350_v1 = vcombine.high %v914_v59, %v922_v60 }
 0x3b9   :  { %v9352_v2 = vcombine.high %v915_v61, %v923_v62 }
 0x3bb   :  { %6771 = vmatpush1.bf16.msra.mxu0 %v9237_v3  ;;  %6935 = vmatpush1.bf16.msra.mxu1 %v9239_v12  ;;  %v938_v3 = vld [vmem:[#allocation6 + $0x1a70] sm:$0xff]  ;;  %v931_v12 = vld [vmem:[#allocation6 + $0x1a38] sm:$0xff] }
 0x3bc   :  { %6772 = vmatprep.subr.bf16.mxu0 %v9254_v4  ;;  %6936 = vmatprep.subr.bf16.mxu1 %v9256_v5  ;;  %v939_v4 = vld [vmem:[#allocation6 + $0x1a78] sm:$0xff]  ;;  %v9349_v5 = vcombine.low %v914_v59, %v922_v60  ;;  %v9366_v7 = vcombine.high %v930_v38, %v938_v3 }
 0x3bd   :  { %v9368_v8 = vcombine.high %v931_v12, %v939_v4  ;;  %v9367_v17 = vcombine.low %v931_v12, %v939_v4  ;;  %v995_v12 = vld [vmem:[#allocation6 + $0x1c38] sm:$0x33] }
 0x3bf   :  { %6773 = vmatpush1.bf16.msra.mxu0 %v9253_v10  ;;  %6937 = vmatpush1.bf16.msra.mxu1 %v9255_v11  ;;  %v954_v10 = vld [vmem:[#allocation6 + $0x1af0] sm:$0xff]  ;;  %v947_v11 = vld [vmem:[#allocation6 + $0x1ab8] sm:$0xff] }
 0x3c0   :  { %6774 = vmatprep.subr.bf16.mxu0 %v9270_v13  ;;  %6938 = vmatprep.subr.bf16.mxu1 %v9272_v53  ;;  %v955_v13 = vld [vmem:[#allocation6 + $0x1af8] sm:$0xff]  ;;  %v9365_v53 = vcombine.low %v930_v38, %v938_v3  ;;  %v9382_v18 = vcombine.high %v946_v9, %v954_v10  ;;  %v994_v38 = vld [vmem:[#allocation6 + $0x1c30] sm:$0x33] }
 0x3c1   :  { %v9383_v42 = vcombine.low %v947_v11, %v955_v13 }
 0x3c3   :  { %6775 = vmatpush1.bf16.msra.mxu0 %v9269_v19  ;;  %6939 = vmatpush1.bf16.msra.mxu1 %v9271_v20 }
 0x3c4   :  { %6776 = vmatprep.subr.bf16.mxu0 %v9286_v21  ;;  %6940 = vmatprep.subr.bf16.mxu1 %v9288_v22  ;;  %v9384_v21 = vcombine.high %v947_v11, %v955_v13  ;;  %v962_v22 = vld [vmem:[#allocation6 + $0x1b30] sm:$0xff] }
 0x3c5   :  { %v9398_v44 = vcombine.high %v962_v22, %v970_v26  ;;  %v9397_v60 = vcombine.low %v962_v22, %v970_v26  ;;  %v9949_v26 = vld [vmem:[#allocation9] sm:$0xff]  }
 0x3c7   :  { %6777 = vmatpush1.bf16.msra.mxu0 %v9285_v32  ;;  %6941 = vmatpush1.bf16.msra.mxu1 %v9287_v35  ;;  %v971_v32 = vld [vmem:[#allocation6 + $0x1b78] sm:$0xff] }
 0x3c8   :  { %6787 = vmatprep.subr.bf16.mxu0 %v9302_v36  ;;  %6951 = vmatprep.subr.bf16.mxu1 %v9304_v25  ;;  %v9381_v25 = vcombine.low %v946_v9, %v954_v10  ;;  %v9432_v9 = vcombine.high %v995_v12, %v995_v12  ;;  %v9431_v10 = vcombine.low %v995_v12, %v995_v12  ;;  %v9974_v12 = vld [vmem:[#allocation9 + $0xb0] sm:$0xff]  }
 0x3ca   :  { %6779 = vmatmul.mubr.bf16.vlgmr.msra.gmra.mrb[12].mxu0 %v10354_v39  ;;  %6943 = vmatmul.mubr.bf16.vlgmr.msra.gmra.mrb[12].mxu1 %v10354_v39  ;;  %v1000_v39 = vlaneseq }
 0x3cb   :  { %6788 = vmatpush1.bf16.msra.mxu0 %v9301_v47  ;;  %6952 = vmatpush1.bf16.msra.mxu1 %v9303_v57  ;;  %v9400_v47 = vcombine.high %v963_v31, %v971_v32  ;;  %v978_v57 = vld [vmem:[#allocation6 + $0x1bb0] sm:$0xff] }
 0x3cc   :  { %6789 = vmatprep.subr.bf16.mxu0 %v9318_v48  ;;  %6953 = vmatprep.subr.bf16.mxu1 %v9320_v24  ;;  %v10452_v6 = vshrl.u32 %v1000_v39, 7  ;;  %v986_v48 = vld [vmem:[#allocation6 + $0x1bf0] sm:$0xff]  ;;  %v9399_v39 = vcombine.low %v963_v31, %v971_v32  ;;  %v9953_v32 = vld [vmem:[#allocation9 + $0x8] sm:$0xff]  }
 0x3cd   :  { %9446 = vmatprep.mubr.msk.bf16.mxu0 %vm5627_vm0, %v10358_v46  ;;  %9448 = vmatprep.mubr.msk.bf16.mxu1 %vm5627_vm0, %v10358_v46  ;;  %v9351_v46 = vcombine.low %v915_v61, %v923_v62 }
 0x3ce   :  { %v1002_v16 = vsub.s32 0, %v10452_v6  ;;  %v1010_v19 = vsub.s32 2, %v10452_v6  ;;  %v1006_v20 = vsub.s32 1, %v10452_v6  ;;  %v1014_v27 = vsub.s32 3, %v10452_v6 }
 0x3cf   :  { %6790 = vmatpush1.bf16.msra.mxu0 %v9317_v52  ;;  %6954 = vmatpush1.bf16.msra.mxu1 %v9319_v54  ;;  %v10470_v52 = vld [vmem:[#allocation8] sm:$0xff] }
 0x3d0   :  { %6791 = vmatprep.subr.bf16.mxu0 %v9334_v56  ;;  %6955 = vmatprep.subr.bf16.mxu1 %v9336_v58  ;;  %v1035_v28 = vrot.slane %v10454_v14, %v1002_v16  ;;  %v1043_v35 = vrot.slane %v10454_v14, %v1010_v19  ;;  %v1039_v36 = vrot.slane %v10454_v14, %v1006_v20 }
 0x3d1   :  { %v1047_v41 = vrot.slane %v10454_v14, %v1014_v27  ;;  %v1007_v3 = vrot.slane %v10470_v52, %v1006_v20  ;;  %v1015_v4 = vrot.slane %v10470_v52, %v1014_v27  ;;  %v9948_v20 = vld [vmem:[#allocation9 + $0xc0] sm:$0xff]  }
 0x3d3   :  { %6792 = vmatpush1.bf16.msra.mxu0 %v9333_v63  ;;  %6956 = vmatpush1.bf16.msra.mxu1 %v9335_v0  ;;  %v9414_v0 = vcombine.high %v978_v57, %v986_v48  ;;  %v9803_v11 = vadd.f32 %v10396_v40, %v1007_v3  ;;  %v9805_v13 = vadd.f32 %v10398_v43, %v1015_v4  ;;  %v9950_v40 = vld [vmem:[#allocation9 + $0x80] sm:$0xff]   ;;  %v9951_v43 = vld [vmem:[#allocation9 + $0x48] sm:$0xff]   ;;  %v9975_v4 = vld [vmem:[#allocation9 + $0x78] sm:$0xff]  }
 0x3d4   :  { %6793 = vmatprep.subr.bf16.mxu0 %v9350_v1  ;;  %6957 = vmatprep.subr.bf16.mxu1 %v9352_v2  ;;  %v9416_v2 = vcombine.high %v979_v50, %v987_v51 }
 0x3d5   :  { %v6995_v22 = vmax.f32 %v9805_v13, 0.0  ;;  %v9980_v13 = vld [vmem:[#allocation9 + $0x1c0] sm:$0xff]  }
 0x3d7   :  { %6794 = vmatpush1.bf16.msra.mxu0 %v9349_v5  ;;  %6958 = vmatpush1.bf16.msra.mxu1 %v9351_v46  ;;  %v9413_v5 = vcombine.low %v978_v57, %v986_v48  ;;  %v9415_v46 = vcombine.low %v979_v50, %v987_v51  ;;  %v9613_v31 = vpack.c.bf16 %v6995_v22, %v6995_v22  ;;  %v9963_v57 = vld [vmem:[#allocation9 + $0x60] sm:$0xff]   ;;  %v9967_v50 = vld [vmem:[#allocation9 + $0x68] sm:$0xff]  }
 0x3d8   :  { %6795 = vmatprep.subr.bf16.mxu0 %v9366_v7  ;;  %6959 = vmatprep.subr.bf16.mxu1 %v9368_v8  ;;  %v9430_v7 = vcombine.high %v994_v38, %v994_v38  ;;  %v9429_v8 = vcombine.low %v994_v38, %v994_v38  ;;  %v9964_v48 = vld [vmem:[#allocation9 + $0xe0] sm:$0xff]   ;;  %v9968_v51 = vld [vmem:[#allocation9 + $0xe8] sm:$0xff]  }
 0x3d9   :  { %v9984_v22 = vld [vmem:[#allocation9 + $0x1c8] sm:$0xff]  }
 0x3db   :  { %6796 = vmatpush1.bf16.msra.mxu0 %v9365_v53  ;;  %6960 = vmatpush1.bf16.msra.mxu1 %v9367_v17  ;;  %v5669_v53 = vsel %vm5631_vm1, %v9429_v8, 0  ;;  %v9947_v17 = vld [vmem:[#allocation9 + $0x40] sm:$0xff]   ;;  %v9977_v8 = vld [vmem:[#allocation9 + $0x38] sm:$0xff]  }
 0x3dc   :  { %6797 = vmatprep.subr.bf16.mxu0 %v9382_v18  ;;  %6961 = vmatprep.subr.bf16.mxu1 %v9384_v21  ;;  %v5675_v18 = vsel %vm5631_vm1, %v9431_v10, 0  ;;  %v6993_v21 = vmax.f32 %v9803_v11, 0.0  ;;  %v9978_v10 = vld [vmem:[#allocation9 + $0xb8] sm:$0xff]   ;;  %v9979_v11 = vld [vmem:[#allocation9 + $0x140] sm:$0xff]  }
 0x3dd   :  { %v6493_v45 = vpop.f32.mrb[8].mxu0  ;;  %v6657_v49 = vpop.f32.mrb[8].mxu1 }
 0x3de   :  { %v10468_v24 = vadd.f32 %v6493_v45, %v1035_v28  ;;  %v6495_v34 = vpop.f32.mrb[9].mxu0  ;;  %v10472_v54 = vadd.f32 %v6657_v49, %v1043_v35  ;;  %v6659_v58 = vpop.f32.mrb[9].mxu1  ;;  %v9611_v27 = vpack.c.bf16 %v6993_v21, %v6993_v21  ;;  %v9952_v28 = vld [vmem:[#allocation9 + $0xc8] sm:$0xff]   ;;  %v9960_v45 = vld [vmem:[#allocation9 + $0xd8] sm:$0xff]   ;;  %v9965_v49 = vld [vmem:[#allocation9 + $0x20] sm:$0xff]  }
 0x3df   :  { %v10474_v56 = vadd.f32 %v6495_v34, %v1039_v36  ;;  %v6497_v59 = vpop.f32.mrb[10].mxu0  ;;  %6798 = vmatpush1.bf16.msra.mxu0 %v9381_v25  ;;  %v10476_v61 = vadd.f32 %v6659_v58, %v1047_v41  ;;  %v6661_v62 = vpop.f32.mrb[10].mxu1  ;;  %6962 = vmatpush1.bf16.msra.mxu1 %v9383_v42  ;;  %v9954_v35 = vld [vmem:[#allocation9 + $0x88] sm:$0xff]   ;;  %v9955_v36 = vld [vmem:[#allocation9 + $0x50] sm:$0xff]   ;;  %v9966_v34 = vld [vmem:[#allocation9 + $0xa0] sm:$0xff]   ;;  %v1022_v58 = vsub.s32 5, %v10452_v6 }
 0x3e0   :  { %v6498_v63 = vpop.f32.mrb[11].mxu0  ;;  %6799 = vmatprep.subr.bf16.mxu0 %v9398_v44  ;;  %v6662_v1 = vpop.f32.mrb[11].mxu1  ;;  %6963 = vmatprep.subr.bf16.mxu1 %v9400_v47  ;;  %v9956_v25 = vld [vmem:[#allocation9 + $0xd0] sm:$0xff]   ;;  %v9959_v44 = vld [vmem:[#allocation9 + $0x58] sm:$0xff]   ;;  %v1030_v59 = vsub.s32 7, %v10452_v6  ;;  %v1003_v62 = vrot.slane %v10470_v52, %v1002_v16 }
 0x3e1   :  { %v9957_v41 = vld [vmem:[#allocation9 + $0x10] sm:$0xff]   ;;  %v9962_v47 = vld [vmem:[#allocation9 + $0x98] sm:$0xff]   ;;  %v9970_v63 = vld [vmem:[#allocation9 + $0xa8] sm:$0xff]  }
 0x3e2   :  { %v9958_v42 = vld [vmem:[#allocation9 + $0x90] sm:$0xff]   ;;  %v1031_v38 = vrot.slane %v10470_v52, %v1030_v59  ;;  %v9802_v3 = vadd.f32 %v10392_v33, %v1003_v62 }
 0x3e3   :  { %6800 = vmatpush1.bf16.msra.mxu0 %v9397_v60  ;;  %6964 = vmatpush1.bf16.msra.mxu1 %v9399_v39  ;;  %v9969_v60 = vld [vmem:[#allocation9 + $0x28] sm:$0xff]   ;;  %v9971_v39 = vld [vmem:[#allocation9 + $0x70] sm:$0xff]  }
 0x3e4   :  { %6801 = vmatprep.subr.bf16.mxu0 %v9414_v0  ;;  %6965 = vmatprep.subr.bf16.mxu1 %v9416_v2  ;;  %v1011_v0 = vrot.slane %v10470_v52, %v1010_v19  ;;  %v9972_v1 = vld [vmem:[#allocation9 + $0xf0] sm:$0xff]   ;;  %v1023_v2 = vrot.slane %v10470_v52, %v1022_v58 }
 0x3e5   :  { %v9973_v16 = vld [vmem:[#allocation9 + $0x30] sm:$0xff]  }
 0x3e6   :  { %v9804_v19 = vadd.f32 %v10394_v37, %v1011_v0  ;;  %v9981_v37 = vld [vmem:[#allocation9 + $0x100] sm:$0xff]  }
 0x3e7   :  { %6802 = vmatpush1.bf16.msra.mxu0 %v9413_v5  ;;  %6966 = vmatpush1.bf16.msra.mxu1 %v9415_v46  ;;  %v9976_v5 = vld [vmem:[#allocation9 + $0xf8] sm:$0xff]   ;;  %v9807_v46 = vadd.f32 %v10426_v30, %v1023_v2  ;;  %v9982_v30 = vld [vmem:[#allocation9 + $0x180] sm:$0xff]  }
 0x3e8   :  { %9445 = vmatprep.subr.msk.bf16.mxu0 %vm5631_vm1, %v9430_v7  ;;  %9447 = vmatprep.subr.msk.bf16.mxu1 %vm5631_vm1, %v9432_v9  ;;  %v9809_v7 = vadd.f32 %v10428_v15, %v1031_v38  ;;  %v6992_v9 = vmax.f32 %v9802_v3, 0.0  ;;  %v6994_v33 = vmax.f32 %v9804_v19, 0.0  ;;  %v9983_v15 = vld [vmem:[#allocation9 + $0x148] sm:$0xff]   ;;  %v10007_v2 = vld [vmem:[#allocation9 + $0x178] sm:$0xff]  }
 0x3e9   :  { %v10009_v3 = vld [vmem:[#allocation9 + $0x138] sm:$0xff]  }
 0x3eb   :  { %6804 = vmatpush1.bf16.msra.mxu0 %v5669_v53  ;;  %6968 = vmatpush1.bf16.msra.mxu1 %v5675_v18  ;;  %v6997_v53 = vmax.f32 %v9807_v46, 0.0  ;;  %v9610_v18 = vpack.c.bf16 %v6992_v9, %v6992_v9  ;;  %v7003_v46 = vmax.f32 %v10476_v61, 0.0  ;;  %v10019_v61 = vld [vmem:[#allocation9 + $0x250] sm:$0xff]  }
 0x3ec   :  { %9626 = vmatprep.subr.bf16.mxu0 %v9947_v17  ;;  %9648 = vmatprep.subr.bf16.mxu1 %v9948_v20  ;;  %v6999_v17 = vmax.f32 %v9809_v7, 0.0  ;;  %v9612_v20 = vpack.c.bf16 %v6994_v33, %v6994_v33  ;;  %v10013_v7 = vld [vmem:[#allocation9 + $0x200] sm:$0xff]   ;;  %v10016_v33 = vld [vmem:[#allocation9 + $0x2c8] sm:$0xff]  }
 0x3ed   :  { %v9615_v21 = vpack.c.bf16 %v6997_v53, %v6997_v53  ;;  %v10017_v53 = vld [vmem:[#allocation9 + $0x208] sm:$0xff]  }
 0x3ee   :  { %6820 = vmatmul.mubr.bf16.vlgmr.msra.gmra.mrb[12].mxu0 %v10372_v55  ;;  %6984 = vmatmul.mubr.bf16.vlgmr.msra.gmra.mrb[12].mxu1 %v10372_v55  ;;  %v9961_v55 = vld [vmem:[#allocation9 + $0x18] sm:$0xff]  }
 0x3ef   :  { %9627 = vmatpush3.bf16.msra.mxu0 %v9949_v26  ;;  %8207 = vmatprep.mubr.bf16.mxu0 %v9611_v27  ;;  %v9617_v26 = vpack.c.bf16 %v6999_v17, %v6999_v17  ;;  %v9987_v27 = vld [vmem:[#allocation9 + $0x150] sm:$0xff]  }
 0x3f0   :  { %9649 = vmatpush3.bf16.msra.mxu1 %v9950_v40  ;;  %8247 = vmatprep.mubr.bf16.mxu1 %v9613_v31  ;;  %v9985_v40 = vld [vmem:[#allocation9 + $0x108] sm:$0xff]   ;;  %v9989_v31 = vld [vmem:[#allocation9 + $0x110] sm:$0xff]  }
 0x3f1   :  { %9628 = vmatprep.subr.bf16.mxu0 %v9951_v43  ;;  %9650 = vmatprep.subr.bf16.mxu1 %v9952_v28  ;;  %v9986_v43 = vld [vmem:[#allocation9 + $0x188] sm:$0xff]   ;;  %v9988_v28 = vld [vmem:[#allocation9 + $0x1d0] sm:$0xff]  }
 0x3f2   :  { %v10020_v17 = vld [vmem:[#allocation9 + $0x2d0] sm:$0xff]  }
 0x3f3   :  { %9629 = vmatpush3.bf16.msra.mxu0 %v9953_v32  ;;  %v9990_v32 = vld [vmem:[#allocation9 + $0x190] sm:$0xff]  }
 0x3f4   :  { %9651 = vmatpush3.bf16.msra.mxu1 %v9954_v35  ;;  %9630 = vmatprep.subr.bf16.mxu0 %v9955_v36  ;;  %v9991_v35 = vld [vmem:[#allocation9 + $0x158] sm:$0xff]  }
 0x3f5   :  { %9652 = vmatprep.subr.bf16.mxu1 %v9956_v25  ;;  %v9992_v36 = vld [vmem:[#allocation9 + $0x1d8] sm:$0xff]  }
 0x3f6   :  { %v9993_v25 = vld [vmem:[#allocation9 + $0x118] sm:$0xff]  }
 0x3f7   :  { %9631 = vmatpush3.bf16.msra.mxu0 %v9957_v41  ;;  %v9994_v41 = vld [vmem:[#allocation9 + $0x198] sm:$0xff]  }
 0x3f8   :  { %9653 = vmatpush3.bf16.msra.mxu1 %v9958_v42  ;;  %9632 = vmatprep.subr.bf16.mxu0 %v9959_v44  ;;  %v9995_v42 = vld [vmem:[#allocation9 + $0x160] sm:$0xff]  }
 0x3f9   :  { %9654 = vmatprep.subr.bf16.mxu1 %v9960_v45  ;;  %v9996_v44 = vld [vmem:[#allocation9 + $0x1e0] sm:$0xff]  }
 0x3fa   :  { %v9997_v45 = vld [vmem:[#allocation9 + $0x120] sm:$0xff]  }
 0x3fb   :  { %9633 = vmatpush3.bf16.msra.mxu0 %v9961_v55  ;;  %v1018_v55 = vsub.s32 4, %v10452_v6 }
 0x3fc   :  { %9655 = vmatpush3.bf16.msra.mxu1 %v9962_v47  ;;  %9634 = vmatprep.subr.bf16.mxu0 %v9963_v57  ;;  %v9998_v47 = vld [vmem:[#allocation9 + $0x1a0] sm:$0xff]   ;;  %v9999_v57 = vld [vmem:[#allocation9 + $0x168] sm:$0xff]  }
 0x3fd   :  { %9656 = vmatprep.subr.bf16.mxu1 %v9964_v48  ;;  %v1026_v48 = vsub.s32 6, %v10452_v6 }
 0x3ff   :  { %9635 = vmatpush3.bf16.msra.mxu0 %v9965_v49  ;;  %v10000_v49 = vld [vmem:[#allocation9 + $0x1e8] sm:$0xff]   ;;  %v1027_v62 = vrot.slane %v10470_v52, %v1026_v48 }
 0x400   :  { %9657 = vmatpush3.bf16.msra.mxu1 %v9966_v34  ;;  %9636 = vmatprep.subr.bf16.mxu0 %v9967_v50  ;;  %v10001_v34 = vld [vmem:[#allocation9 + $0x128] sm:$0xff]   ;;  %v1019_v50 = vrot.slane %v10470_v52, %v1018_v55  ;;  %v10010_v52 = vld [vmem:[#allocation9 + $0x1b8] sm:$0xff]  }
 0x401   :  { %9658 = vmatprep.subr.bf16.mxu1 %v9968_v51  ;;  %v10002_v51 = vld [vmem:[#allocation9 + $0x1a8] sm:$0xff]   ;;  %v9808_v38 = vadd.f32 %v10424_v29, %v1027_v62  ;;  %v10014_v29 = vld [vmem:[#allocation9 + $0x280] sm:$0xff]  }
 0x402   :  { %v9806_v0 = vadd.f32 %v10422_v23, %v1019_v50  ;;  %v7001_v23 = vmax.f32 %v10474_v56, 0.0  ;;  %v10018_v56 = vld [vmem:[#allocation9 + $0x288] sm:$0xff]   ;;  %v10044_v50 = vld [vmem:[#allocation9 + $0x3c0] sm:$0xff]  }
 0x403   :  { %9637 = vmatpush3.bf16.msra.mxu0 %v9969_v60  ;;  %v10003_v60 = vld [vmem:[#allocation9 + $0x170] sm:$0xff]   ;;  %v6998_v19 = vmax.f32 %v9808_v38, 0.0  ;;  %v10046_v62 = vld [vmem:[#allocation9 + $0x380] sm:$0xff]  }
 0x404   :  { %9659 = vmatpush3.bf16.msra.mxu1 %v9970_v63  ;;  %9638 = vmatprep.subr.bf16.mxu0 %v9971_v39  ;;  %v10004_v63 = vld [vmem:[#allocation9 + $0x1f0] sm:$0xff]  }
 0x405   :  { %9660 = vmatprep.subr.bf16.mxu1 %v9972_v1  ;;  %v10005_v39 = vld [vmem:[#allocation9 + $0x130] sm:$0xff]   ;;  %v9616_v9 = vpack.c.bf16 %v6998_v19, %v6998_v19  ;;  %v10059_v19 = vld [vmem:[#allocation9 + $0x360] sm:$0xff]  }
 0x406   :  { %v10006_v1 = vld [vmem:[#allocation9 + $0x1b0] sm:$0xff]  }
 0x407   :  { %9639 = vmatpush3.bf16.msra.mxu0 %v9973_v16  ;;  %v10008_v16 = vld [vmem:[#allocation9 + $0x1f8] sm:$0xff]   ;;  %v10053_v38 = vld [vmem:[#allocation9 + $0x310] sm:$0xff]  }
 0x408   :  { %9661 = vmatpush3.bf16.msra.mxu1 %v9974_v12  ;;  %9640 = vmatprep.subr.bf16.mxu0 %v9975_v4  ;;  %v6996_v12 = vmax.f32 %v9806_v0, 0.0  ;;  %v10011_v4 = vld [vmem:[#allocation9 + $0x240] sm:$0xff]   ;;  %v10048_v0 = vld [vmem:[#allocation9 + $0x3c8] sm:$0xff]  }
 0x409   :  { %9662 = vmatprep.subr.bf16.mxu1 %v9976_v5  ;;  %v10012_v5 = vld [vmem:[#allocation9 + $0x2c0] sm:$0xff]  }
 0x40b   :  { %9641 = vmatpush3.bf16.msra.mxu0 %v9977_v8  ;;  %v9614_v8 = vpack.c.bf16 %v6996_v12, %v6996_v12  ;;  %v10056_v12 = vld [vmem:[#allocation9 + $0x3d8] sm:$0xff]  }
 0x40c   :  { %9663 = vmatpush3.bf16.msra.mxu1 %v9978_v10  ;;  %9670 = vmatprep.subr.bf16.mxu0 %v9979_v11  ;;  %v10015_v10 = vld [vmem:[#allocation9 + $0x248] sm:$0xff]   ;;  %v9619_v11 = vpack.c.bf16 %v7001_v23, %v7001_v23  ;;  %v10061_v23 = vld [vmem:[#allocation9 + $0x320] sm:$0xff]  }
 0x40d   :  { %9692 = vmatprep.subr.bf16.mxu1 %v9980_v13  ;;  %v9621_v13 = vpack.c.bf16 %v7003_v46, %v7003_v46  ;;  %v10062_v46 = vld [vmem:[#allocation9 + $0x3a0] sm:$0xff]  }
 0x40e   :  { %8208 = vmatmul.mubr.bf16.vlgmr.msra.gmra.mrb[16].mxu0 %v9610_v18  ;;  %v10022_v18 = vld [vmem:[#allocation9 + $0x290] sm:$0xff]  }
 0x40f   :  { %8248 = vmatmul.mubr.bf16.vlgmr.msra.gmra.mrb[16].mxu1 %v9612_v20  ;;  %9671 = vmatpush3.bf16.msra.mxu0 %v9981_v37  ;;  %v10021_v37 = vld [vmem:[#allocation9 + $0x210] sm:$0xff]   ;;  %v10024_v20 = vld [vmem:[#allocation9 + $0x2d8] sm:$0xff]  }
 0x410   :  { %8287 = vmatprep.mubr.bf16.mxu0 %v9615_v21  ;;  %9693 = vmatpush3.bf16.msra.mxu1 %v9982_v30  ;;  %v10023_v30 = vld [vmem:[#allocation9 + $0x258] sm:$0xff]  }
 0x411   :  { %8327 = vmatprep.mubr.bf16.mxu1 %v9617_v26  ;;  %9672 = vmatprep.subr.bf16.mxu0 %v9983_v15  ;;  %v10025_v15 = vld [vmem:[#allocation9 + $0x218] sm:$0xff]   ;;  %v10028_v26 = vld [vmem:[#allocation9 + $0x2e0] sm:$0xff]  }
 0x412   :  { %9694 = vmatprep.subr.bf16.mxu1 %v9984_v22  ;;  %v10026_v21 = vld [vmem:[#allocation9 + $0x298] sm:$0xff]   ;;  %v10027_v22 = vld [vmem:[#allocation9 + $0x260] sm:$0xff]  }
 0x413   :  { %9673 = vmatpush3.bf16.msra.mxu0 %v9985_v40  ;;  %v10029_v40 = vld [vmem:[#allocation9 + $0x220] sm:$0xff]  }
 0x414   :  { %9695 = vmatpush3.bf16.msra.mxu1 %v9986_v43  ;;  %9674 = vmatprep.subr.bf16.mxu0 %v9987_v27  ;;  %v10030_v43 = vld [vmem:[#allocation9 + $0x2a0] sm:$0xff]   ;;  %v10031_v27 = vld [vmem:[#allocation9 + $0x268] sm:$0xff]  }
 0x415   :  { %9696 = vmatprep.subr.bf16.mxu1 %v9988_v28  ;;  %v10032_v28 = vld [vmem:[#allocation9 + $0x2e8] sm:$0xff]  }
 0x417   :  { %9675 = vmatpush3.bf16.msra.mxu0 %v9989_v31  ;;  %v10033_v31 = vld [vmem:[#allocation9 + $0x228] sm:$0xff]  }
 0x418   :  { %9697 = vmatpush3.bf16.msra.mxu1 %v9990_v32  ;;  %9676 = vmatprep.subr.bf16.mxu0 %v9991_v35  ;;  %v10034_v32 = vld [vmem:[#allocation9 + $0x2a8] sm:$0xff]   ;;  %v10035_v35 = vld [vmem:[#allocation9 + $0x270] sm:$0xff]  }
 0x419   :  { %9698 = vmatprep.subr.bf16.mxu1 %v9992_v36  ;;  %v10036_v36 = vld [vmem:[#allocation9 + $0x2f0] sm:$0xff]  }
 0x41b   :  { %9677 = vmatpush3.bf16.msra.mxu0 %v9993_v25  ;;  %v10037_v25 = vld [vmem:[#allocation9 + $0x230] sm:$0xff]  }
 0x41c   :  { %9699 = vmatpush3.bf16.msra.mxu1 %v9994_v41  ;;  %9678 = vmatprep.subr.bf16.mxu0 %v9995_v42  ;;  %v10038_v41 = vld [vmem:[#allocation9 + $0x2b0] sm:$0xff]   ;;  %v10039_v42 = vld [vmem:[#allocation9 + $0x278] sm:$0xff]  }
 0x41d   :  { %9700 = vmatprep.subr.bf16.mxu1 %v9996_v44  ;;  %v10040_v44 = vld [vmem:[#allocation9 + $0x2f8] sm:$0xff]  }
 0x41f   :  { %9679 = vmatpush3.bf16.msra.mxu0 %v9997_v45  ;;  %v10041_v45 = vld [vmem:[#allocation9 + $0x238] sm:$0xff]  }
 0x420   :  { %9701 = vmatpush3.bf16.msra.mxu1 %v9998_v47  ;;  %9680 = vmatprep.subr.bf16.mxu0 %v9999_v57  ;;  %v7000_v47 = vmax.f32 %v10468_v24, 0.0  ;;  %v10042_v57 = vld [vmem:[#allocation9 + $0x2b8] sm:$0xff]   ;;  %v10049_v24 = vld [vmem:[#allocation9 + $0x308] sm:$0xff]  }
 0x421   :  { %9702 = vmatprep.subr.bf16.mxu1 %v10000_v49  ;;  %v10043_v49 = vld [vmem:[#allocation9 + $0x340] sm:$0xff]  }
 0x423   :  { %9681 = vmatpush3.bf16.msra.mxu0 %v10001_v34  ;;  %v7002_v34 = vmax.f32 %v10472_v54, 0.0  ;;  %v10051_v54 = vld [vmem:[#allocation9 + $0x350] sm:$0xff]  }
 0x424   :  { %9703 = vmatpush3.bf16.msra.mxu1 %v10002_v51  ;;  %9682 = vmatprep.subr.bf16.mxu0 %v10003_v60  ;;  %v10045_v51 = vld [vmem:[#allocation9 + $0x300] sm:$0xff]   ;;  %v9618_v60 = vpack.c.bf16 %v7000_v47, %v7000_v47 }
 0x425   :  { %9704 = vmatprep.subr.bf16.mxu1 %v10004_v63  ;;  %v10047_v63 = vld [vmem:[#allocation9 + $0x348] sm:$0xff]  }
 0x427   :  { %9683 = vmatpush3.bf16.msra.mxu0 %v10005_v39  ;;  %v9620_v39 = vpack.c.bf16 %v7002_v34, %v7002_v34 }
 0x428   :  { %9705 = vmatpush3.bf16.msra.mxu1 %v10006_v1  ;;  %9684 = vmatprep.subr.bf16.mxu0 %v10007_v2  ;;  %v10050_v1 = vld [vmem:[#allocation9 + $0x388] sm:$0xff]   ;;  %v10052_v2 = vld [vmem:[#allocation9 + $0x3d0] sm:$0xff]  }
 0x429   :  { %9706 = vmatprep.subr.bf16.mxu1 %v10008_v16  ;;  %v10054_v16 = vld [vmem:[#allocation9 + $0x390] sm:$0xff]  }
 0x42b   :  { %9685 = vmatpush3.bf16.msra.mxu0 %v10009_v3  ;;  %v10055_v3 = vld [vmem:[#allocation9 + $0x358] sm:$0xff]  }
 0x42c   :  { %9707 = vmatpush3.bf16.msra.mxu1 %v10010_v52  ;;  %9714 = vmatprep.subr.bf16.mxu0 %v10011_v4  ;;  %v10057_v52 = vld [vmem:[#allocation9 + $0x318] sm:$0xff]  }
 0x42d   :  { %9736 = vmatprep.subr.bf16.mxu1 %v10012_v5  ;;  %v10058_v4 = vld [vmem:[#allocation9 + $0x398] sm:$0xff]   ;;  %v10060_v5 = vld [vmem:[#allocation9 + $0x3e0] sm:$0xff]  }
 0x42e   :  { %8288 = vmatmul.mubr.bf16.vlgmr.msra.gmra.mrb[20].mxu0 %v9614_v8  ;;  %v10064_v8 = vld [vmem:[#allocation9 + $0x3e8] sm:$0xff]  }
 0x42f   :  { %8328 = vmatmul.mubr.bf16.vlgmr.msra.gmra.mrb[20].mxu1 %v9616_v9  ;;  %9715 = vmatpush3.bf16.msra.mxu0 %v10013_v7  ;;  %v10063_v7 = vld [vmem:[#allocation9 + $0x368] sm:$0xff]  }
 0x430   :  { %8367 = vmatprep.mubr.bf16.mxu0 %v9619_v11  ;;  %9737 = vmatpush3.bf16.msra.mxu1 %v10014_v29  ;;  %v10065_v29 = vld [vmem:[#allocation9 + $0x328] sm:$0xff]   ;;  %v10068_v11 = vld [vmem:[#allocation9 + $0x3f0] sm:$0xff]  }
 0x431   :  { %8407 = vmatprep.mubr.bf16.mxu1 %v9621_v13  ;;  %9716 = vmatprep.subr.bf16.mxu0 %v10015_v10  ;;  %v10066_v9 = vld [vmem:[#allocation9 + $0x3a8] sm:$0xff]   ;;  %v10067_v10 = vld [vmem:[#allocation9 + $0x370] sm:$0xff]  }
 0x432   :  { %9738 = vmatprep.subr.bf16.mxu1 %v10016_v33  ;;  %v10069_v33 = vld [vmem:[#allocation9 + $0x330] sm:$0xff]  }
 0x433   :  { %9717 = vmatpush3.bf16.msra.mxu0 %v10017_v53  ;;  %v10070_v13 = vld [vmem:[#allocation9 + $0x3b0] sm:$0xff]   ;;  %v10071_v53 = vld [vmem:[#allocation9 + $0x378] sm:$0xff]  }
 0x434   :  { %9739 = vmatpush3.bf16.msra.mxu1 %v10018_v56  ;;  %9718 = vmatprep.subr.bf16.mxu0 %v10019_v61  ;;  %v10072_v56 = vld [vmem:[#allocation9 + $0x3f8] sm:$0xff]  }
 0x435   :  { %9740 = vmatprep.subr.bf16.mxu1 %v10020_v17  ;;  %v10073_v61 = vld [vmem:[#allocation9 + $0x338] sm:$0xff]  }
 0x436   :  { %v10074_v17 = vld [vmem:[#allocation9 + $0x3b8] sm:$0xff]  }
 0x437   :  { %9719 = vmatpush3.bf16.msra.mxu0 %v10021_v37  ;;  %v1051_v37 = vrot.slane %v10454_v14, %v1018_v55 }
 0x438   :  { %9741 = vmatpush3.bf16.msra.mxu1 %v10022_v18  ;;  %9720 = vmatprep.subr.bf16.mxu0 %v10023_v30  ;;  %v1059_v18 = vrot.slane %v10454_v14, %v1026_v48  ;;  %v1055_v30 = vrot.slane %v10454_v14, %v1022_v58 }
 0x439   :  { %9742 = vmatprep.subr.bf16.mxu1 %v10024_v20  ;;  %v1063_v20 = vrot.slane %v10454_v14, %v1030_v59 }
 0x43b   :  { %9721 = vmatpush3.bf16.msra.mxu0 %v10025_v15 }
 0x43c   :  { %9743 = vmatpush3.bf16.msra.mxu1 %v10026_v21  ;;  %9722 = vmatprep.subr.bf16.mxu0 %v10027_v22 }
 0x43d   :  { %9744 = vmatprep.subr.bf16.mxu1 %v10028_v26 }
 0x43f   :  { %9723 = vmatpush3.bf16.msra.mxu0 %v10029_v40 }
 0x440   :  { %9745 = vmatpush3.bf16.msra.mxu1 %v10030_v43  ;;  %9724 = vmatprep.subr.bf16.mxu0 %v10031_v27 }
 0x441   :  { %9746 = vmatprep.subr.bf16.mxu1 %v10032_v28 }
 0x443   :  { %9725 = vmatpush3.bf16.msra.mxu0 %v10033_v31 }
 0x444   :  { %9747 = vmatpush3.bf16.msra.mxu1 %v10034_v32  ;;  %9726 = vmatprep.subr.bf16.mxu0 %v10035_v35 }
 0x445   :  { %9748 = vmatprep.subr.bf16.mxu1 %v10036_v36 }
 0x447   :  { %9727 = vmatpush3.bf16.msra.mxu0 %v10037_v25 }
 0x448   :  { %9749 = vmatpush3.bf16.msra.mxu1 %v10038_v41  ;;  %9728 = vmatprep.subr.bf16.mxu0 %v10039_v42 }
 0x449   :  { %9750 = vmatprep.subr.bf16.mxu1 %v10040_v44 }
 0x44b   :  { %9729 = vmatpush3.bf16.msra.mxu0 %v10041_v45  ;;  %v9457_v45 = vld [vmem:[#allocation11] ss:$0 sm:$0xff] }
 0x44c   :  { %9751 = vmatpush3.bf16.msra.mxu1 %v10042_v57  ;;  %9758 = vmatprep.subr.bf16.mxu0 %v10043_v49 }
 0x44d   :  { %9780 = vmatprep.subr.bf16.mxu1 %v10044_v50 }
 0x44e   :  { %8368 = vmatmul.mubr.bf16.vlgmr.msra.gmra.mrb[24].mxu0 %v9618_v60 }
 0x44f   :  { %8408 = vmatmul.mubr.bf16.vlgmr.msra.gmra.mrb[24].mxu1 %v9620_v39  ;;  %9759 = vmatpush3.bf16.msra.mxu0 %v10045_v51 }
 0x450   :  { %9781 = vmatpush3.bf16.msra.mxu1 %v10046_v62  ;;  %9760 = vmatprep.subr.bf16.mxu0 %v10047_v63 }
 0x451   :  { %9782 = vmatprep.subr.bf16.mxu1 %v10048_v0 }
 0x453   :  { %9761 = vmatpush3.bf16.msra.mxu0 %v10049_v24 }
 0x454   :  { %9783 = vmatpush3.bf16.msra.mxu1 %v10050_v1  ;;  %9762 = vmatprep.subr.bf16.mxu0 %v10051_v54 }
 0x455   :  { %9784 = vmatprep.subr.bf16.mxu1 %v10052_v2 }
 0x457   :  { %9763 = vmatpush3.bf16.msra.mxu0 %v10053_v38 }
 0x458   :  { %9785 = vmatpush3.bf16.msra.mxu1 %v10054_v16  ;;  %9764 = vmatprep.subr.bf16.mxu0 %v10055_v3 }
 0x459   :  { %9786 = vmatprep.subr.bf16.mxu1 %v10056_v12 }
 0x45b   :  { %9765 = vmatpush3.bf16.msra.mxu0 %v10057_v52 }
 0x45c   :  { %9787 = vmatpush3.bf16.msra.mxu1 %v10058_v4  ;;  %9766 = vmatprep.subr.bf16.mxu0 %v10059_v19 }
 0x45d   :  { %9788 = vmatprep.subr.bf16.mxu1 %v10060_v5 }
 0x45f   :  { %9767 = vmatpush3.bf16.msra.mxu0 %v10061_v23 }
 0x460   :  { %9789 = vmatpush3.bf16.msra.mxu1 %v10062_v46  ;;  %9768 = vmatprep.subr.bf16.mxu0 %v10063_v7 }
 0x461   :  { %9790 = vmatprep.subr.bf16.mxu1 %v10064_v8 }
 0x463   :  { %9769 = vmatpush3.bf16.msra.mxu0 %v10065_v29 }
 0x464   :  { %9791 = vmatpush3.bf16.msra.mxu1 %v10066_v9  ;;  %9770 = vmatprep.subr.bf16.mxu0 %v10067_v10 }
 0x465   :  { %9792 = vmatprep.subr.bf16.mxu1 %v10068_v11 }
 0x467   :  { %9771 = vmatpush3.bf16.msra.mxu0 %v10069_v33 }
 0x468   :  { %9793 = vmatpush3.bf16.msra.mxu1 %v10070_v13  ;;  %9772 = vmatprep.subr.bf16.mxu0 %v10071_v53 }
 0x469   :  { %9794 = vmatprep.subr.bf16.mxu1 %v10072_v56 }
 0x46b   :  { %9773 = vmatpush3.bf16.msra.mxu0 %v10073_v61 }
 0x46c   :  { %9795 = vmatpush3.bf16.msra.mxu1 %v10074_v17 }
 0x4c1   :  { %v6821_v15 = vpop.f32.mrb[12].mxu0  ;;  %v6985_v22 = vpop.f32.mrb[12].mxu1 }
 0x4c2   :  { %v9814_v21 = vadd.f32 %v6821_v15, %v1051_v37  ;;  %v6823_v26 = vpop.f32.mrb[13].mxu0  ;;  %v9816_v40 = vadd.f32 %v6985_v22, %v1059_v18  ;;  %v6987_v27 = vpop.f32.mrb[13].mxu1 }
 0x4c3   :  { %v9815_v43 = vadd.f32 %v6823_v26, %v1055_v30  ;;  %v6825_v55 = vpop.f32.mrb[14].mxu0  ;;  %v9817_v31 = vadd.f32 %v6987_v27, %v1063_v20  ;;  %v6989_v32 = vpop.f32.mrb[14].mxu1 }
 0x4c4   :  { %v7004_v28 = vmax.f32 %v9814_v21, 0.0  ;;  %v6826_v48 = vpop.f32.mrb[15].mxu0  ;;  %v7006_v35 = vmax.f32 %v9816_v40, 0.0  ;;  %v6990_v25 = vpop.f32.mrb[15].mxu1 }
 0x4c5   :  { %v7005_v36 = vmax.f32 %v9815_v43, 0.0  ;;  %v7007_v58 = vmax.f32 %v9817_v31, 0.0 }
 0x4c6   :  { %v9622_v6 = vpack.c.bf16 %v7004_v28, %v7004_v28  ;;  %v9624_v14 = vpack.c.bf16 %v7006_v35, %v7006_v35 }
 0x4c7   :  { %v9623_v41 = vpack.c.bf16 %v7005_v36, %v7005_v36  ;;  %v9625_v42 = vpack.c.bf16 %v7007_v58, %v7007_v58 }
 0x4c9   :  { %8447 = vmatprep.mubr.bf16.mxu0 %v9623_v41  ;;  %8487 = vmatprep.mubr.bf16.mxu1 %v9625_v42 }
 0x4ca   :  { %8448 = vmatmul.mubr.bf16.vlgmr.msra.gmra.mrb[28].mxu0 %v9622_v6  ;;  %8488 = vmatmul.mubr.bf16.vlgmr.msra.gmra.mrb[28].mxu1 %v9624_v14 }
 0x4e1   :  { %v9642_v59 = vpop.f32.mrb[16].mxu0 }
 0x4e2   :  { %v9664_v44 = vpop.f32.mrb[16].mxu1  ;;  %v9643_v47 = vpop.f32.mrb[17].mxu0 }
 0x4e3   :  { %v9644_v57 = vadd.f32 %v9643_v47, %v9642_v59  ;;  %v9665_v49 = vpop.f32.mrb[17].mxu1  ;;  %v9645_v34 = vpop.f32.mrb[18].mxu0 }
 0x4e4   :  { %v9666_v50 = vadd.f32 %v9665_v49, %v9664_v44  ;;  %v9667_v51 = vpop.f32.mrb[18].mxu1  ;;  %v9646_v60 = vpop.f32.mrb[19].mxu0 }
 0x4e5   :  { %v8210_v62 = vadd.f32 %v9644_v57, %v9457_v45  ;;  %v9668_v63 = vpop.f32.mrb[19].mxu1 }
 0x4e7   :  { %v8250_v39 = vadd.f32 %v9666_v50, %v8210_v62 }
 0x501   :  { %v9686_v0 = vpop.f32.mrb[20].mxu0 }
 0x502   :  { %v9708_v24 = vpop.f32.mrb[20].mxu1  ;;  %v9687_v1 = vpop.f32.mrb[21].mxu0 }
 0x503   :  { %v9688_v54 = vadd.f32 %v9687_v1, %v9686_v0  ;;  %v9709_v2 = vpop.f32.mrb[21].mxu1  ;;  %v9689_v38 = vpop.f32.mrb[22].mxu0 }
 0x504   :  { %v9710_v16 = vadd.f32 %v9709_v2, %v9708_v24  ;;  %v9711_v3 = vpop.f32.mrb[22].mxu1  ;;  %v9690_v12 = vpop.f32.mrb[23].mxu0 }
 0x505   :  { %v8290_v52 = vadd.f32 %v9688_v54, %v8250_v39  ;;  %v9712_v4 = vpop.f32.mrb[23].mxu1 }
 0x507   :  { %v8330_v19 = vadd.f32 %v9710_v16, %v8290_v52 }
 0x521   :  { %v9730_v5 = vpop.f32.mrb[24].mxu0 }
 0x522   :  { %v9752_v23 = vpop.f32.mrb[24].mxu1  ;;  %v9731_v46 = vpop.f32.mrb[25].mxu0 }
 0x523   :  { %v9732_v7 = vadd.f32 %v9731_v46, %v9730_v5  ;;  %v9753_v8 = vpop.f32.mrb[25].mxu1  ;;  %v9733_v29 = vpop.f32.mrb[26].mxu0 }
 0x524   :  { %v9754_v9 = vadd.f32 %v9753_v8, %v9752_v23  ;;  %v9755_v10 = vpop.f32.mrb[26].mxu1  ;;  %v9734_v11 = vpop.f32.mrb[27].mxu0 }
 0x525   :  { %v8370_v33 = vadd.f32 %v9732_v7, %v8330_v19  ;;  %v9756_v13 = vpop.f32.mrb[27].mxu1 }
 0x527   :  { %v8410_v53 = vadd.f32 %v9754_v9, %v8370_v33 }
 0x59d   :  { %v9774_v56 = vpop.f32.mrb[28].mxu0  ;;  %v9796_v61 = vpop.f32.mrb[28].mxu1 }
 0x59e   :  { %v9775_v17 = vpop.f32.mrb[29].mxu0  ;;  %v9797_v18 = vpop.f32.mrb[29].mxu1 }
 0x59f   :  { %v9776_v37 = vadd.f32 %v9775_v17, %v9774_v56  ;;  %v9777_v30 = vpop.f32.mrb[30].mxu0  ;;  %v9798_v20 = vadd.f32 %v9797_v18, %v9796_v61  ;;  %v9799_v15 = vpop.f32.mrb[30].mxu1 }
 0x5a0   :  { %v9778_v21 = vpop.f32.mrb[31].mxu0  ;;  %v9800_v26 = vpop.f32.mrb[31].mxu1 }
 0x5a1   :  { %v8450_v22 = vadd.f32 %v9776_v37, %v8410_v53 }
 0x5a3   :  { %v8490_v40 = vadd.f32 %v9798_v20, %v8450_v22 }
 0x5a5   :  { %8495 = vst [vmem:[#allocation12] sm:$0xff] %v8490_v40 }
 0x5a6   :  { %10196 = shalt.err (!%p10193_p2)
}
 0x5a7   :  { %s10197_s29 = scalar_lea.hbm %s10549_s5, 128 }
 0x5a8   :  { %p10198_p3 = scmp.ne.s32.totalorder %s10549_s5, %s10197_s29  ;;  %p10201_p4 = scmp.lt.u32.totalorder %s10197_s29, %s10549_s5 }
 0x5aa   :  { %p10203_p5 = pnand %p10201_p4, %p10198_p3 }
 0x5ac   :  { %10206 = shalt.err (!%p10203_p5)
}
 0x5ad   :  { %8505 = dma.vmem_to_hbm [thread:$0]  %s8503_s27, 128, %s10549_s5, [#allocation5]  }
 0x5ae   :  { %10213 = dma.done.wait [#allocation5], 128  }
 0x5af   :  { %10214 = vsyncadd [#allocation5], 4294967168 }
 0x5b0   :  { %8509 = vsyncpa [#allocation4], 1 }
 0x5b1   :  { %8510 = vsyncpa [#allocation7], 1 }
 0x5b2   :  { %8511 = vsyncpa [#allocation10], 1 }
 0x5b3   :  { %8512 = vsyncpa [#allocation5], 1 }

</bundles_post_ra>
